<compile_context>
chip_gen: v7x
topology: tpu7x:2x2x1
jax: 0.10.0
libtpu: 0.0.40
codegen_flags: <defaults>
</compile_context>

<pallas_src>
import functools

import jax
import jax.numpy as jnp
from jax import lax
from jax.experimental import pallas as pl
from jax.experimental.pallas import tpu as pltpu


def _layernorm(x, gamma, beta, eps=1e-5):
    mu = jnp.mean(x, axis=-1, keepdims=True)
    var = jnp.mean((x - mu) ** 2, axis=-1, keepdims=True)
    return (x - mu) * lax.rsqrt(var + eps) * gamma + beta


def _bf16(x):
    return x.astype(jnp.bfloat16)


# --------------------------------------------------------------------------- #
# Kernel
# --------------------------------------------------------------------------- #
def mixed_attention_kernel(
    x_ref,
    ln_a_g, ln_a_b, w_qkv, w_ao, b_ao,
    ln_c_g, ln_c_b, w_abcde, b_abcde, w_po, b_po,
    o_ref,
    heads_acc, z_acc, ab_scr, de_scr, c_scr,
    *, a_heads, c_heads, dim_head, seq_len, q_tile,
):
    T = seq_len
    dh = dim_head
    Ia = a_heads * dh
    Ic = c_heads * dh
    n_qt = T // q_tile
    f32 = jnp.float32

    x = x_ref[0]                                                     # (T, D) f32

    # ============================ Attention ============================ #
    xn = _layernorm(x, ln_a_g[...], ln_a_b[...])
    # One fused (T, D) @ (D, 3*Ia) QKV matmul; softmax scale pre-folded into w_q.
    qkv = jnp.dot(_bf16(xn), w_qkv[...], preferred_element_type=f32)  # (T, 3*Ia)

    for h in range(a_heads):
        q = qkv[:, h * dh:(h + 1) * dh]
        k = qkv[:, Ia + h * dh:Ia + (h + 1) * dh]
        v = qkv[:, 2 * Ia + h * dh:2 * Ia + (h + 1) * dh]
        dots = lax.dot_general(_bf16(q), _bf16(k), (((1,), (1,)), ((), ())),
                               preferred_element_type=f32)            # (T, T)
        m = jnp.max(dots, axis=-1, keepdims=True)
        p = jnp.exp(dots - m)
        p = p * pl.reciprocal(jnp.sum(p, axis=-1, keepdims=True), approx=True)
        # Write this head's output straight into its column slot (no concat).
        heads_acc[:, h * dh:(h + 1) * dh] = jnp.dot(
            _bf16(p), _bf16(v), preferred_element_type=f32)           # (T, dh)

    out_attn = jnp.dot(_bf16(heads_acc[...]), w_ao[...],
                       preferred_element_type=f32) + b_ao[...]        # (T, D)

    # =========================== Trittention =========================== #
    xn2 = _layernorm(x, ln_c_g[...], ln_c_b[...])
    # Fused (T, D) @ (D, 5*Ic) projection (+ bias); 1/dh folded into the b block.
    abcde = jnp.dot(_bf16(xn2), w_abcde[...],
                    preferred_element_type=f32) + b_abcde[...]        # (T, 5*Ic)

    for h in range(c_heads):
        def col(g, _h=h):
            off = g * Ic + _h * dh
            return abcde[:, off:off + dh]                             # (T, dh)
        a_h, b_h, c_h, d_h, e_h = (col(g) for g in range(5))

        # q-independent joint-key factors, computed once and amortized over all
        # q-tiles (stored in bf16 VMEM scratch = direct MXU operands):
        #   AB[s*T+t, f] = a[s, f] * b[t, f]      (b already carries the 1/dh)
        #   DE[s*T+t, f] = d[s, f] + e[t, f]
        ab_scr[...] = _bf16((a_h[:, None, :] * b_h[None, :, :]).reshape(T * T, dh))
        de_scr[...] = _bf16((d_h[:, None, :] + e_h[None, :, :]).reshape(T * T, dh))
        c_scr[...] = _bf16(c_h)

        def q_step(qt, carry, _h=h):
            q0 = qt * q_tile
            if not isinstance(q0, int):
                q0 = pl.multiple_of(q0, q_tile)
            c_tile = c_scr[pl.ds(q0, q_tile), :]                      # (Tq, dh) bf16
            # Joint (s, t) scores for the whole q-tile, kept lane-dense and 2-D:
            # logits[q, s*T+t] = sum_f c[q,f] a[s,f] b[t,f] / dh
            logits = lax.dot_general(c_tile, ab_scr[...],
                                     (((1,), (1,)), ((), ())),
                                     preferred_element_type=f32)      # (Tq, T*T)
            m = jnp.max(logits, axis=-1, keepdims=True)
            p = jnp.exp(logits - m)
            p = p * pl.reciprocal(jnp.sum(p, axis=-1, keepdims=True), approx=True)
            # z = P @ (d ⊕ e): one K = T*T matmul replaces both marginal sums
            # and the two narrow K = T matmuls.
            z_acc[pl.ds(q0, q_tile), _h * dh:(_h + 1) * dh] = jnp.dot(
                _bf16(p), de_scr[...], preferred_element_type=f32)    # (Tq, dh)
            return carry

        if n_qt == 1:
            q_step(0, 0)
        else:
            lax.fori_loop(0, n_qt, q_step, 0, unroll=(n_qt <= 8))

    out_tri = jnp.dot(_bf16(z_acc[...]), w_po[...],
                      preferred_element_type=f32) + b_po[...]         # (T, D)

    o_ref[0] = (out_attn + out_tri).astype(o_ref.dtype)


# --------------------------------------------------------------------------- #
# Tiling / VMEM budgeting helpers
# --------------------------------------------------------------------------- #
def _pick_q_tile(T):
    """Largest q-tile (multiple of 8, divisor of T) whose (q_tile, T*T) f32
    logits + probs stay around ~16 MiB (fits v7x's 64 MiB VMEM with headroom)."""
    if T <= 128:
        return T
    budget = 16 * 1024 * 1024
    qt = min(128, T, max(8, budget // (8 * T * T)))
    qt = max(8, (qt // 8) * 8)
    while qt > 8 and T % qt != 0:
        qt -= 8
    return qt if T % qt == 0 else T


def _vmem_limit_bytes(T, D, Ia, Ic, dh, q_tile):
    """Explicit scoped-VMEM budget (review item: v7x only has 64 MiB per TC)."""
    est = (
        4 * 2 * 2 * T * D                                    # x / out blocks (dbl-buffered)
        + 4 * T * (3 * Ia + 5 * Ic)                          # qkv + abcde activations
        + 4 * T * (Ia + Ic) + 2 * T * dh                     # heads_acc + z_acc + c scratch
        + 2 * 2 * T * T * dh                                 # AB + DE bf16 scratch
        + 8 * q_tile * T * T + 4 * T * T                     # joint logits/probs + attn scores
        + 2 * 2 * (D * 3 * Ia + D * 5 * Ic + Ia * D + Ic * D)  # bf16 weights (x2 buffers)
        + 8 * T * D                                          # out_attn / out_tri
    )
    est = int(est * 1.5) + (2 << 20)                         # padding / spill headroom
    if est <= 16 * 1024 * 1024:
        return None                                          # default scoped limit suffices
    try:
        cap = int(pltpu.get_tpu_info().vmem_capacity_bytes)
    except Exception:
        cap = 64 * 1024 * 1024                               # conservative: v7x per-TC VMEM
    return min(est, int(cap * 0.9))


# --------------------------------------------------------------------------- #
# Weight preparation (hoisted out of the per-call forward)
# --------------------------------------------------------------------------- #
def prepare_params(p, *, a_heads, c_heads, dim_head):
    """Fuse / pre-transpose / pre-scale / bf16-cast weights once."""
    dh = dim_head
    D = p["w_q"].shape[1]
    Ia, Ic = a_heads * dh, c_heads * dh
    bf16 = jnp.bfloat16
    scale = dh ** -0.5

    def merge_w(w):  # (H, D, dh) -> (D, H*dh)   (column = h*dh + d)
        return jnp.transpose(w, (1, 0, 2)).reshape(D, -1)

    # Fold softmax scale into w_q (to_qkv has no bias).
    w_qkv = jnp.concatenate(
        [merge_w(p["w_q"]) * scale, merge_w(p["w_k"]), merge_w(p["w_v"])],
        axis=1).astype(bf16)
    w_ao = p["w_out"].reshape(Ia, D).astype(bf16)

    # Fold 1/dim_head into the `b` projection (weight AND bias).
    sc = {"a": 1.0, "b": 1.0 / dh, "c": 1.0, "d": 1.0, "e": 1.0}
    w_abcde = jnp.concatenate(
        [merge_w(p["w_" + n]) * sc[n] for n in "abcde"], axis=1).astype(bf16)
    b_abcde = jnp.concatenate(
        [p["b_" + n].reshape(1, -1) * sc[n] for n in "abcde"],
        axis=1).astype(jnp.float32)
    w_po = p["w_p"].reshape(Ic, D).astype(bf16)

    return {
        "ln_a_g": p["ln_a_g"], "ln_a_b": p["ln_a_b"],
        "w_qkv": w_qkv, "w_ao": w_ao, "b_ao": p["b_out"],
        "ln_c_g": p["ln_c_g"], "ln_c_b": p["ln_c_b"],
        "w_abcde": w_abcde, "b_abcde": b_abcde,
        "w_po": w_po, "b_po": p["b_p"],
    }


# --------------------------------------------------------------------------- #
# Forward wrapper
# --------------------------------------------------------------------------- #
def mixed_attention_forward(x, fused, *, a_heads, c_heads, dim_head, q_tile=None):
    B, T, D = x.shape
    dh = dim_head
    Ia, Ic = a_heads * dh, c_heads * dh
    if q_tile is None:
        q_tile = _pick_q_tile(T)
    assert T % q_tile == 0

    names = ["ln_a_g", "ln_a_b", "w_qkv", "w_ao", "b_ao",
             "ln_c_g", "ln_c_b", "w_abcde", "b_abcde", "w_po", "b_po"]
    weights = [fused[n] for n in names]

    kernel = functools.partial(
        mixed_attention_kernel,
        a_heads=a_heads, c_heads=c_heads, dim_head=dh, seq_len=T, q_tile=q_tile,
    )
    scratch = [
        pltpu.VMEM((T, Ia), jnp.float32),        # per-head attention outputs
        pltpu.VMEM((T, Ic), jnp.float32),        # per-head trittention outputs
        pltpu.VMEM((T * T, dh), jnp.bfloat16),   # AB factor
        pltpu.VMEM((T * T, dh), jnp.bfloat16),   # DE factor
        pltpu.VMEM((T, dh), jnp.bfloat16),       # per-head c
    ]
    vmem_limit = _vmem_limit_bytes(T, D, Ia, Ic, dh, q_tile)

    def build(single_buffer_weights):
        in_specs = [pl.BlockSpec((1, T, D), lambda b: (b, 0, 0))]
        for w in weights:
            idx = lambda b, nd=w.ndim: (0,) * nd
            if single_buffer_weights:
                # Grid-invariant weights: no need to double-buffer them.
                spec = pl.BlockSpec(w.shape, idx, pipeline_mode=pl.Buffered(1))
            else:
                spec = pl.BlockSpec(w.shape, idx)
            in_specs.append(spec)
        return pl.pallas_call(
            kernel,
            out_shape=jax.ShapeDtypeStruct((B, T, D), x.dtype),
            grid_spec=pltpu.PrefetchScalarGridSpec(
                num_scalar_prefetch=0,
                grid=(B,),
                in_specs=in_specs,
                out_specs=pl.BlockSpec((1, T, D), lambda b: (b, 0, 0)),
                scratch_shapes=scratch,
            ),
            compiler_params=pltpu.CompilerParams(
                dimension_semantics=("parallel",),
                vmem_limit_bytes=vmem_limit,
            ),
        )

    try:
        return build(True)(x, *weights)
    except Exception:
        # pipeline_mode=Buffered(1) unsupported on this Pallas version ->
        # fall back to default double-buffering of the weight blocks.
        return build(False)(x, *weights)


# --------------------------------------------------------------------------- #
# Parameters + pure-JAX reference
# --------------------------------------------------------------------------- #
def init_params(key, dim, a_heads, c_heads, dim_head):
    s = 0.1
    ks = jax.random.split(key, 8)
    p = {
        "ln_a_g": jnp.ones((1, dim), jnp.float32),
        "ln_a_b": jnp.zeros((1, dim), jnp.float32),
        "ln_c_g": jnp.ones((1, dim), jnp.float32),
        "ln_c_b": jnp.zeros((1, dim), jnp.float32),
    }
    wqkv = jax.random.normal(ks[0], (3, a_heads, dim, dim_head), jnp.float32) * s
    p["w_q"], p["w_k"], p["w_v"] = wqkv[0], wqkv[1], wqkv[2]
    p["w_out"] = jax.random.normal(ks[1], (a_heads, dim_head, dim), jnp.float32) * s
    p["b_out"] = jax.random.normal(ks[2], (1, dim), jnp.float32) * s
    wab = jax.random.normal(ks[3], (5, c_heads, dim, dim_head), jnp.float32) * s
    bab = jax.random.normal(ks[4], (5, c_heads, 1, dim_head), jnp.float32) * s
    for i, name in enumerate(("a", "b", "c", "d", "e")):
        p["w_" + name] = wab[i]
        p["b_" + name] = bab[i]
    p["w_p"] = jax.random.normal(ks[5], (c_heads, dim_head, dim), jnp.float32) * s
    p["b_p"] = jax.random.normal(ks[6], (1, dim), jnp.float32) * s
    return p


def ref_forward(x, p, *, a_heads, c_heads, dim_head):
    """Pure-JAX reference following the PyTorch code verbatim."""
    B, T, D = x.shape
    dh = dim_head
    Ia, Ic = a_heads * dh, c_heads * dh

    def ln(v, g, b):
        mu = v.mean(-1, keepdims=True)
        var = ((v - mu) ** 2).mean(-1, keepdims=True)
        return (v - mu) / jnp.sqrt(var + 1e-5) * g + b

    def merge_w(w):  # (H, D, dh) -> (D, H*dh)
        return jnp.transpose(w, (1, 0, 2)).reshape(D, -1)

    # --- Attention ---
    xn = ln(x, p["ln_a_g"][0], p["ln_a_b"][0])
    w_qkv_t = jnp.concatenate([merge_w(p["w_q"]), merge_w(p["w_k"]), merge_w(p["w_v"])], axis=1)
    qkv = xn @ w_qkv_t
    q, k, v = qkv[..., :Ia], qkv[..., Ia:2 * Ia], qkv[..., 2 * Ia:]

    def split_heads(t):
        return t.reshape(B, T, a_heads, dh).transpose(0, 2, 1, 3)

    q, k, v = split_heads(q), split_heads(k), split_heads(v)
    dots = jnp.einsum("bhqd,bhkd->bhqk", q, k) * (dh ** -0.5)
    attn = jax.nn.softmax(dots, axis=-1)
    o = jnp.einsum("bhqk,bhkd->bhqd", attn, v).transpose(0, 2, 1, 3).reshape(B, T, Ia)
    out_a = o @ p["w_out"].reshape(Ia, D) + p["b_out"][0]

    # --- Trittention ---
    xn2 = ln(x, p["ln_c_g"][0], p["ln_c_b"][0])
    w_ab_t = jnp.concatenate([merge_w(p["w_" + n]) for n in ("a", "b", "c", "d", "e")], axis=1)
    b_ab = jnp.concatenate([p["b_" + n].reshape(-1) for n in ("a", "b", "c", "d", "e")])
    abcde = xn2 @ w_ab_t + b_ab
    a_, b_, c_, d_, e_ = [
        abcde[..., i * Ic:(i + 1) * Ic].reshape(B, T, c_heads, dh) for i in range(5)
    ]
    score = jnp.einsum("bsnh,btnh,bqnh->bnstq", a_, b_, c_)
    score = score.transpose(0, 1, 4, 2, 3).reshape(B, c_heads, T, T * T) / dh
    score = jax.nn.softmax(score, axis=-1).reshape(B, c_heads, T, T, T)
    z = jnp.einsum("bnqlr,blnd->bnqd", score, d_) + jnp.einsum("bnqlr,brnd->bnqd", score, e_)
    z = z.transpose(0, 2, 1, 3).reshape(B, T, Ic)
    out_c = z @ p["w_p"].reshape(Ic, D) + p["b_p"][0]
    return out_a + out_c


if __name__ == "__main__":
    B, T, dim = 2, 8, 32
    a_heads, c_heads, dim_head = 4, 2, 16   # dropout = 0.0 -> identity

    key = jax.random.PRNGKey(0)
    kx, kp = jax.random.split(key)
    x = jax.random.normal(kx, (B, T, dim), jnp.float32)
    params = init_params(kp, dim, a_heads, c_heads, dim_head)

    fused = prepare_params(params, a_heads=a_heads, c_heads=c_heads, dim_head=dim_head)
    out = mixed_attention_forward(x, fused, a_heads=a_heads, c_heads=c_heads,
                                  dim_head=dim_head)
    out = jax.block_until_ready(out)

    ref = ref_forward(x, params, a_heads=a_heads, c_heads=c_heads, dim_head=dim_head)
    err = float(jnp.max(jnp.abs(out - ref)))
    assert err < 2e-2, f"max abs error too large: {err}"
    print("KERNEL_OK")
</pallas_src>

<mosaic_0001>
module attributes {stable_mosaic.version = 11 : i64} {
  func.func @mixed_attention_kernel(%arg0: i32, %arg1: memref<1x8x32xf32, #tpu.memory_space<vmem>>, %arg2: memref<1x32xf32, #tpu.memory_space<vmem>>, %arg3: memref<1x32xf32, #tpu.memory_space<vmem>>, %arg4: memref<32x192xbf16, #tpu.memory_space<vmem>>, %arg5: memref<64x32xbf16, #tpu.memory_space<vmem>>, %arg6: memref<1x32xf32, #tpu.memory_space<vmem>>, %arg7: memref<1x32xf32, #tpu.memory_space<vmem>>, %arg8: memref<1x32xf32, #tpu.memory_space<vmem>>, %arg9: memref<32x160xbf16, #tpu.memory_space<vmem>>, %arg10: memref<1x160xf32, #tpu.memory_space<vmem>>, %arg11: memref<32x32xbf16, #tpu.memory_space<vmem>>, %arg12: memref<1x32xf32, #tpu.memory_space<vmem>>, %arg13: memref<1x8x32xf32, #tpu.memory_space<vmem>>, %arg14: memref<8x64xf32, #tpu.memory_space<vmem>>, %arg15: memref<8x32xf32, #tpu.memory_space<vmem>>, %arg16: memref<64x16xbf16, #tpu.memory_space<vmem>>, %arg17: memref<64x16xbf16, #tpu.memory_space<vmem>>, %arg18: memref<8x16xbf16, #tpu.memory_space<vmem>>) attributes {dimension_semantics = [#tpu.dimension_semantics<parallel>], iteration_bounds = array<i64: 2>, scalar_prefetch = 0 : i64, scratch_operands = 5 : i64, tpu.core_type = #tpu.core_type<tc>, window_params = [{transform_indices = @transform_0, window_bounds = array<i64: 1, 8, 32>}, {pipeline_mode = #tpu.pipeline_mode<synchronous>, transform_indices = @transform_1, window_bounds = array<i64: 1, 32>}, {pipeline_mode = #tpu.pipeline_mode<synchronous>, transform_indices = @transform_2, window_bounds = array<i64: 1, 32>}, {pipeline_mode = #tpu.pipeline_mode<synchronous>, transform_indices = @transform_3, window_bounds = array<i64: 32, 192>}, {pipeline_mode = #tpu.pipeline_mode<synchronous>, transform_indices = @transform_4, window_bounds = array<i64: 64, 32>}, {pipeline_mode = #tpu.pipeline_mode<synchronous>, transform_indices = @transform_5, window_bounds = array<i64: 1, 32>}, {pipeline_mode = #tpu.pipeline_mode<synchronous>, transform_indices = @transform_6, window_bounds = array<i64: 1, 32>}, {pipeline_mode = #tpu.pipeline_mode<synchronous>, transform_indices = @transform_7, window_bounds = array<i64: 1, 32>}, {pipeline_mode = #tpu.pipeline_mode<synchronous>, transform_indices = @transform_8, window_bounds = array<i64: 32, 160>}, {pipeline_mode = #tpu.pipeline_mode<synchronous>, transform_indices = @transform_9, window_bounds = array<i64: 1, 160>}, {pipeline_mode = #tpu.pipeline_mode<synchronous>, transform_indices = @transform_10, window_bounds = array<i64: 32, 32>}, {pipeline_mode = #tpu.pipeline_mode<synchronous>, transform_indices = @transform_11, window_bounds = array<i64: 1, 32>}, {transform_indices = @transform_12, window_bounds = array<i64: 1, 8, 32>}]} {
    %c0 = arith.constant 0 : index
    %c0_0 = arith.constant 0 : index
    %c0_1 = arith.constant 0 : index
    %0 = vector.load %arg1[%c0, %c0_0, %c0_1] : memref<1x8x32xf32, #tpu.memory_space<vmem>>, vector<1x8x32xf32>
    %1 = vector.shape_cast %0 : vector<1x8x32xf32> to vector<8x32xf32>
    %c0_2 = arith.constant 0 : index
    %c0_3 = arith.constant 0 : index
    %2 = vector.load %arg2[%c0_2, %c0_3] : memref<1x32xf32, #tpu.memory_space<vmem>>, vector<1x32xf32>
    %c0_4 = arith.constant 0 : index
    %c0_5 = arith.constant 0 : index
    %3 = vector.load %arg3[%c0_4, %c0_5] : memref<1x32xf32, #tpu.memory_space<vmem>>, vector<1x32xf32>
    %cst = arith.constant dense<0.000000e+00> : vector<8xf32>
    %4 = vector.multi_reduction <add>, %1, %cst [1] : vector<8x32xf32> to vector<8xf32>
    %5 = vector.shape_cast %4 : vector<8xf32> to vector<8x1xf32>
    %cst_6 = arith.constant 3.200000e+01 : f32
    %6 = vector.broadcast %cst_6 : f32 to vector<8x1xf32>
    %7 = arith.divf %5, %6 : vector<8x1xf32>
    %8 = vector.broadcast %7 : vector<8x1xf32> to vector<8x32xf32>
    %9 = arith.subf %1, %8 : vector<8x32xf32>
    %10 = arith.mulf %9, %9 : vector<8x32xf32>
    %cst_7 = arith.constant dense<0.000000e+00> : vector<8xf32>
    %11 = vector.multi_reduction <add>, %10, %cst_7 [1] : vector<8x32xf32> to vector<8xf32>
    %12 = vector.shape_cast %11 : vector<8xf32> to vector<8x1xf32>
    %cst_8 = arith.constant 3.200000e+01 : f32
    %13 = vector.broadcast %cst_8 : f32 to vector<8x1xf32>
    %14 = arith.divf %12, %13 : vector<8x1xf32>
    %15 = vector.broadcast %7 : vector<8x1xf32> to vector<8x32xf32>
    %16 = arith.subf %1, %15 : vector<8x32xf32>
    %cst_9 = arith.constant 9.99999974E-6 : f32
    %17 = vector.broadcast %cst_9 : f32 to vector<8x1xf32>
    %18 = arith.addf %14, %17 : vector<8x1xf32>
    %19 = math.rsqrt %18 : vector<8x1xf32>
    %20 = vector.broadcast %19 : vector<8x1xf32> to vector<8x32xf32>
    %21 = arith.mulf %16, %20 : vector<8x32xf32>
    %22 = vector.broadcast %2 : vector<1x32xf32> to vector<8x32xf32>
    %23 = arith.mulf %21, %22 : vector<8x32xf32>
    %24 = vector.broadcast %3 : vector<1x32xf32> to vector<8x32xf32>
    %25 = arith.addf %23, %24 : vector<8x32xf32>
    %26 = arith.truncf %25 : vector<8x32xf32> to vector<8x32xbf16>
    %c0_10 = arith.constant 0 : index
    %c0_11 = arith.constant 0 : index
    %27 = vector.load %arg4[%c0_10, %c0_11] : memref<32x192xbf16, #tpu.memory_space<vmem>>, vector<32x192xbf16>
    %cst_12 = arith.constant dense<0.000000e+00> : vector<8x192xf32>
    %28 = tpu.matmul %26, %27, %cst_12 {dimension_numbers = #tpu.dot_dimension_numbers<[1], [0], [0], [1], [0, 0, 1, 1], [], []>} : vector<8x32xbf16>, vector<32x192xbf16>, vector<8x192xf32> -> vector<8x192xf32>
    %29 = vector.extract_strided_slice %28 {offsets = [0, 0], sizes = [8, 16], strides = [1, 1]} : vector<8x192xf32> to vector<8x16xf32>
    %30 = vector.extract_strided_slice %28 {offsets = [0, 64], sizes = [8, 16], strides = [1, 1]} : vector<8x192xf32> to vector<8x16xf32>
    %31 = vector.extract_strided_slice %28 {offsets = [0, 128], sizes = [8, 16], strides = [1, 1]} : vector<8x192xf32> to vector<8x16xf32>
    %32 = arith.truncf %29 : vector<8x16xf32> to vector<8x16xbf16>
    %33 = arith.truncf %30 : vector<8x16xf32> to vector<8x16xbf16>
    %cst_13 = arith.constant dense<0.000000e+00> : vector<8x8xf32>
    %34 = tpu.matmul %32, %33, %cst_13 {dimension_numbers = #tpu.dot_dimension_numbers<[1], [1], [0], [0], [0, 0, 1, 0], [], []>} : vector<8x16xbf16>, vector<8x16xbf16>, vector<8x8xf32> -> vector<8x8xf32>
    %cst_14 = arith.constant dense<0xFF800000> : vector<8xf32>
    %35 = vector.multi_reduction <maximumf>, %34, %cst_14 [1] : vector<8x8xf32> to vector<8xf32>
    %36 = vector.shape_cast %35 : vector<8xf32> to vector<8x1xf32>
    %37 = vector.broadcast %36 : vector<8x1xf32> to vector<8x8xf32>
    %38 = arith.subf %34, %37 : vector<8x8xf32>
    %39 = math.exp %38 : vector<8x8xf32>
    %cst_15 = arith.constant dense<0.000000e+00> : vector<8xf32>
    %40 = vector.multi_reduction <add>, %39, %cst_15 [1] : vector<8x8xf32> to vector<8xf32>
    %41 = vector.shape_cast %40 : vector<8xf32> to vector<8x1xf32>
    %42 = tpu.reciprocal %41 {approx = true} : vector<8x1xf32> -> vector<8x1xf32>
    %43 = vector.broadcast %42 : vector<8x1xf32> to vector<8x8xf32>
    %44 = arith.mulf %39, %43 : vector<8x8xf32>
    %45 = arith.truncf %44 : vector<8x8xf32> to vector<8x8xbf16>
    %46 = arith.truncf %31 : vector<8x16xf32> to vector<8x16xbf16>
    %cst_16 = arith.constant dense<0.000000e+00> : vector<8x16xf32>
    %47 = tpu.matmul %45, %46, %cst_16 {dimension_numbers = #tpu.dot_dimension_numbers<[1], [0], [0], [1], [0, 0, 1, 1], [], []>} : vector<8x8xbf16>, vector<8x16xbf16>, vector<8x16xf32> -> vector<8x16xf32>
    %c0_17 = arith.constant 0 : index
    %c0_18 = arith.constant 0 : index
    %48 = vector.load %arg14[%c0_17, %c0_18] : memref<8x64xf32, #tpu.memory_space<vmem>>, vector<8x16xf32>
    tpu.vector_store %arg14[%c0_17, %c0_18], %47 {strides = array<i32>} : memref<8x64xf32, #tpu.memory_space<vmem>>, vector<8x16xf32>,
    %49 = vector.extract_strided_slice %28 {offsets = [0, 16], sizes = [8, 16], strides = [1, 1]} : vector<8x192xf32> to vector<8x16xf32>
    %50 = vector.extract_strided_slice %28 {offsets = [0, 80], sizes = [8, 16], strides = [1, 1]} : vector<8x192xf32> to vector<8x16xf32>
    %51 = vector.extract_strided_slice %28 {offsets = [0, 144], sizes = [8, 16], strides = [1, 1]} : vector<8x192xf32> to vector<8x16xf32>
    %52 = arith.truncf %49 : vector<8x16xf32> to vector<8x16xbf16>
    %53 = arith.truncf %50 : vector<8x16xf32> to vector<8x16xbf16>
    %cst_19 = arith.constant dense<0.000000e+00> : vector<8x8xf32>
    %54 = tpu.matmul %52, %53, %cst_19 {dimension_numbers = #tpu.dot_dimension_numbers<[1], [1], [0], [0], [0, 0, 1, 0], [], []>} : vector<8x16xbf16>, vector<8x16xbf16>, vector<8x8xf32> -> vector<8x8xf32>
    %cst_20 = arith.constant dense<0xFF800000> : vector<8xf32>
    %55 = vector.multi_reduction <maximumf>, %54, %cst_20 [1] : vector<8x8xf32> to vector<8xf32>
    %56 = vector.shape_cast %55 : vector<8xf32> to vector<8x1xf32>
    %57 = vector.broadcast %56 : vector<8x1xf32> to vector<8x8xf32>
    %58 = arith.subf %54, %57 : vector<8x8xf32>
    %59 = math.exp %58 : vector<8x8xf32>
    %cst_21 = arith.constant dense<0.000000e+00> : vector<8xf32>
    %60 = vector.multi_reduction <add>, %59, %cst_21 [1] : vector<8x8xf32> to vector<8xf32>
    %61 = vector.shape_cast %60 : vector<8xf32> to vector<8x1xf32>
    %62 = tpu.reciprocal %61 {approx = true} : vector<8x1xf32> -> vector<8x1xf32>
    %63 = vector.broadcast %62 : vector<8x1xf32> to vector<8x8xf32>
    %64 = arith.mulf %59, %63 : vector<8x8xf32>
    %65 = arith.truncf %64 : vector<8x8xf32> to vector<8x8xbf16>
    %66 = arith.truncf %51 : vector<8x16xf32> to vector<8x16xbf16>
    %cst_22 = arith.constant dense<0.000000e+00> : vector<8x16xf32>
    %67 = tpu.matmul %65, %66, %cst_22 {dimension_numbers = #tpu.dot_dimension_numbers<[1], [0], [0], [1], [0, 0, 1, 1], [], []>} : vector<8x8xbf16>, vector<8x16xbf16>, vector<8x16xf32> -> vector<8x16xf32>
    %c0_23 = arith.constant 0 : index
    %c16 = arith.constant 16 : index
    %68 = vector.load %arg14[%c0_23, %c16] : memref<8x64xf32, #tpu.memory_space<vmem>>, vector<8x16xf32>
    tpu.vector_store %arg14[%c0_23, %c16], %67 {strides = array<i32>} : memref<8x64xf32, #tpu.memory_space<vmem>>, vector<8x16xf32>,
    %69 = vector.extract_strided_slice %28 {offsets = [0, 32], sizes = [8, 16], strides = [1, 1]} : vector<8x192xf32> to vector<8x16xf32>
    %70 = vector.extract_strided_slice %28 {offsets = [0, 96], sizes = [8, 16], strides = [1, 1]} : vector<8x192xf32> to vector<8x16xf32>
    %71 = vector.extract_strided_slice %28 {offsets = [0, 160], sizes = [8, 16], strides = [1, 1]} : vector<8x192xf32> to vector<8x16xf32>
    %72 = arith.truncf %69 : vector<8x16xf32> to vector<8x16xbf16>
    %73 = arith.truncf %70 : vector<8x16xf32> to vector<8x16xbf16>
    %cst_24 = arith.constant dense<0.000000e+00> : vector<8x8xf32>
    %74 = tpu.matmul %72, %73, %cst_24 {dimension_numbers = #tpu.dot_dimension_numbers<[1], [1], [0], [0], [0, 0, 1, 0], [], []>} : vector<8x16xbf16>, vector<8x16xbf16>, vector<8x8xf32> -> vector<8x8xf32>
    %cst_25 = arith.constant dense<0xFF800000> : vector<8xf32>
    %75 = vector.multi_reduction <maximumf>, %74, %cst_25 [1] : vector<8x8xf32> to vector<8xf32>
    %76 = vector.shape_cast %75 : vector<8xf32> to vector<8x1xf32>
    %77 = vector.broadcast %76 : vector<8x1xf32> to vector<8x8xf32>
    %78 = arith.subf %74, %77 : vector<8x8xf32>
    %79 = math.exp %78 : vector<8x8xf32>
    %cst_26 = arith.constant dense<0.000000e+00> : vector<8xf32>
    %80 = vector.multi_reduction <add>, %79, %cst_26 [1] : vector<8x8xf32> to vector<8xf32>
    %81 = vector.shape_cast %80 : vector<8xf32> to vector<8x1xf32>
    %82 = tpu.reciprocal %81 {approx = true} : vector<8x1xf32> -> vector<8x1xf32>
    %83 = vector.broadcast %82 : vector<8x1xf32> to vector<8x8xf32>
    %84 = arith.mulf %79, %83 : vector<8x8xf32>
    %85 = arith.truncf %84 : vector<8x8xf32> to vector<8x8xbf16>
    %86 = arith.truncf %71 : vector<8x16xf32> to vector<8x16xbf16>
    %cst_27 = arith.constant dense<0.000000e+00> : vector<8x16xf32>
    %87 = tpu.matmul %85, %86, %cst_27 {dimension_numbers = #tpu.dot_dimension_numbers<[1], [0], [0], [1], [0, 0, 1, 1], [], []>} : vector<8x8xbf16>, vector<8x16xbf16>, vector<8x16xf32> -> vector<8x16xf32>
    %c0_28 = arith.constant 0 : index
    %c32 = arith.constant 32 : index
    %88 = vector.load %arg14[%c0_28, %c32] : memref<8x64xf32, #tpu.memory_space<vmem>>, vector<8x16xf32>
    tpu.vector_store %arg14[%c0_28, %c32], %87 {strides = array<i32>} : memref<8x64xf32, #tpu.memory_space<vmem>>, vector<8x16xf32>,
    %89 = vector.extract_strided_slice %28 {offsets = [0, 48], sizes = [8, 16], strides = [1, 1]} : vector<8x192xf32> to vector<8x16xf32>
    %90 = vector.extract_strided_slice %28 {offsets = [0, 112], sizes = [8, 16], strides = [1, 1]} : vector<8x192xf32> to vector<8x16xf32>
    %91 = vector.extract_strided_slice %28 {offsets = [0, 176], sizes = [8, 16], strides = [1, 1]} : vector<8x192xf32> to vector<8x16xf32>
    %92 = arith.truncf %89 : vector<8x16xf32> to vector<8x16xbf16>
    %93 = arith.truncf %90 : vector<8x16xf32> to vector<8x16xbf16>
    %cst_29 = arith.constant dense<0.000000e+00> : vector<8x8xf32>
    %94 = tpu.matmul %92, %93, %cst_29 {dimension_numbers = #tpu.dot_dimension_numbers<[1], [1], [0], [0], [0, 0, 1, 0], [], []>} : vector<8x16xbf16>, vector<8x16xbf16>, vector<8x8xf32> -> vector<8x8xf32>
    %cst_30 = arith.constant dense<0xFF800000> : vector<8xf32>
    %95 = vector.multi_reduction <maximumf>, %94, %cst_30 [1] : vector<8x8xf32> to vector<8xf32>
    %96 = vector.shape_cast %95 : vector<8xf32> to vector<8x1xf32>
    %97 = vector.broadcast %96 : vector<8x1xf32> to vector<8x8xf32>
    %98 = arith.subf %94, %97 : vector<8x8xf32>
    %99 = math.exp %98 : vector<8x8xf32>
    %cst_31 = arith.constant dense<0.000000e+00> : vector<8xf32>
    %100 = vector.multi_reduction <add>, %99, %cst_31 [1] : vector<8x8xf32> to vector<8xf32>
    %101 = vector.shape_cast %100 : vector<8xf32> to vector<8x1xf32>
    %102 = tpu.reciprocal %101 {approx = true} : vector<8x1xf32> -> vector<8x1xf32>
    %103 = vector.broadcast %102 : vector<8x1xf32> to vector<8x8xf32>
    %104 = arith.mulf %99, %103 : vector<8x8xf32>
    %105 = arith.truncf %104 : vector<8x8xf32> to vector<8x8xbf16>
    %106 = arith.truncf %91 : vector<8x16xf32> to vector<8x16xbf16>
    %cst_32 = arith.constant dense<0.000000e+00> : vector<8x16xf32>
    %107 = tpu.matmul %105, %106, %cst_32 {dimension_numbers = #tpu.dot_dimension_numbers<[1], [0], [0], [1], [0, 0, 1, 1], [], []>} : vector<8x8xbf16>, vector<8x16xbf16>, vector<8x16xf32> -> vector<8x16xf32>
    %c0_33 = arith.constant 0 : index
    %c48 = arith.constant 48 : index
    %108 = vector.load %arg14[%c0_33, %c48] : memref<8x64xf32, #tpu.memory_space<vmem>>, vector<8x16xf32>
    tpu.vector_store %arg14[%c0_33, %c48], %107 {strides = array<i32>} : memref<8x64xf32, #tpu.memory_space<vmem>>, vector<8x16xf32>,
    %c0_34 = arith.constant 0 : index
    %c0_35 = arith.constant 0 : index
    %109 = vector.load %arg14[%c0_34, %c0_35] : memref<8x64xf32, #tpu.memory_space<vmem>>, vector<8x64xf32>
    %110 = arith.truncf %109 : vector<8x64xf32> to vector<8x64xbf16>
    %c0_36 = arith.constant 0 : index
    %c0_37 = arith.constant 0 : index
    %111 = vector.load %arg5[%c0_36, %c0_37] : memref<64x32xbf16, #tpu.memory_space<vmem>>, vector<64x32xbf16>
    %cst_38 = arith.constant dense<0.000000e+00> : vector<8x32xf32>
    %112 = tpu.matmul %110, %111, %cst_38 {dimension_numbers = #tpu.dot_dimension_numbers<[1], [0], [0], [1], [0, 0, 1, 1], [], []>} : vector<8x64xbf16>, vector<64x32xbf16>, vector<8x32xf32> -> vector<8x32xf32>
    %c0_39 = arith.constant 0 : index
    %c0_40 = arith.constant 0 : index
    %113 = vector.load %arg6[%c0_39, %c0_40] : memref<1x32xf32, #tpu.memory_space<vmem>>, vector<1x32xf32>
    %114 = vector.broadcast %113 : vector<1x32xf32> to vector<8x32xf32>
    %115 = arith.addf %112, %114 : vector<8x32xf32>
    %c0_41 = arith.constant 0 : index
    %c0_42 = arith.constant 0 : index
    %116 = vector.load %arg7[%c0_41, %c0_42] : memref<1x32xf32, #tpu.memory_space<vmem>>, vector<1x32xf32>
    %c0_43 = arith.constant 0 : index
    %c0_44 = arith.constant 0 : index
    %117 = vector.load %arg8[%c0_43, %c0_44] : memref<1x32xf32, #tpu.memory_space<vmem>>, vector<1x32xf32>
    %cst_45 = arith.constant dense<0.000000e+00> : vector<8xf32>
    %118 = vector.multi_reduction <add>, %1, %cst_45 [1] : vector<8x32xf32> to vector<8xf32>
    %119 = vector.shape_cast %118 : vector<8xf32> to vector<8x1xf32>
    %cst_46 = arith.constant 3.200000e+01 : f32
    %120 = vector.broadcast %cst_46 : f32 to vector<8x1xf32>
    %121 = arith.divf %119, %120 : vector<8x1xf32>
    %122 = vector.broadcast %121 : vector<8x1xf32> to vector<8x32xf32>
    %123 = arith.subf %1, %122 : vector<8x32xf32>
    %124 = arith.mulf %123, %123 : vector<8x32xf32>
    %cst_47 = arith.constant dense<0.000000e+00> : vector<8xf32>
    %125 = vector.multi_reduction <add>, %124, %cst_47 [1] : vector<8x32xf32> to vector<8xf32>
    %126 = vector.shape_cast %125 : vector<8xf32> to vector<8x1xf32>
    %cst_48 = arith.constant 3.200000e+01 : f32
    %127 = vector.broadcast %cst_48 : f32 to vector<8x1xf32>
    %128 = arith.divf %126, %127 : vector<8x1xf32>
    %129 = vector.broadcast %121 : vector<8x1xf32> to vector<8x32xf32>
    %130 = arith.subf %1, %129 : vector<8x32xf32>
    %cst_49 = arith.constant 9.99999974E-6 : f32
    %131 = vector.broadcast %cst_49 : f32 to vector<8x1xf32>
    %132 = arith.addf %128, %131 : vector<8x1xf32>
    %133 = math.rsqrt %132 : vector<8x1xf32>
    %134 = vector.broadcast %133 : vector<8x1xf32> to vector<8x32xf32>
    %135 = arith.mulf %130, %134 : vector<8x32xf32>
    %136 = vector.broadcast %116 : vector<1x32xf32> to vector<8x32xf32>
    %137 = arith.mulf %135, %136 : vector<8x32xf32>
    %138 = vector.broadcast %117 : vector<1x32xf32> to vector<8x32xf32>
    %139 = arith.addf %137, %138 : vector<8x32xf32>
    %140 = arith.truncf %139 : vector<8x32xf32> to vector<8x32xbf16>
    %c0_50 = arith.constant 0 : index
    %c0_51 = arith.constant 0 : index
    %141 = vector.load %arg9[%c0_50, %c0_51] : memref<32x160xbf16, #tpu.memory_space<vmem>>, vector<32x160xbf16>
    %cst_52 = arith.constant dense<0.000000e+00> : vector<8x160xf32>
    %142 = tpu.matmul %140, %141, %cst_52 {dimension_numbers = #tpu.dot_dimension_numbers<[1], [0], [0], [1], [0, 0, 1, 1], [], []>} : vector<8x32xbf16>, vector<32x160xbf16>, vector<8x160xf32> -> vector<8x160xf32>
    %c0_53 = arith.constant 0 : index
    %c0_54 = arith.constant 0 : index
    %143 = vector.load %arg10[%c0_53, %c0_54] : memref<1x160xf32, #tpu.memory_space<vmem>>, vector<1x160xf32>
    %144 = vector.broadcast %143 : vector<1x160xf32> to vector<8x160xf32>
    %145 = arith.addf %142, %144 : vector<8x160xf32>
    %146 = vector.extract_strided_slice %145 {offsets = [0, 0], sizes = [8, 16], strides = [1, 1]} : vector<8x160xf32> to vector<8x16xf32>
    %147 = vector.extract_strided_slice %145 {offsets = [0, 32], sizes = [8, 16], strides = [1, 1]} : vector<8x160xf32> to vector<8x16xf32>
    %148 = vector.extract_strided_slice %145 {offsets = [0, 64], sizes = [8, 16], strides = [1, 1]} : vector<8x160xf32> to vector<8x16xf32>
    %149 = vector.extract_strided_slice %145 {offsets = [0, 96], sizes = [8, 16], strides = [1, 1]} : vector<8x160xf32> to vector<8x16xf32>
    %150 = vector.extract_strided_slice %145 {offsets = [0, 128], sizes = [8, 16], strides = [1, 1]} : vector<8x160xf32> to vector<8x16xf32>
    %151 = vector.shape_cast %146 : vector<8x16xf32> to vector<8x1x16xf32>
    %152 = vector.shape_cast %147 : vector<8x16xf32> to vector<1x8x16xf32>
    %153 = vector.broadcast %151 : vector<8x1x16xf32> to vector<8x8x16xf32>
    %154 = vector.broadcast %152 : vector<1x8x16xf32> to vector<8x8x16xf32>
    %155 = arith.mulf %153, %154 : vector<8x8x16xf32>
    %156 = vector.shape_cast %155 : vector<8x8x16xf32> to vector<64x16xf32>
    %157 = arith.truncf %156 : vector<64x16xf32> to vector<64x16xbf16>
    %c0_55 = arith.constant 0 : index
    %c0_56 = arith.constant 0 : index
    %158 = vector.load %arg16[%c0_55, %c0_56] : memref<64x16xbf16, #tpu.memory_space<vmem>>, vector<64x16xbf16>
    tpu.vector_store %arg16[%c0_55, %c0_56], %157 {strides = array<i32>} : memref<64x16xbf16, #tpu.memory_space<vmem>>, vector<64x16xbf16>,
    %159 = vector.shape_cast %149 : vector<8x16xf32> to vector<8x1x16xf32>
    %160 = vector.shape_cast %150 : vector<8x16xf32> to vector<1x8x16xf32>
    %161 = vector.broadcast %159 : vector<8x1x16xf32> to vector<8x8x16xf32>
    %162 = vector.broadcast %160 : vector<1x8x16xf32> to vector<8x8x16xf32>
    %163 = arith.addf %161, %162 : vector<8x8x16xf32>
    %164 = vector.shape_cast %163 : vector<8x8x16xf32> to vector<64x16xf32>
    %165 = arith.truncf %164 : vector<64x16xf32> to vector<64x16xbf16>
    %c0_57 = arith.constant 0 : index
    %c0_58 = arith.constant 0 : index
    %166 = vector.load %arg17[%c0_57, %c0_58] : memref<64x16xbf16, #tpu.memory_space<vmem>>, vector<64x16xbf16>
    tpu.vector_store %arg17[%c0_57, %c0_58], %165 {strides = array<i32>} : memref<64x16xbf16, #tpu.memory_space<vmem>>, vector<64x16xbf16>,
    %167 = arith.truncf %148 : vector<8x16xf32> to vector<8x16xbf16>
    %c0_59 = arith.constant 0 : index
    %c0_60 = arith.constant 0 : index
    %168 = vector.load %arg18[%c0_59, %c0_60] : memref<8x16xbf16, #tpu.memory_space<vmem>>, vector<8x16xbf16>
    tpu.vector_store %arg18[%c0_59, %c0_60], %167 {strides = array<i32>} : memref<8x16xbf16, #tpu.memory_space<vmem>>, vector<8x16xbf16>,
    %c0_61 = arith.constant 0 : index
    %c0_62 = arith.constant 0 : index
    %169 = vector.load %arg18[%c0_61, %c0_62] : memref<8x16xbf16, #tpu.memory_space<vmem>>, vector<8x16xbf16>
    %c0_63 = arith.constant 0 : index
    %c0_64 = arith.constant 0 : index
    %170 = vector.load %arg16[%c0_63, %c0_64] : memref<64x16xbf16, #tpu.memory_space<vmem>>, vector<64x16xbf16>
    %cst_65 = arith.constant dense<0.000000e+00> : vector<8x64xf32>
    %171 = tpu.matmul %169, %170, %cst_65 {dimension_numbers = #tpu.dot_dimension_numbers<[1], [1], [0], [0], [0, 0, 1, 0], [], []>} : vector<8x16xbf16>, vector<64x16xbf16>, vector<8x64xf32> -> vector<8x64xf32>
    %cst_66 = arith.constant dense<0xFF800000> : vector<8xf32>
    %172 = vector.multi_reduction <maximumf>, %171, %cst_66 [1] : vector<8x64xf32> to vector<8xf32>
    %173 = vector.shape_cast %172 : vector<8xf32> to vector<8x1xf32>
    %174 = vector.broadcast %173 : vector<8x1xf32> to vector<8x64xf32>
    %175 = arith.subf %171, %174 : vector<8x64xf32>
    %176 = math.exp %175 : vector<8x64xf32>
    %cst_67 = arith.constant dense<0.000000e+00> : vector<8xf32>
    %177 = vector.multi_reduction <add>, %176, %cst_67 [1] : vector<8x64xf32> to vector<8xf32>
    %178 = vector.shape_cast %177 : vector<8xf32> to vector<8x1xf32>
    %179 = tpu.reciprocal %178 {approx = true} : vector<8x1xf32> -> vector<8x1xf32>
    %180 = vector.broadcast %179 : vector<8x1xf32> to vector<8x64xf32>
    %181 = arith.mulf %176, %180 : vector<8x64xf32>
    %182 = arith.truncf %181 : vector<8x64xf32> to vector<8x64xbf16>
    %c0_68 = arith.constant 0 : index
    %c0_69 = arith.constant 0 : index
    %183 = vector.load %arg17[%c0_68, %c0_69] : memref<64x16xbf16, #tpu.memory_space<vmem>>, vector<64x16xbf16>
    %cst_70 = arith.constant dense<0.000000e+00> : vector<8x16xf32>
    %184 = tpu.matmul %182, %183, %cst_70 {dimension_numbers = #tpu.dot_dimension_numbers<[1], [0], [0], [1], [0, 0, 1, 1], [], []>} : vector<8x64xbf16>, vector<64x16xbf16>, vector<8x16xf32> -> vector<8x16xf32>
    %c0_71 = arith.constant 0 : index
    %c0_72 = arith.constant 0 : index
    %185 = vector.load %arg15[%c0_71, %c0_72] : memref<8x32xf32, #tpu.memory_space<vmem>>, vector<8x16xf32>
    tpu.vector_store %arg15[%c0_71, %c0_72], %184 {strides = array<i32>} : memref<8x32xf32, #tpu.memory_space<vmem>>, vector<8x16xf32>,
    %186 = vector.extract_strided_slice %145 {offsets = [0, 16], sizes = [8, 16], strides = [1, 1]} : vector<8x160xf32> to vector<8x16xf32>
    %187 = vector.extract_strided_slice %145 {offsets = [0, 48], sizes = [8, 16], strides = [1, 1]} : vector<8x160xf32> to vector<8x16xf32>
    %188 = vector.extract_strided_slice %145 {offsets = [0, 80], sizes = [8, 16], strides = [1, 1]} : vector<8x160xf32> to vector<8x16xf32>
    %189 = vector.extract_strided_slice %145 {offsets = [0, 112], sizes = [8, 16], strides = [1, 1]} : vector<8x160xf32> to vector<8x16xf32>
    %190 = vector.extract_strided_slice %145 {offsets = [0, 144], sizes = [8, 16], strides = [1, 1]} : vector<8x160xf32> to vector<8x16xf32>
    %191 = vector.shape_cast %186 : vector<8x16xf32> to vector<8x1x16xf32>
    %192 = vector.shape_cast %187 : vector<8x16xf32> to vector<1x8x16xf32>
    %193 = vector.broadcast %191 : vector<8x1x16xf32> to vector<8x8x16xf32>
    %194 = vector.broadcast %192 : vector<1x8x16xf32> to vector<8x8x16xf32>
    %195 = arith.mulf %193, %194 : vector<8x8x16xf32>
    %196 = vector.shape_cast %195 : vector<8x8x16xf32> to vector<64x16xf32>
    %197 = arith.truncf %196 : vector<64x16xf32> to vector<64x16xbf16>
    %c0_73 = arith.constant 0 : index
    %c0_74 = arith.constant 0 : index
    %198 = vector.load %arg16[%c0_73, %c0_74] : memref<64x16xbf16, #tpu.memory_space<vmem>>, vector<64x16xbf16>
    tpu.vector_store %arg16[%c0_73, %c0_74], %197 {strides = array<i32>} : memref<64x16xbf16, #tpu.memory_space<vmem>>, vector<64x16xbf16>,
    %199 = vector.shape_cast %189 : vector<8x16xf32> to vector<8x1x16xf32>
    %200 = vector.shape_cast %190 : vector<8x16xf32> to vector<1x8x16xf32>
    %201 = vector.broadcast %199 : vector<8x1x16xf32> to vector<8x8x16xf32>
    %202 = vector.broadcast %200 : vector<1x8x16xf32> to vector<8x8x16xf32>
    %203 = arith.addf %201, %202 : vector<8x8x16xf32>
    %204 = vector.shape_cast %203 : vector<8x8x16xf32> to vector<64x16xf32>
    %205 = arith.truncf %204 : vector<64x16xf32> to vector<64x16xbf16>
    %c0_75 = arith.constant 0 : index
    %c0_76 = arith.constant 0 : index
    %206 = vector.load %arg17[%c0_75, %c0_76] : memref<64x16xbf16, #tpu.memory_space<vmem>>, vector<64x16xbf16>
    tpu.vector_store %arg17[%c0_75, %c0_76], %205 {strides = array<i32>} : memref<64x16xbf16, #tpu.memory_space<vmem>>, vector<64x16xbf16>,
    %207 = arith.truncf %188 : vector<8x16xf32> to vector<8x16xbf16>
    %c0_77 = arith.constant 0 : index
    %c0_78 = arith.constant 0 : index
    %208 = vector.load %arg18[%c0_77, %c0_78] : memref<8x16xbf16, #tpu.memory_space<vmem>>, vector<8x16xbf16>
    tpu.vector_store %arg18[%c0_77, %c0_78], %207 {strides = array<i32>} : memref<8x16xbf16, #tpu.memory_space<vmem>>, vector<8x16xbf16>,
    %c0_79 = arith.constant 0 : index
    %c0_80 = arith.constant 0 : index
    %209 = vector.load %arg18[%c0_79, %c0_80] : memref<8x16xbf16, #tpu.memory_space<vmem>>, vector<8x16xbf16>
    %c0_81 = arith.constant 0 : index
    %c0_82 = arith.constant 0 : index
    %210 = vector.load %arg16[%c0_81, %c0_82] : memref<64x16xbf16, #tpu.memory_space<vmem>>, vector<64x16xbf16>
    %cst_83 = arith.constant dense<0.000000e+00> : vector<8x64xf32>
    %211 = tpu.matmul %209, %210, %cst_83 {dimension_numbers = #tpu.dot_dimension_numbers<[1], [1], [0], [0], [0, 0, 1, 0], [], []>} : vector<8x16xbf16>, vector<64x16xbf16>, vector<8x64xf32> -> vector<8x64xf32>
    %cst_84 = arith.constant dense<0xFF800000> : vector<8xf32>
    %212 = vector.multi_reduction <maximumf>, %211, %cst_84 [1] : vector<8x64xf32> to vector<8xf32>
    %213 = vector.shape_cast %212 : vector<8xf32> to vector<8x1xf32>
    %214 = vector.broadcast %213 : vector<8x1xf32> to vector<8x64xf32>
    %215 = arith.subf %211, %214 : vector<8x64xf32>
    %216 = math.exp %215 : vector<8x64xf32>
    %cst_85 = arith.constant dense<0.000000e+00> : vector<8xf32>
    %217 = vector.multi_reduction <add>, %216, %cst_85 [1] : vector<8x64xf32> to vector<8xf32>
    %218 = vector.shape_cast %217 : vector<8xf32> to vector<8x1xf32>
    %219 = tpu.reciprocal %218 {approx = true} : vector<8x1xf32> -> vector<8x1xf32>
    %220 = vector.broadcast %219 : vector<8x1xf32> to vector<8x64xf32>
    %221 = arith.mulf %216, %220 : vector<8x64xf32>
    %222 = arith.truncf %221 : vector<8x64xf32> to vector<8x64xbf16>
    %c0_86 = arith.constant 0 : index
    %c0_87 = arith.constant 0 : index
    %223 = vector.load %arg17[%c0_86, %c0_87] : memref<64x16xbf16, #tpu.memory_space<vmem>>, vector<64x16xbf16>
    %cst_88 = arith.constant dense<0.000000e+00> : vector<8x16xf32>
    %224 = tpu.matmul %222, %223, %cst_88 {dimension_numbers = #tpu.dot_dimension_numbers<[1], [0], [0], [1], [0, 0, 1, 1], [], []>} : vector<8x64xbf16>, vector<64x16xbf16>, vector<8x16xf32> -> vector<8x16xf32>
    %c0_89 = arith.constant 0 : index
    %c16_90 = arith.constant 16 : index
    %225 = vector.load %arg15[%c0_89, %c16_90] : memref<8x32xf32, #tpu.memory_space<vmem>>, vector<8x16xf32>
    tpu.vector_store %arg15[%c0_89, %c16_90], %224 {strides = array<i32>} : memref<8x32xf32, #tpu.memory_space<vmem>>, vector<8x16xf32>,
    %c0_91 = arith.constant 0 : index
    %c0_92 = arith.constant 0 : index
    %226 = vector.load %arg15[%c0_91, %c0_92] : memref<8x32xf32, #tpu.memory_space<vmem>>, vector<8x32xf32>
    %227 = arith.truncf %226 : vector<8x32xf32> to vector<8x32xbf16>
    %c0_93 = arith.constant 0 : index
    %c0_94 = arith.constant 0 : index
    %228 = vector.load %arg11[%c0_93, %c0_94] : memref<32x32xbf16, #tpu.memory_space<vmem>>, vector<32x32xbf16>
    %cst_95 = arith.constant dense<0.000000e+00> : vector<8x32xf32>
    %229 = tpu.matmul %227, %228, %cst_95 {dimension_numbers = #tpu.dot_dimension_numbers<[1], [0], [0], [1], [0, 0, 1, 1], [], []>} : vector<8x32xbf16>, vector<32x32xbf16>, vector<8x32xf32> -> vector<8x32xf32>
    %c0_96 = arith.constant 0 : index
    %c0_97 = arith.constant 0 : index
    %230 = vector.load %arg12[%c0_96, %c0_97] : memref<1x32xf32, #tpu.memory_space<vmem>>, vector<1x32xf32>
    %231 = vector.broadcast %230 : vector<1x32xf32> to vector<8x32xf32>
    %232 = arith.addf %229, %231 : vector<8x32xf32>
    %233 = arith.addf %115, %232 : vector<8x32xf32>
    %c0_98 = arith.constant 0 : index
    %c0_99 = arith.constant 0 : index
    %c0_100 = arith.constant 0 : index
    %234 = vector.load %arg13[%c0_98, %c0_99, %c0_100] : memref<1x8x32xf32, #tpu.memory_space<vmem>>, vector<1x8x32xf32>
    %235 = vector.shape_cast %234 : vector<1x8x32xf32> to vector<8x32xf32>
    %236 = vector.shape_cast %233 : vector<8x32xf32> to vector<1x8x32xf32>
    tpu.vector_store %arg13[%c0_98, %c0_99, %c0_100], %236 {strides = array<i32>} : memref<1x8x32xf32, #tpu.memory_space<vmem>>, vector<1x8x32xf32>,
    return
  }
  func.func @transform_0(%arg0: i32) -> (i32, i32, i32) {
    %c0_i32 = arith.constant 0 : i32
    %c0_i32_0 = arith.constant 0 : i32
    %c0_i32_1 = arith.constant 0 : i32
    return %arg0, %c0_i32, %c0_i32_0 : i32, i32, i32
  }
  func.func @transform_1(%arg0: i32) -> (i32, i32) {
    %c0_i32 = arith.constant 0 : i32
    %c0_i32_0 = arith.constant 0 : i32
    %c0_i32_1 = arith.constant 0 : i32
    return %c0_i32, %c0_i32_0 : i32, i32
  }
  func.func @transform_2(%arg0: i32) -> (i32, i32) {
    %c0_i32 = arith.constant 0 : i32
    %c0_i32_0 = arith.constant 0 : i32
    %c0_i32_1 = arith.constant 0 : i32
    return %c0_i32, %c0_i32_0 : i32, i32
  }
  func.func @transform_3(%arg0: i32) -> (i32, i32) {
    %c0_i32 = arith.constant 0 : i32
    %c0_i32_0 = arith.constant 0 : i32
    %c0_i32_1 = arith.constant 0 : i32
    return %c0_i32, %c0_i32_0 : i32, i32
  }
  func.func @transform_4(%arg0: i32) -> (i32, i32) {
    %c0_i32 = arith.constant 0 : i32
    %c0_i32_0 = arith.constant 0 : i32
    %c0_i32_1 = arith.constant 0 : i32
    return %c0_i32, %c0_i32_0 : i32, i32
  }
  func.func @transform_5(%arg0: i32) -> (i32, i32) {
    %c0_i32 = arith.constant 0 : i32
    %c0_i32_0 = arith.constant 0 : i32
    %c0_i32_1 = arith.constant 0 : i32
    return %c0_i32, %c0_i32_0 : i32, i32
  }
  func.func @transform_6(%arg0: i32) -> (i32, i32) {
    %c0_i32 = arith.constant 0 : i32
    %c0_i32_0 = arith.constant 0 : i32
    %c0_i32_1 = arith.constant 0 : i32
    return %c0_i32, %c0_i32_0 : i32, i32
  }
  func.func @transform_7(%arg0: i32) -> (i32, i32) {
    %c0_i32 = arith.constant 0 : i32
    %c0_i32_0 = arith.constant 0 : i32
    %c0_i32_1 = arith.constant 0 : i32
    return %c0_i32, %c0_i32_0 : i32, i32
  }
  func.func @transform_8(%arg0: i32) -> (i32, i32) {
    %c0_i32 = arith.constant 0 : i32
    %c0_i32_0 = arith.constant 0 : i32
    %c0_i32_1 = arith.constant 0 : i32
    return %c0_i32, %c0_i32_0 : i32, i32
  }
  func.func @transform_9(%arg0: i32) -> (i32, i32) {
    %c0_i32 = arith.constant 0 : i32
    %c0_i32_0 = arith.constant 0 : i32
    %c0_i32_1 = arith.constant 0 : i32
    return %c0_i32, %c0_i32_0 : i32, i32
  }
  func.func @transform_10(%arg0: i32) -> (i32, i32) {
    %c0_i32 = arith.constant 0 : i32
    %c0_i32_0 = arith.constant 0 : i32
    %c0_i32_1 = arith.constant 0 : i32
    return %c0_i32, %c0_i32_0 : i32, i32
  }
  func.func @transform_11(%arg0: i32) -> (i32, i32) {
    %c0_i32 = arith.constant 0 : i32
    %c0_i32_0 = arith.constant 0 : i32
    %c0_i32_1 = arith.constant 0 : i32
    return %c0_i32, %c0_i32_0 : i32, i32
  }
  func.func @transform_12(%arg0: i32) -> (i32, i32, i32) {
    %c0_i32 = arith.constant 0 : i32
    %c0_i32_0 = arith.constant 0 : i32
    %c0_i32_1 = arith.constant 0 : i32
    return %arg0, %c0_i32, %c0_i32_0 : i32, i32, i32
  }
}

module attributes {stable_mosaic.version = 11 : i64} {
  func.func @mixed_attention_kernel(%arg0: i32, %arg1: memref<1x8x32xf32, #tpu.memory_space<vmem>>, %arg2: memref<1x32xf32, #tpu.memory_space<vmem>>, %arg3: memref<1x32xf32, #tpu.memory_space<vmem>>, %arg4: memref<32x192xbf16, #tpu.memory_space<vmem>>, %arg5: memref<64x32xbf16, #tpu.memory_space<vmem>>, %arg6: memref<1x32xf32, #tpu.memory_space<vmem>>, %arg7: memref<1x32xf32, #tpu.memory_space<vmem>>, %arg8: memref<1x32xf32, #tpu.memory_space<vmem>>, %arg9: memref<32x160xbf16, #tpu.memory_space<vmem>>, %arg10: memref<1x160xf32, #tpu.memory_space<vmem>>, %arg11: memref<32x32xbf16, #tpu.memory_space<vmem>>, %arg12: memref<1x32xf32, #tpu.memory_space<vmem>>, %arg13: memref<1x8x32xf32, #tpu.memory_space<vmem>>, %arg14: memref<8x64xf32, #tpu.memory_space<vmem>>, %arg15: memref<8x32xf32, #tpu.memory_space<vmem>>, %arg16: memref<64x16xbf16, #tpu.memory_space<vmem>>, %arg17: memref<64x16xbf16, #tpu.memory_space<vmem>>, %arg18: memref<8x16xbf16, #tpu.memory_space<vmem>>) attributes {dimension_semantics = [#tpu.dimension_semantics<parallel>], iteration_bounds = array<i64: 2>, scalar_prefetch = 0 : i64, scratch_operands = 5 : i64, tpu.core_type = #tpu.core_type<tc>, window_params = [{transform_indices = @transform_0, window_bounds = array<i64: 1, 8, 32>}, {pipeline_mode = #tpu.pipeline_mode<synchronous>, transform_indices = @transform_1, window_bounds = array<i64: 1, 32>}, {pipeline_mode = #tpu.pipeline_mode<synchronous>, transform_indices = @transform_2, window_bounds = array<i64: 1, 32>}, {pipeline_mode = #tpu.pipeline_mode<synchronous>, transform_indices = @transform_3, window_bounds = array<i64: 32, 192>}, {pipeline_mode = #tpu.pipeline_mode<synchronous>, transform_indices = @transform_4, window_bounds = array<i64: 64, 32>}, {pipeline_mode = #tpu.pipeline_mode<synchronous>, transform_indices = @transform_5, window_bounds = array<i64: 1, 32>}, {pipeline_mode = #tpu.pipeline_mode<synchronous>, transform_indices = @transform_6, window_bounds = array<i64: 1, 32>}, {pipeline_mode = #tpu.pipeline_mode<synchronous>, transform_indices = @transform_7, window_bounds = array<i64: 1, 32>}, {pipeline_mode = #tpu.pipeline_mode<synchronous>, transform_indices = @transform_8, window_bounds = array<i64: 32, 160>}, {pipeline_mode = #tpu.pipeline_mode<synchronous>, transform_indices = @transform_9, window_bounds = array<i64: 1, 160>}, {pipeline_mode = #tpu.pipeline_mode<synchronous>, transform_indices = @transform_10, window_bounds = array<i64: 32, 32>}, {pipeline_mode = #tpu.pipeline_mode<synchronous>, transform_indices = @transform_11, window_bounds = array<i64: 1, 32>}, {transform_indices = @transform_12, window_bounds = array<i64: 1, 8, 32>}]} {
    %c0 = arith.constant 0 : index
    %c0_0 = arith.constant 0 : index
    %c0_1 = arith.constant 0 : index
    %0 = vector.load %arg1[%c0, %c0_0, %c0_1] : memref<1x8x32xf32, #tpu.memory_space<vmem>>, vector<1x8x32xf32>
    %1 = vector.shape_cast %0 : vector<1x8x32xf32> to vector<8x32xf32>
    %c0_2 = arith.constant 0 : index
    %c0_3 = arith.constant 0 : index
    %2 = vector.load %arg2[%c0_2, %c0_3] : memref<1x32xf32, #tpu.memory_space<vmem>>, vector<1x32xf32>
    %c0_4 = arith.constant 0 : index
    %c0_5 = arith.constant 0 : index
    %3 = vector.load %arg3[%c0_4, %c0_5] : memref<1x32xf32, #tpu.memory_space<vmem>>, vector<1x32xf32>
    %cst = arith.constant dense<0.000000e+00> : vector<8xf32>
    %4 = vector.multi_reduction <add>, %1, %cst [1] : vector<8x32xf32> to vector<8xf32>
    %5 = vector.shape_cast %4 : vector<8xf32> to vector<8x1xf32>
    %cst_6 = arith.constant 3.200000e+01 : f32
    %6 = vector.broadcast %cst_6 : f32 to vector<8x1xf32>
    %7 = arith.divf %5, %6 : vector<8x1xf32>
    %8 = vector.broadcast %7 : vector<8x1xf32> to vector<8x32xf32>
    %9 = arith.subf %1, %8 : vector<8x32xf32>
    %10 = arith.mulf %9, %9 : vector<8x32xf32>
    %cst_7 = arith.constant dense<0.000000e+00> : vector<8xf32>
    %11 = vector.multi_reduction <add>, %10, %cst_7 [1] : vector<8x32xf32> to vector<8xf32>
    %12 = vector.shape_cast %11 : vector<8xf32> to vector<8x1xf32>
    %cst_8 = arith.constant 3.200000e+01 : f32
    %13 = vector.broadcast %cst_8 : f32 to vector<8x1xf32>
    %14 = arith.divf %12, %13 : vector<8x1xf32>
    %15 = vector.broadcast %7 : vector<8x1xf32> to vector<8x32xf32>
    %16 = arith.subf %1, %15 : vector<8x32xf32>
    %cst_9 = arith.constant 9.99999974E-6 : f32
    %17 = vector.broadcast %cst_9 : f32 to vector<8x1xf32>
    %18 = arith.addf %14, %17 : vector<8x1xf32>
    %19 = math.rsqrt %18 : vector<8x1xf32>
    %20 = vector.broadcast %19 : vector<8x1xf32> to vector<8x32xf32>
    %21 = arith.mulf %16, %20 : vector<8x32xf32>
    %22 = vector.broadcast %2 : vector<1x32xf32> to vector<8x32xf32>
    %23 = arith.mulf %21, %22 : vector<8x32xf32>
    %24 = vector.broadcast %3 : vector<1x32xf32> to vector<8x32xf32>
    %25 = arith.addf %23, %24 : vector<8x32xf32>
    %26 = arith.truncf %25 : vector<8x32xf32> to vector<8x32xbf16>
    %c0_10 = arith.constant 0 : index
    %c0_11 = arith.constant 0 : index
    %27 = vector.load %arg4[%c0_10, %c0_11] : memref<32x192xbf16, #tpu.memory_space<vmem>>, vector<32x192xbf16>
    %cst_12 = arith.constant dense<0.000000e+00> : vector<8x192xf32>
    %28 = tpu.matmul %26, %27, %cst_12 {dimension_numbers = #tpu.dot_dimension_numbers<[1], [0], [0], [1], [0, 0, 1, 1], [], []>} : vector<8x32xbf16>, vector<32x192xbf16>, vector<8x192xf32> -> vector<8x192xf32>
    %29 = vector.extract_strided_slice %28 {offsets = [0, 0], sizes = [8, 16], strides = [1, 1]} : vector<8x192xf32> to vector<8x16xf32>
    %30 = vector.extract_strided_slice %28 {offsets = [0, 64], sizes = [8, 16], strides = [1, 1]} : vector<8x192xf32> to vector<8x16xf32>
    %31 = vector.extract_strided_slice %28 {offsets = [0, 128], sizes = [8, 16], strides = [1, 1]} : vector<8x192xf32> to vector<8x16xf32>
    %32 = arith.truncf %29 : vector<8x16xf32> to vector<8x16xbf16>
    %33 = arith.truncf %30 : vector<8x16xf32> to vector<8x16xbf16>
    %cst_13 = arith.constant dense<0.000000e+00> : vector<8x8xf32>
    %34 = tpu.matmul %32, %33, %cst_13 {dimension_numbers = #tpu.dot_dimension_numbers<[1], [1], [0], [0], [0, 0, 1, 0], [], []>} : vector<8x16xbf16>, vector<8x16xbf16>, vector<8x8xf32> -> vector<8x8xf32>
    %cst_14 = arith.constant dense<0xFF800000> : vector<8xf32>
    %35 = vector.multi_reduction <maximumf>, %34, %cst_14 [1] : vector<8x8xf32> to vector<8xf32>
    %36 = vector.shape_cast %35 : vector<8xf32> to vector<8x1xf32>
    %37 = vector.broadcast %36 : vector<8x1xf32> to vector<8x8xf32>
    %38 = arith.subf %34, %37 : vector<8x8xf32>
    %39 = math.exp %38 : vector<8x8xf32>
    %cst_15 = arith.constant dense<0.000000e+00> : vector<8xf32>
    %40 = vector.multi_reduction <add>, %39, %cst_15 [1] : vector<8x8xf32> to vector<8xf32>
    %41 = vector.shape_cast %40 : vector<8xf32> to vector<8x1xf32>
    %42 = tpu.reciprocal %41 {approx = true} : vector<8x1xf32> -> vector<8x1xf32>
    %43 = vector.broadcast %42 : vector<8x1xf32> to vector<8x8xf32>
    %44 = arith.mulf %39, %43 : vector<8x8xf32>
    %45 = arith.truncf %44 : vector<8x8xf32> to vector<8x8xbf16>
    %46 = arith.truncf %31 : vector<8x16xf32> to vector<8x16xbf16>
    %cst_16 = arith.constant dense<0.000000e+00> : vector<8x16xf32>
    %47 = tpu.matmul %45, %46, %cst_16 {dimension_numbers = #tpu.dot_dimension_numbers<[1], [0], [0], [1], [0, 0, 1, 1], [], []>} : vector<8x8xbf16>, vector<8x16xbf16>, vector<8x16xf32> -> vector<8x16xf32>
    %c0_17 = arith.constant 0 : index
    %c0_18 = arith.constant 0 : index
    %48 = vector.load %arg14[%c0_17, %c0_18] : memref<8x64xf32, #tpu.memory_space<vmem>>, vector<8x16xf32>
    tpu.vector_store %arg14[%c0_17, %c0_18], %47 {strides = array<i32>} : memref<8x64xf32, #tpu.memory_space<vmem>>, vector<8x16xf32>,
    %49 = vector.extract_strided_slice %28 {offsets = [0, 16], sizes = [8, 16], strides = [1, 1]} : vector<8x192xf32> to vector<8x16xf32>
    %50 = vector.extract_strided_slice %28 {offsets = [0, 80], sizes = [8, 16], strides = [1, 1]} : vector<8x192xf32> to vector<8x16xf32>
    %51 = vector.extract_strided_slice %28 {offsets = [0, 144], sizes = [8, 16], strides = [1, 1]} : vector<8x192xf32> to vector<8x16xf32>
    %52 = arith.truncf %49 : vector<8x16xf32> to vector<8x16xbf16>
    %53 = arith.truncf %50 : vector<8x16xf32> to vector<8x16xbf16>
    %cst_19 = arith.constant dense<0.000000e+00> : vector<8x8xf32>
    %54 = tpu.matmul %52, %53, %cst_19 {dimension_numbers = #tpu.dot_dimension_numbers<[1], [1], [0], [0], [0, 0, 1, 0], [], []>} : vector<8x16xbf16>, vector<8x16xbf16>, vector<8x8xf32> -> vector<8x8xf32>
    %cst_20 = arith.constant dense<0xFF800000> : vector<8xf32>
    %55 = vector.multi_reduction <maximumf>, %54, %cst_20 [1] : vector<8x8xf32> to vector<8xf32>
    %56 = vector.shape_cast %55 : vector<8xf32> to vector<8x1xf32>
    %57 = vector.broadcast %56 : vector<8x1xf32> to vector<8x8xf32>
    %58 = arith.subf %54, %57 : vector<8x8xf32>
    %59 = math.exp %58 : vector<8x8xf32>
    %cst_21 = arith.constant dense<0.000000e+00> : vector<8xf32>
    %60 = vector.multi_reduction <add>, %59, %cst_21 [1] : vector<8x8xf32> to vector<8xf32>
    %61 = vector.shape_cast %60 : vector<8xf32> to vector<8x1xf32>
    %62 = tpu.reciprocal %61 {approx = true} : vector<8x1xf32> -> vector<8x1xf32>
    %63 = vector.broadcast %62 : vector<8x1xf32> to vector<8x8xf32>
    %64 = arith.mulf %59, %63 : vector<8x8xf32>
    %65 = arith.truncf %64 : vector<8x8xf32> to vector<8x8xbf16>
    %66 = arith.truncf %51 : vector<8x16xf32> to vector<8x16xbf16>
    %cst_22 = arith.constant dense<0.000000e+00> : vector<8x16xf32>
    %67 = tpu.matmul %65, %66, %cst_22 {dimension_numbers = #tpu.dot_dimension_numbers<[1], [0], [0], [1], [0, 0, 1, 1], [], []>} : vector<8x8xbf16>, vector<8x16xbf16>, vector<8x16xf32> -> vector<8x16xf32>
    %c0_23 = arith.constant 0 : index
    %c16 = arith.constant 16 : index
    %68 = vector.load %arg14[%c0_23, %c16] : memref<8x64xf32, #tpu.memory_space<vmem>>, vector<8x16xf32>
    tpu.vector_store %arg14[%c0_23, %c16], %67 {strides = array<i32>} : memref<8x64xf32, #tpu.memory_space<vmem>>, vector<8x16xf32>,
    %69 = vector.extract_strided_slice %28 {offsets = [0, 32], sizes = [8, 16], strides = [1, 1]} : vector<8x192xf32> to vector<8x16xf32>
    %70 = vector.extract_strided_slice %28 {offsets = [0, 96], sizes = [8, 16], strides = [1, 1]} : vector<8x192xf32> to vector<8x16xf32>
    %71 = vector.extract_strided_slice %28 {offsets = [0, 160], sizes = [8, 16], strides = [1, 1]} : vector<8x192xf32> to vector<8x16xf32>
    %72 = arith.truncf %69 : vector<8x16xf32> to vector<8x16xbf16>
    %73 = arith.truncf %70 : vector<8x16xf32> to vector<8x16xbf16>
    %cst_24 = arith.constant dense<0.000000e+00> : vector<8x8xf32>
    %74 = tpu.matmul %72, %73, %cst_24 {dimension_numbers = #tpu.dot_dimension_numbers<[1], [1], [0], [0], [0, 0, 1, 0], [], []>} : vector<8x16xbf16>, vector<8x16xbf16>, vector<8x8xf32> -> vector<8x8xf32>
    %cst_25 = arith.constant dense<0xFF800000> : vector<8xf32>
    %75 = vector.multi_reduction <maximumf>, %74, %cst_25 [1] : vector<8x8xf32> to vector<8xf32>
    %76 = vector.shape_cast %75 : vector<8xf32> to vector<8x1xf32>
    %77 = vector.broadcast %76 : vector<8x1xf32> to vector<8x8xf32>
    %78 = arith.subf %74, %77 : vector<8x8xf32>
    %79 = math.exp %78 : vector<8x8xf32>
    %cst_26 = arith.constant dense<0.000000e+00> : vector<8xf32>
    %80 = vector.multi_reduction <add>, %79, %cst_26 [1] : vector<8x8xf32> to vector<8xf32>
    %81 = vector.shape_cast %80 : vector<8xf32> to vector<8x1xf32>
    %82 = tpu.reciprocal %81 {approx = true} : vector<8x1xf32> -> vector<8x1xf32>
    %83 = vector.broadcast %82 : vector<8x1xf32> to vector<8x8xf32>
    %84 = arith.mulf %79, %83 : vector<8x8xf32>
    %85 = arith.truncf %84 : vector<8x8xf32> to vector<8x8xbf16>
    %86 = arith.truncf %71 : vector<8x16xf32> to vector<8x16xbf16>
    %cst_27 = arith.constant dense<0.000000e+00> : vector<8x16xf32>
    %87 = tpu.matmul %85, %86, %cst_27 {dimension_numbers = #tpu.dot_dimension_numbers<[1], [0], [0], [1], [0, 0, 1, 1], [], []>} : vector<8x8xbf16>, vector<8x16xbf16>, vector<8x16xf32> -> vector<8x16xf32>
    %c0_28 = arith.constant 0 : index
    %c32 = arith.constant 32 : index
    %88 = vector.load %arg14[%c0_28, %c32] : memref<8x64xf32, #tpu.memory_space<vmem>>, vector<8x16xf32>
    tpu.vector_store %arg14[%c0_28, %c32], %87 {strides = array<i32>} : memref<8x64xf32, #tpu.memory_space<vmem>>, vector<8x16xf32>,
    %89 = vector.extract_strided_slice %28 {offsets = [0, 48], sizes = [8, 16], strides = [1, 1]} : vector<8x192xf32> to vector<8x16xf32>
    %90 = vector.extract_strided_slice %28 {offsets = [0, 112], sizes = [8, 16], strides = [1, 1]} : vector<8x192xf32> to vector<8x16xf32>
    %91 = vector.extract_strided_slice %28 {offsets = [0, 176], sizes = [8, 16], strides = [1, 1]} : vector<8x192xf32> to vector<8x16xf32>
    %92 = arith.truncf %89 : vector<8x16xf32> to vector<8x16xbf16>
    %93 = arith.truncf %90 : vector<8x16xf32> to vector<8x16xbf16>
    %cst_29 = arith.constant dense<0.000000e+00> : vector<8x8xf32>
    %94 = tpu.matmul %92, %93, %cst_29 {dimension_numbers = #tpu.dot_dimension_numbers<[1], [1], [0], [0], [0, 0, 1, 0], [], []>} : vector<8x16xbf16>, vector<8x16xbf16>, vector<8x8xf32> -> vector<8x8xf32>
    %cst_30 = arith.constant dense<0xFF800000> : vector<8xf32>
    %95 = vector.multi_reduction <maximumf>, %94, %cst_30 [1] : vector<8x8xf32> to vector<8xf32>
    %96 = vector.shape_cast %95 : vector<8xf32> to vector<8x1xf32>
    %97 = vector.broadcast %96 : vector<8x1xf32> to vector<8x8xf32>
    %98 = arith.subf %94, %97 : vector<8x8xf32>
    %99 = math.exp %98 : vector<8x8xf32>
    %cst_31 = arith.constant dense<0.000000e+00> : vector<8xf32>
    %100 = vector.multi_reduction <add>, %99, %cst_31 [1] : vector<8x8xf32> to vector<8xf32>
    %101 = vector.shape_cast %100 : vector<8xf32> to vector<8x1xf32>
    %102 = tpu.reciprocal %101 {approx = true} : vector<8x1xf32> -> vector<8x1xf32>
    %103 = vector.broadcast %102 : vector<8x1xf32> to vector<8x8xf32>
    %104 = arith.mulf %99, %103 : vector<8x8xf32>
    %105 = arith.truncf %104 : vector<8x8xf32> to vector<8x8xbf16>
    %106 = arith.truncf %91 : vector<8x16xf32> to vector<8x16xbf16>
    %cst_32 = arith.constant dense<0.000000e+00> : vector<8x16xf32>
    %107 = tpu.matmul %105, %106, %cst_32 {dimension_numbers = #tpu.dot_dimension_numbers<[1], [0], [0], [1], [0, 0, 1, 1], [], []>} : vector<8x8xbf16>, vector<8x16xbf16>, vector<8x16xf32> -> vector<8x16xf32>
    %c0_33 = arith.constant 0 : index
    %c48 = arith.constant 48 : index
    %108 = vector.load %arg14[%c0_33, %c48] : memref<8x64xf32, #tpu.memory_space<vmem>>, vector<8x16xf32>
    tpu.vector_store %arg14[%c0_33, %c48], %107 {strides = array<i32>} : memref<8x64xf32, #tpu.memory_space<vmem>>, vector<8x16xf32>,
    %c0_34 = arith.constant 0 : index
    %c0_35 = arith.constant 0 : index
    %109 = vector.load %arg14[%c0_34, %c0_35] : memref<8x64xf32, #tpu.memory_space<vmem>>, vector<8x64xf32>
    %110 = arith.truncf %109 : vector<8x64xf32> to vector<8x64xbf16>
    %c0_36 = arith.constant 0 : index
    %c0_37 = arith.constant 0 : index
    %111 = vector.load %arg5[%c0_36, %c0_37] : memref<64x32xbf16, #tpu.memory_space<vmem>>, vector<64x32xbf16>
    %cst_38 = arith.constant dense<0.000000e+00> : vector<8x32xf32>
    %112 = tpu.matmul %110, %111, %cst_38 {dimension_numbers = #tpu.dot_dimension_numbers<[1], [0], [0], [1], [0, 0, 1, 1], [], []>} : vector<8x64xbf16>, vector<64x32xbf16>, vector<8x32xf32> -> vector<8x32xf32>
    %c0_39 = arith.constant 0 : index
    %c0_40 = arith.constant 0 : index
    %113 = vector.load %arg6[%c0_39, %c0_40] : memref<1x32xf32, #tpu.memory_space<vmem>>, vector<1x32xf32>
    %114 = vector.broadcast %113 : vector<1x32xf32> to vector<8x32xf32>
    %115 = arith.addf %112, %114 : vector<8x32xf32>
    %c0_41 = arith.constant 0 : index
    %c0_42 = arith.constant 0 : index
    %116 = vector.load %arg7[%c0_41, %c0_42] : memref<1x32xf32, #tpu.memory_space<vmem>>, vector<1x32xf32>
    %c0_43 = arith.constant 0 : index
    %c0_44 = arith.constant 0 : index
    %117 = vector.load %arg8[%c0_43, %c0_44] : memref<1x32xf32, #tpu.memory_space<vmem>>, vector<1x32xf32>
    %cst_45 = arith.constant dense<0.000000e+00> : vector<8xf32>
    %118 = vector.multi_reduction <add>, %1, %cst_45 [1] : vector<8x32xf32> to vector<8xf32>
    %119 = vector.shape_cast %118 : vector<8xf32> to vector<8x1xf32>
    %cst_46 = arith.constant 3.200000e+01 : f32
    %120 = vector.broadcast %cst_46 : f32 to vector<8x1xf32>
    %121 = arith.divf %119, %120 : vector<8x1xf32>
    %122 = vector.broadcast %121 : vector<8x1xf32> to vector<8x32xf32>
    %123 = arith.subf %1, %122 : vector<8x32xf32>
    %124 = arith.mulf %123, %123 : vector<8x32xf32>
    %cst_47 = arith.constant dense<0.000000e+00> : vector<8xf32>
    %125 = vector.multi_reduction <add>, %124, %cst_47 [1] : vector<8x32xf32> to vector<8xf32>
    %126 = vector.shape_cast %125 : vector<8xf32> to vector<8x1xf32>
    %cst_48 = arith.constant 3.200000e+01 : f32
    %127 = vector.broadcast %cst_48 : f32 to vector<8x1xf32>
    %128 = arith.divf %126, %127 : vector<8x1xf32>
    %129 = vector.broadcast %121 : vector<8x1xf32> to vector<8x32xf32>
    %130 = arith.subf %1, %129 : vector<8x32xf32>
    %cst_49 = arith.constant 9.99999974E-6 : f32
    %131 = vector.broadcast %cst_49 : f32 to vector<8x1xf32>
    %132 = arith.addf %128, %131 : vector<8x1xf32>
    %133 = math.rsqrt %132 : vector<8x1xf32>
    %134 = vector.broadcast %133 : vector<8x1xf32> to vector<8x32xf32>
    %135 = arith.mulf %130, %134 : vector<8x32xf32>
    %136 = vector.broadcast %116 : vector<1x32xf32> to vector<8x32xf32>
    %137 = arith.mulf %135, %136 : vector<8x32xf32>
    %138 = vector.broadcast %117 : vector<1x32xf32> to vector<8x32xf32>
    %139 = arith.addf %137, %138 : vector<8x32xf32>
    %140 = arith.truncf %139 : vector<8x32xf32> to vector<8x32xbf16>
    %c0_50 = arith.constant 0 : index
    %c0_51 = arith.constant 0 : index
    %141 = vector.load %arg9[%c0_50, %c0_51] : memref<32x160xbf16, #tpu.memory_space<vmem>>, vector<32x160xbf16>
    %cst_52 = arith.constant dense<0.000000e+00> : vector<8x160xf32>
    %142 = tpu.matmul %140, %141, %cst_52 {dimension_numbers = #tpu.dot_dimension_numbers<[1], [0], [0], [1], [0, 0, 1, 1], [], []>} : vector<8x32xbf16>, vector<32x160xbf16>, vector<8x160xf32> -> vector<8x160xf32>
    %c0_53 = arith.constant 0 : index
    %c0_54 = arith.constant 0 : index
    %143 = vector.load %arg10[%c0_53, %c0_54] : memref<1x160xf32, #tpu.memory_space<vmem>>, vector<1x160xf32>
    %144 = vector.broadcast %143 : vector<1x160xf32> to vector<8x160xf32>
    %145 = arith.addf %142, %144 : vector<8x160xf32>
    %146 = vector.extract_strided_slice %145 {offsets = [0, 0], sizes = [8, 16], strides = [1, 1]} : vector<8x160xf32> to vector<8x16xf32>
    %147 = vector.extract_strided_slice %145 {offsets = [0, 32], sizes = [8, 16], strides = [1, 1]} : vector<8x160xf32> to vector<8x16xf32>
    %148 = vector.extract_strided_slice %145 {offsets = [0, 64], sizes = [8, 16], strides = [1, 1]} : vector<8x160xf32> to vector<8x16xf32>
    %149 = vector.extract_strided_slice %145 {offsets = [0, 96], sizes = [8, 16], strides = [1, 1]} : vector<8x160xf32> to vector<8x16xf32>
    %150 = vector.extract_strided_slice %145 {offsets = [0, 128], sizes = [8, 16], strides = [1, 1]} : vector<8x160xf32> to vector<8x16xf32>
    %151 = vector.shape_cast %146 : vector<8x16xf32> to vector<8x1x16xf32>
    %152 = vector.shape_cast %147 : vector<8x16xf32> to vector<1x8x16xf32>
    %153 = vector.broadcast %151 : vector<8x1x16xf32> to vector<8x8x16xf32>
    %154 = vector.broadcast %152 : vector<1x8x16xf32> to vector<8x8x16xf32>
    %155 = arith.mulf %153, %154 : vector<8x8x16xf32>
    %156 = vector.shape_cast %155 : vector<8x8x16xf32> to vector<64x16xf32>
    %157 = arith.truncf %156 : vector<64x16xf32> to vector<64x16xbf16>
    %c0_55 = arith.constant 0 : index
    %c0_56 = arith.constant 0 : index
    %158 = vector.load %arg16[%c0_55, %c0_56] : memref<64x16xbf16, #tpu.memory_space<vmem>>, vector<64x16xbf16>
    tpu.vector_store %arg16[%c0_55, %c0_56], %157 {strides = array<i32>} : memref<64x16xbf16, #tpu.memory_space<vmem>>, vector<64x16xbf16>,
    %159 = vector.shape_cast %149 : vector<8x16xf32> to vector<8x1x16xf32>
    %160 = vector.shape_cast %150 : vector<8x16xf32> to vector<1x8x16xf32>
    %161 = vector.broadcast %159 : vector<8x1x16xf32> to vector<8x8x16xf32>
    %162 = vector.broadcast %160 : vector<1x8x16xf32> to vector<8x8x16xf32>
    %163 = arith.addf %161, %162 : vector<8x8x16xf32>
    %164 = vector.shape_cast %163 : vector<8x8x16xf32> to vector<64x16xf32>
    %165 = arith.truncf %164 : vector<64x16xf32> to vector<64x16xbf16>
    %c0_57 = arith.constant 0 : index
    %c0_58 = arith.constant 0 : index
    %166 = vector.load %arg17[%c0_57, %c0_58] : memref<64x16xbf16, #tpu.memory_space<vmem>>, vector<64x16xbf16>
    tpu.vector_store %arg17[%c0_57, %c0_58], %165 {strides = array<i32>} : memref<64x16xbf16, #tpu.memory_space<vmem>>, vector<64x16xbf16>,
    %167 = arith.truncf %148 : vector<8x16xf32> to vector<8x16xbf16>
    %c0_59 = arith.constant 0 : index
    %c0_60 = arith.constant 0 : index
    %168 = vector.load %arg18[%c0_59, %c0_60] : memref<8x16xbf16, #tpu.memory_space<vmem>>, vector<8x16xbf16>
    tpu.vector_store %arg18[%c0_59, %c0_60], %167 {strides = array<i32>} : memref<8x16xbf16, #tpu.memory_space<vmem>>, vector<8x16xbf16>,
    %c0_61 = arith.constant 0 : index
    %c0_62 = arith.constant 0 : index
    %169 = vector.load %arg18[%c0_61, %c0_62] : memref<8x16xbf16, #tpu.memory_space<vmem>>, vector<8x16xbf16>
    %c0_63 = arith.constant 0 : index
    %c0_64 = arith.constant 0 : index
    %170 = vector.load %arg16[%c0_63, %c0_64] : memref<64x16xbf16, #tpu.memory_space<vmem>>, vector<64x16xbf16>
    %cst_65 = arith.constant dense<0.000000e+00> : vector<8x64xf32>
    %171 = tpu.matmul %169, %170, %cst_65 {dimension_numbers = #tpu.dot_dimension_numbers<[1], [1], [0], [0], [0, 0, 1, 0], [], []>} : vector<8x16xbf16>, vector<64x16xbf16>, vector<8x64xf32> -> vector<8x64xf32>
    %cst_66 = arith.constant dense<0xFF800000> : vector<8xf32>
    %172 = vector.multi_reduction <maximumf>, %171, %cst_66 [1] : vector<8x64xf32> to vector<8xf32>
    %173 = vector.shape_cast %172 : vector<8xf32> to vector<8x1xf32>
    %174 = vector.broadcast %173 : vector<8x1xf32> to vector<8x64xf32>
    %175 = arith.subf %171, %174 : vector<8x64xf32>
    %176 = math.exp %175 : vector<8x64xf32>
    %cst_67 = arith.constant dense<0.000000e+00> : vector<8xf32>
    %177 = vector.multi_reduction <add>, %176, %cst_67 [1] : vector<8x64xf32> to vector<8xf32>
    %178 = vector.shape_cast %177 : vector<8xf32> to vector<8x1xf32>
    %179 = tpu.reciprocal %178 {approx = true} : vector<8x1xf32> -> vector<8x1xf32>
    %180 = vector.broadcast %179 : vector<8x1xf32> to vector<8x64xf32>
    %181 = arith.mulf %176, %180 : vector<8x64xf32>
    %182 = arith.truncf %181 : vector<8x64xf32> to vector<8x64xbf16>
    %c0_68 = arith.constant 0 : index
    %c0_69 = arith.constant 0 : index
    %183 = vector.load %arg17[%c0_68, %c0_69] : memref<64x16xbf16, #tpu.memory_space<vmem>>, vector<64x16xbf16>
    %cst_70 = arith.constant dense<0.000000e+00> : vector<8x16xf32>
    %184 = tpu.matmul %182, %183, %cst_70 {dimension_numbers = #tpu.dot_dimension_numbers<[1], [0], [0], [1], [0, 0, 1, 1], [], []>} : vector<8x64xbf16>, vector<64x16xbf16>, vector<8x16xf32> -> vector<8x16xf32>
    %c0_71 = arith.constant 0 : index
    %c0_72 = arith.constant 0 : index
    %185 = vector.load %arg15[%c0_71, %c0_72] : memref<8x32xf32, #tpu.memory_space<vmem>>, vector<8x16xf32>
    tpu.vector_store %arg15[%c0_71, %c0_72], %184 {strides = array<i32>} : memref<8x32xf32, #tpu.memory_space<vmem>>, vector<8x16xf32>,
    %186 = vector.extract_strided_slice %145 {offsets = [0, 16], sizes = [8, 16], strides = [1, 1]} : vector<8x160xf32> to vector<8x16xf32>
    %187 = vector.extract_strided_slice %145 {offsets = [0, 48], sizes = [8, 16], strides = [1, 1]} : vector<8x160xf32> to vector<8x16xf32>
    %188 = vector.extract_strided_slice %145 {offsets = [0, 80], sizes = [8, 16], strides = [1, 1]} : vector<8x160xf32> to vector<8x16xf32>
    %189 = vector.extract_strided_slice %145 {offsets = [0, 112], sizes = [8, 16], strides = [1, 1]} : vector<8x160xf32> to vector<8x16xf32>
    %190 = vector.extract_strided_slice %145 {offsets = [0, 144], sizes = [8, 16], strides = [1, 1]} : vector<8x160xf32> to vector<8x16xf32>
    %191 = vector.shape_cast %186 : vector<8x16xf32> to vector<8x1x16xf32>
    %192 = vector.shape_cast %187 : vector<8x16xf32> to vector<1x8x16xf32>
    %193 = vector.broadcast %191 : vector<8x1x16xf32> to vector<8x8x16xf32>
    %194 = vector.broadcast %192 : vector<1x8x16xf32> to vector<8x8x16xf32>
    %195 = arith.mulf %193, %194 : vector<8x8x16xf32>
    %196 = vector.shape_cast %195 : vector<8x8x16xf32> to vector<64x16xf32>
    %197 = arith.truncf %196 : vector<64x16xf32> to vector<64x16xbf16>
    %c0_73 = arith.constant 0 : index
    %c0_74 = arith.constant 0 : index
    %198 = vector.load %arg16[%c0_73, %c0_74] : memref<64x16xbf16, #tpu.memory_space<vmem>>, vector<64x16xbf16>
    tpu.vector_store %arg16[%c0_73, %c0_74], %197 {strides = array<i32>} : memref<64x16xbf16, #tpu.memory_space<vmem>>, vector<64x16xbf16>,
    %199 = vector.shape_cast %189 : vector<8x16xf32> to vector<8x1x16xf32>
    %200 = vector.shape_cast %190 : vector<8x16xf32> to vector<1x8x16xf32>
    %201 = vector.broadcast %199 : vector<8x1x16xf32> to vector<8x8x16xf32>
    %202 = vector.broadcast %200 : vector<1x8x16xf32> to vector<8x8x16xf32>
    %203 = arith.addf %201, %202 : vector<8x8x16xf32>
    %204 = vector.shape_cast %203 : vector<8x8x16xf32> to vector<64x16xf32>
    %205 = arith.truncf %204 : vector<64x16xf32> to vector<64x16xbf16>
    %c0_75 = arith.constant 0 : index
    %c0_76 = arith.constant 0 : index
    %206 = vector.load %arg17[%c0_75, %c0_76] : memref<64x16xbf16, #tpu.memory_space<vmem>>, vector<64x16xbf16>
    tpu.vector_store %arg17[%c0_75, %c0_76], %205 {strides = array<i32>} : memref<64x16xbf16, #tpu.memory_space<vmem>>, vector<64x16xbf16>,
    %207 = arith.truncf %188 : vector<8x16xf32> to vector<8x16xbf16>
    %c0_77 = arith.constant 0 : index
    %c0_78 = arith.constant 0 : index
    %208 = vector.load %arg18[%c0_77, %c0_78] : memref<8x16xbf16, #tpu.memory_space<vmem>>, vector<8x16xbf16>
    tpu.vector_store %arg18[%c0_77, %c0_78], %207 {strides = array<i32>} : memref<8x16xbf16, #tpu.memory_space<vmem>>, vector<8x16xbf16>,
    %c0_79 = arith.constant 0 : index
    %c0_80 = arith.constant 0 : index
    %209 = vector.load %arg18[%c0_79, %c0_80] : memref<8x16xbf16, #tpu.memory_space<vmem>>, vector<8x16xbf16>
    %c0_81 = arith.constant 0 : index
    %c0_82 = arith.constant 0 : index
    %210 = vector.load %arg16[%c0_81, %c0_82] : memref<64x16xbf16, #tpu.memory_space<vmem>>, vector<64x16xbf16>
    %cst_83 = arith.constant dense<0.000000e+00> : vector<8x64xf32>
    %211 = tpu.matmul %209, %210, %cst_83 {dimension_numbers = #tpu.dot_dimension_numbers<[1], [1], [0], [0], [0, 0, 1, 0], [], []>} : vector<8x16xbf16>, vector<64x16xbf16>, vector<8x64xf32> -> vector<8x64xf32>
    %cst_84 = arith.constant dense<0xFF800000> : vector<8xf32>
    %212 = vector.multi_reduction <maximumf>, %211, %cst_84 [1] : vector<8x64xf32> to vector<8xf32>
    %213 = vector.shape_cast %212 : vector<8xf32> to vector<8x1xf32>
    %214 = vector.broadcast %213 : vector<8x1xf32> to vector<8x64xf32>
    %215 = arith.subf %211, %214 : vector<8x64xf32>
    %216 = math.exp %215 : vector<8x64xf32>
    %cst_85 = arith.constant dense<0.000000e+00> : vector<8xf32>
    %217 = vector.multi_reduction <add>, %216, %cst_85 [1] : vector<8x64xf32> to vector<8xf32>
    %218 = vector.shape_cast %217 : vector<8xf32> to vector<8x1xf32>
    %219 = tpu.reciprocal %218 {approx = true} : vector<8x1xf32> -> vector<8x1xf32>
    %220 = vector.broadcast %219 : vector<8x1xf32> to vector<8x64xf32>
    %221 = arith.mulf %216, %220 : vector<8x64xf32>
    %222 = arith.truncf %221 : vector<8x64xf32> to vector<8x64xbf16>
    %c0_86 = arith.constant 0 : index
    %c0_87 = arith.constant 0 : index
    %223 = vector.load %arg17[%c0_86, %c0_87] : memref<64x16xbf16, #tpu.memory_space<vmem>>, vector<64x16xbf16>
    %cst_88 = arith.constant dense<0.000000e+00> : vector<8x16xf32>
    %224 = tpu.matmul %222, %223, %cst_88 {dimension_numbers = #tpu.dot_dimension_numbers<[1], [0], [0], [1], [0, 0, 1, 1], [], []>} : vector<8x64xbf16>, vector<64x16xbf16>, vector<8x16xf32> -> vector<8x16xf32>
    %c0_89 = arith.constant 0 : index
    %c16_90 = arith.constant 16 : index
    %225 = vector.load %arg15[%c0_89, %c16_90] : memref<8x32xf32, #tpu.memory_space<vmem>>, vector<8x16xf32>
    tpu.vector_store %arg15[%c0_89, %c16_90], %224 {strides = array<i32>} : memref<8x32xf32, #tpu.memory_space<vmem>>, vector<8x16xf32>,
    %c0_91 = arith.constant 0 : index
    %c0_92 = arith.constant 0 : index
    %226 = vector.load %arg15[%c0_91, %c0_92] : memref<8x32xf32, #tpu.memory_space<vmem>>, vector<8x32xf32>
    %227 = arith.truncf %226 : vector<8x32xf32> to vector<8x32xbf16>
    %c0_93 = arith.constant 0 : index
    %c0_94 = arith.constant 0 : index
    %228 = vector.load %arg11[%c0_93, %c0_94] : memref<32x32xbf16, #tpu.memory_space<vmem>>, vector<32x32xbf16>
    %cst_95 = arith.constant dense<0.000000e+00> : vector<8x32xf32>
    %229 = tpu.matmul %227, %228, %cst_95 {dimension_numbers = #tpu.dot_dimension_numbers<[1], [0], [0], [1], [0, 0, 1, 1], [], []>} : vector<8x32xbf16>, vector<32x32xbf16>, vector<8x32xf32> -> vector<8x32xf32>
    %c0_96 = arith.constant 0 : index
    %c0_97 = arith.constant 0 : index
    %230 = vector.load %arg12[%c0_96, %c0_97] : memref<1x32xf32, #tpu.memory_space<vmem>>, vector<1x32xf32>
    %231 = vector.broadcast %230 : vector<1x32xf32> to vector<8x32xf32>
    %232 = arith.addf %229, %231 : vector<8x32xf32>
    %233 = arith.addf %115, %232 : vector<8x32xf32>
    %c0_98 = arith.constant 0 : index
    %c0_99 = arith.constant 0 : index
    %c0_100 = arith.constant 0 : index
    %234 = vector.load %arg13[%c0_98, %c0_99, %c0_100] : memref<1x8x32xf32, #tpu.memory_space<vmem>>, vector<1x8x32xf32>
    %235 = vector.shape_cast %234 : vector<1x8x32xf32> to vector<8x32xf32>
    %236 = vector.shape_cast %233 : vector<8x32xf32> to vector<1x8x32xf32>
    tpu.vector_store %arg13[%c0_98, %c0_99, %c0_100], %236 {strides = array<i32>} : memref<1x8x32xf32, #tpu.memory_space<vmem>>, vector<1x8x32xf32>,
    return
  }
  func.func @transform_0(%arg0: i32) -> (i32, i32, i32) {
    %c0_i32 = arith.constant 0 : i32
    %c0_i32_0 = arith.constant 0 : i32
    %c0_i32_1 = arith.constant 0 : i32
    return %arg0, %c0_i32, %c0_i32_0 : i32, i32, i32
  }
  func.func @transform_1(%arg0: i32) -> (i32, i32) {
    %c0_i32 = arith.constant 0 : i32
    %c0_i32_0 = arith.constant 0 : i32
    %c0_i32_1 = arith.constant 0 : i32
    return %c0_i32, %c0_i32_0 : i32, i32
  }
  func.func @transform_2(%arg0: i32) -> (i32, i32) {
    %c0_i32 = arith.constant 0 : i32
    %c0_i32_0 = arith.constant 0 : i32
    %c0_i32_1 = arith.constant 0 : i32
    return %c0_i32, %c0_i32_0 : i32, i32
  }
  func.func @transform_3(%arg0: i32) -> (i32, i32) {
    %c0_i32 = arith.constant 0 : i32
    %c0_i32_0 = arith.constant 0 : i32
    %c0_i32_1 = arith.constant 0 : i32
    return %c0_i32, %c0_i32_0 : i32, i32
  }
  func.func @transform_4(%arg0: i32) -> (i32, i32) {
    %c0_i32 = arith.constant 0 : i32
    %c0_i32_0 = arith.constant 0 : i32
    %c0_i32_1 = arith.constant 0 : i32
    return %c0_i32, %c0_i32_0 : i32, i32
  }
  func.func @transform_5(%arg0: i32) -> (i32, i32) {
    %c0_i32 = arith.constant 0 : i32
    %c0_i32_0 = arith.constant 0 : i32
    %c0_i32_1 = arith.constant 0 : i32
    return %c0_i32, %c0_i32_0 : i32, i32
  }
  func.func @transform_6(%arg0: i32) -> (i32, i32) {
    %c0_i32 = arith.constant 0 : i32
    %c0_i32_0 = arith.constant 0 : i32
    %c0_i32_1 = arith.constant 0 : i32
    return %c0_i32, %c0_i32_0 : i32, i32
  }
  func.func @transform_7(%arg0: i32) -> (i32, i32) {
    %c0_i32 = arith.constant 0 : i32
    %c0_i32_0 = arith.constant 0 : i32
    %c0_i32_1 = arith.constant 0 : i32
    return %c0_i32, %c0_i32_0 : i32, i32
  }
  func.func @transform_8(%arg0: i32) -> (i32, i32) {
    %c0_i32 = arith.constant 0 : i32
    %c0_i32_0 = arith.constant 0 : i32
    %c0_i32_1 = arith.constant 0 : i32
    return %c0_i32, %c0_i32_0 : i32, i32
  }
  func.func @transform_9(%arg0: i32) -> (i32, i32) {
    %c0_i32 = arith.constant 0 : i32
    %c0_i32_0 = arith.constant 0 : i32
    %c0_i32_1 = arith.constant 0 : i32
    return %c0_i32, %c0_i32_0 : i32, i32
  }
  func.func @transform_10(%arg0: i32) -> (i32, i32) {
    %c0_i32 = arith.constant 0 : i32
    %c0_i32_0 = arith.constant 0 : i32
    %c0_i32_1 = arith.constant 0 : i32
    return %c0_i32, %c0_i32_0 : i32, i32
  }
  func.func @transform_11(%arg0: i32) -> (i32, i32) {
    %c0_i32 = arith.constant 0 : i32
    %c0_i32_0 = arith.constant 0 : i32
    %c0_i32_1 = arith.constant 0 : i32
    return %c0_i32, %c0_i32_0 : i32, i32
  }
  func.func @transform_12(%arg0: i32) -> (i32, i32, i32) {
    %c0_i32 = arith.constant 0 : i32
    %c0_i32_0 = arith.constant 0 : i32
    %c0_i32_1 = arith.constant 0 : i32
    return %arg0, %c0_i32, %c0_i32_0 : i32, i32, i32
  }
}

</mosaic_0001>

<bundles_post_ra>
// kernel: tpu_custom_call.1
= control target key start
LH: loop header
LB: loop body
LE: loop exit
PB: predicated region body
PF: predicated region fallthrough
CT: control target
= control target key end

     0   :  { %s3144_s0 = inlined_call_operand.hbm [shape: f32[2,8,32], index: 0, kind: input, shape index: {}]   ;;  %s3145_s1 = inlined_call_operand.hbm [shape: f32[1,32], index: 1, kind: input, shape index: {}]   ;;  %s3146_s2 = inlined_call_operand.hbm [shape: f32[1,32], index: 2, kind: input, shape index: {}]   ;;  %s3147_s3 = inlined_call_operand.vmem [shape: bf16[32,192], index: 3, kind: input, shape index: {}]   ;;  %s3148_s4 = inlined_call_operand.vmem [shape: bf16[64,32], index: 4, kind: input, shape index: {}]   ;;  %s3149_s5 = inlined_call_operand.hbm [shape: f32[1,32], index: 5, kind: input, shape index: {}]   ;;  %s3150_s6 = inlined_call_operand.hbm [shape: f32[1,32], index: 6, kind: input, shape index: {}]   ;;  %s3151_s7 = inlined_call_operand.hbm [shape: f32[1,32], index: 7, kind: input, shape index: {}]   ;;  %s3152_s8 = inlined_call_operand.vmem [shape: bf16[32,160], index: 8, kind: input, shape index: {}]   ;;  %s3153_s9 = inlined_call_operand.vmem [shape: f32[1,160], index: 9, kind: input, shape index: {}]   ;;  %s3154_s10 = inlined_call_operand.vmem [shape: bf16[32,32], index: 10, kind: input, shape index: {}]   ;;  %s3155_s11 = inlined_call_operand.vmem [shape: f32[1,32], index: 11, kind: input, shape index: {}]   ;;  %s3156_s12 = inlined_call_operand.hbm [shape: f32[2,8,32], index: 12, kind: output, shape index: {}]  }
   0x1   :  { %3163 = sst [smem:[#allocation24_spill]] %s3145_s1 }
   0x2   :  { %3164 = sst [smem:[#allocation25_spill]] %s3154_s10 }
   0x3   :  { %3165 = sst [smem:[#allocation26_spill]] %s3155_s11 }
   0x4   :  { %3166 = sst [smem:[#allocation27_spill]] %s3156_s12 }
   0x5   :  { %17 = vsyncpa [#allocation8], 0 }
   0x6   :  { %19 = vsyncpa [#allocation8 + $0x1], 0 }
   0x7   :  { %20 = vsyncpa [#allocation11], 0 }
   0x8   :  { %21 = vsyncpa [#allocation14], 0 }
   0x9   :  { %22 = vsyncpa [#allocation17], 0 }
   0xa   :  { %23 = vsyncpa [#allocation9], 0 }
   0xb   :  { %25 = vsyncpa [#allocation9 + $0x1], 0  ;;  %s2589_s21 = smov 0   ;;  %s2591_s22 = smov 0  }
   0xc   :  { %s2593_s23 = smov 0   ;;  %s2595_s24 = smov 0  }
   0xd LB: > { %s2506_s25 = smov [#allocation10]   ;;  %s2610_s27 = sadd.s32 4294967295, %s2504_s24   ;;  %s2504_s24 = sphi %s2595_s24, %s3193_s24   ;;  %s2500_s23 = sphi %s2593_s23, %s3192_s23   ;;  %s2496_s22 = sphi %s2591_s22, %s3191_s22   ;;  %s2492_s21 = sphi %s2589_s21, %s3190_s21  }
   0xe   : > { %s332_s26 = sshll.u32 %s2506_s25, 4  ;;  %p1879_p0 = scmp.ge.s32.totalorder %s2504_s24, 1  ;;  %s2615_s26 = int_to_ptr.vmem [resolvable:$true] %s332_s26 }
   0xf   : > { %p3159_p1 = scmp.eq.s32.totalorder %s2610_s27, 0  ;;  %p319_p2 = scmp.lt.s32.totalorder %s2504_s24, 3 }
  0x10   : > { %s2507_s29 = smov [#allocation13]   ;;  %s2508_s13 = smov [#allocation12]  }
  0x11   : > { %p2617_p3 = pnand %p1879_p0, %p319_p2  ;;  %s360_s30 = sshll.u32 %s2507_s29, 4  ;;  %s2624_s30 = int_to_ptr.vmem [resolvable:$true] %s360_s30 }
  0x12   : > { %s343_s14 = sshll.u32 %s2508_s13, 4  ;;  %s2509_s16 = smov [#allocation15]   ;;  %s2632_s14 = int_to_ptr.vmem [resolvable:$true] %s343_s14 }
  0x13   : > { %s3167_s28 = scalar_select %p2617_p3, 1, 0 }
  0x14   : > { %p2128_p5 = pneg %p2617_p3  ;;  %s2634_s17 = sshll.u32 %s2509_s16, 4  ;;  %s372_s17 = int_to_ptr.vmem [resolvable:$true] %s2634_s17 }
  0x15   : > { %s3169_s1 = sld [smem:[#allocation24_spill]] }
  0x16   : > { %p2628_p6 = pnand %p2128_p5, %p3159_p1 }
  0x18   : > { %p2644_p8 = pneg %p2628_p6 }
  0x1b   : > { %s2256_s20 = scalar_lea.hbm %s3169_s1, 16 }
  0x1c   : > { %p2257_p7 = scmp.ne.s32.totalorder %s3169_s1, %s2256_s20  ;;  %p2263_p11 = scmp.lt.u32.totalorder %s2256_s20, %s3169_s1 }
  0x1e   : > { %p2259_p9 = pnand %p2644_p8, %p2257_p7 }
  0x20   : > { %p2260_p10 = pneg %p2259_p9 }
  0x22   : > { %p2265_p12 = pnand %p2263_p11, %p2260_p10 }
  0x24   : > { %2268 = shalt.err (!%p2265_p12)
}
  0x25   : > { %s2269_s18 = scalar_lea.vmem %s2615_s26, 16  ;;  %s2276_s19 = scalar_lea.vmem %s2615_s26, 32 }
  0x26   : > { %p2270_p13 = scmp.ne.s32.totalorder %s2615_s26, %s2269_s18  ;;  %p2277_p5 = scmp.lt.s32.totalorder %s2615_s26, %s2615_s26 }
  0x27   : > { %p2278_p7 = scmp.lt.s32.totalorder %s2276_s19, %s2269_s18 }
  0x28   : > { %p2272_p0 = pnand %p2270_p13, %p2644_p8 }
  0x29   : > { %p2279_p9 = por %p2278_p7, %p2277_p5 }
  0x2a   : > { %p2273_p2 = pneg %p2272_p0 }
  0x2c   : > { %p2280_p4 = pnand %p2279_p9, %p2273_p2 }
  0x2e   : > { %2283 = shalt.err (!%p2280_p4)
}
  0x2f   : > { %2131 = dma.hbm_to_vmem [thread:$0]  (!%p2628_p6), %s3169_s1, 16, %s2615_s26, [#allocation11]  }
  0x30   : > { %s2284_s16 = scalar_lea.hbm %s3149_s5, 16 }
  0x31   : > { %p2285_p10 = scmp.ne.s32.totalorder %s3149_s5, %s2284_s16  ;;  %p2291_p4 = scmp.lt.u32.totalorder %s2284_s16, %s3149_s5 }
  0x33   : > { %p2287_p11 = pnand %p2285_p10, %p2644_p8 }
  0x35   : > { %p2288_p12 = pneg %p2287_p11 }
  0x37   : > { %p2293_p13 = pnand %p2291_p4, %p2288_p12 }
  0x39   : > { %2296 = shalt.err (!%p2293_p13)
}
  0x3a   : > { %s2297_s26 = scalar_lea.vmem %s2624_s30, 16  ;;  %s2304_s10 = scalar_lea.vmem %s2624_s30, 32 }
  0x3b   : > { %p2298_p0 = scmp.ne.s32.totalorder %s2624_s30, %s2297_s26  ;;  %p2305_p7 = scmp.lt.s32.totalorder %s2624_s30, %s2624_s30 }
  0x3c   : > { %p2306_p9 = scmp.lt.s32.totalorder %s2304_s10, %s2297_s26 }
  0x3d   : > { %p2300_p2 = pnand %p2298_p0, %p2644_p8 }
  0x3e   : > { %p2307_p10 = por %p2306_p9, %p2305_p7 }
  0x3f   : > { %p2301_p5 = pneg %p2300_p2 }
  0x41   : > { %p2308_p11 = pnand %p2307_p10, %p2301_p5 }
  0x43   : > { %2311 = shalt.err (!%p2308_p11)
}
  0x44   : > { %2137 = dma.hbm_to_vmem [thread:$0]  (!%p2628_p6), %s3149_s5, 16, %s2624_s30, [#allocation14]  }
  0x45   : > { %s2312_s29 = scalar_lea.hbm %s3146_s2, 16 }
  0x46   : > { %p2313_p12 = scmp.ne.s32.totalorder %s3146_s2, %s2312_s29  ;;  %p2319_p0 = scmp.lt.u32.totalorder %s2312_s29, %s3146_s2 }
  0x48   : > { %p2315_p4 = pnand %p2313_p12, %p2644_p8 }
  0x4a   : > { %p2316_p13 = pneg %p2315_p4 }
  0x4c   : > { %p2321_p2 = pnand %p2319_p0, %p2316_p13 }
  0x4e   : > { %2324 = shalt.err (!%p2321_p2)
}
  0x4f   : > { %s2325_s30 = scalar_lea.vmem %s2632_s14, 16  ;;  %s2332_s10 = scalar_lea.vmem %s2632_s14, 32 }
  0x50   : > { %p2326_p5 = scmp.ne.s32.totalorder %s2632_s14, %s2325_s30  ;;  %p2333_p10 = scmp.lt.s32.totalorder %s2632_s14, %s2632_s14 }
  0x51   : > { %p2334_p11 = scmp.lt.s32.totalorder %s2332_s10, %s2325_s30 }
  0x52   : > { %p2328_p7 = pnand %p2326_p5, %p2644_p8 }
  0x53   : > { %p2335_p12 = por %p2334_p11, %p2333_p10 }
  0x54   : > { %p2329_p9 = pneg %p2328_p7 }
  0x56   : > { %p2336_p4 = pnand %p2335_p12, %p2329_p9 }
  0x58   : > { %2339 = shalt.err (!%p2336_p4)
}
  0x59   : > { %2134 = dma.hbm_to_vmem [thread:$0]  (!%p2628_p6), %s3146_s2, 16, %s2632_s14, [#allocation11]  }
  0x5a   : > { %s2510_s20 = smov [#allocation16]   ;;  %s2340_s18 = scalar_lea.hbm %s3150_s6, 16 }
  0x5b   : > { %s382_s25 = sshll.u32 %s2510_s20, 4  ;;  %p2341_p13 = scmp.ne.s32.totalorder %s3150_s6, %s2340_s18  ;;  %s383_s25 = int_to_ptr.vmem [resolvable:$true] %s382_s25 }
  0x5c   : > { %p2347_p5 = scmp.lt.u32.totalorder %s2340_s18, %s3150_s6 }
  0x5d   : > { %p2343_p0 = pnand %p2341_p13, %p2644_p8 }
  0x5f   : > { %p2344_p2 = pneg %p2343_p0 }
  0x61   : > { %p2349_p7 = pnand %p2347_p5, %p2344_p2 }
  0x63   : > { %2352 = shalt.err (!%p2349_p7)
}
  0x64   : > { %s2353_s14 = scalar_lea.vmem %s372_s17, 16  ;;  %s2360_s11 = scalar_lea.vmem %s372_s17, 32 }
  0x65   : > { %p2354_p9 = scmp.ne.s32.totalorder %s372_s17, %s2353_s14  ;;  %p2361_p12 = scmp.lt.s32.totalorder %s372_s17, %s372_s17 }
  0x66   : > { %p2362_p4 = scmp.lt.s32.totalorder %s2360_s11, %s2353_s14 }
  0x67   : > { %p2356_p10 = pnand %p2354_p9, %p2644_p8 }
  0x68   : > { %p2363_p1 = por %p2362_p4, %p2361_p12 }
  0x69   : > { %p2357_p11 = pneg %p2356_p10 }
  0x6b   : > { %p2364_p3 = pnand %p2363_p1, %p2357_p11 }
  0x6d   : > { %2367 = shalt.err (!%p2364_p3)
}
  0x6e   : > { %2140 = dma.hbm_to_vmem [thread:$0]  (!%p2628_p6), %s3150_s6, 16, %s372_s17, [#allocation14]  }
  0x6f   : > { %s2368_s18 = scalar_lea.hbm %s3151_s7, 16 }
  0x70   : > { %p2369_p13 = scmp.ne.s32.totalorder %s3151_s7, %s2368_s18  ;;  %p2375_p3 = scmp.lt.u32.totalorder %s2368_s18, %s3151_s7 }
  0x72   : > { %p2371_p0 = pnand %p2369_p13, %p2644_p8 }
  0x74   : > { %p2372_p1 = pneg %p2371_p0 }
  0x76   : > { %p2377_p2 = pnand %p2375_p3, %p2372_p1 }
  0x78   : > { %2380 = shalt.err (!%p2377_p2)
}
  0x79   : > { %s2381_s14 = scalar_lea.vmem %s383_s25, 16  ;;  %s2388_s17 = scalar_lea.vmem %s383_s25, 32 }
  0x7a   : > { %p2382_p5 = scmp.ne.s32.totalorder %s383_s25, %s2381_s14  ;;  %p2389_p10 = scmp.lt.s32.totalorder %s383_s25, %s383_s25 }
  0x7b   : > { %p2390_p11 = scmp.lt.s32.totalorder %s2388_s17, %s2381_s14 }
  0x7c   : > { %p2384_p7 = pnand %p2382_p5, %p2644_p8 }
  0x7d   : > { %p2391_p12 = por %p2390_p11, %p2389_p10 }
  0x7e   : > { %p2385_p9 = pneg %p2384_p7 }
  0x80   : > { %p2392_p4 = pnand %p2391_p12, %p2385_p9 }
  0x82   : > { %2395 = shalt.err (!%p2392_p4)
}
  0x83   : > { %2143 = dma.hbm_to_vmem [thread:$0]  (!%p2628_p6), %s3151_s7, 16, %s383_s25, [#allocation17]  }
  0x84   : > { %s1878_s13 = sadd.s32 4294967294, %s2504_s24   ;;  %s2753_s15 = sadd.s32 1, %s2504_s24  }
  0x85   : > { %s38_s20 = sadd.s32 1, %s2500_s23  ;;  %s35_s29 = ssub.s32 %s2504_s24, %s2753_s15 }
  0x86   : > { %p45_p8 = scmp.ne.s32.totalorder %s2500_s23, %s2496_s22  ;;  %p36_p13 = scmp.eq.s32.totalorder %s35_s29, 0 }
  0x87   : > { %p46_p0 = scmp.eq.s32.totalorder %s2504_s24, 0  ;;  %p51_p1 = scmp.ne.s32.totalorder %s2496_s22, %s2492_s21 }
  0x88   : > { %p306_p3 = scmp.eq.s32.totalorder %s2610_s27, 1  ;;  %p3171_p5 = scmp.eq.s32.totalorder %s2610_s27, 0 }
  0x89   : > { %s2765_s16 = scalar_select %p36_p13, %s2500_s23, %s38_s20  }
  0x8a   : > { %p47_p2 = por %p46_p0, %p45_p8  ;;  %p2769_p7 = por %p3171_p5, %p51_p1 }
  0x8b   : > { %p2773_p6 = por %p306_p3, %p45_p8  ;;  %p312_p9 = scmp.eq.s32.totalorder %s1878_s13, 1 }
  0x8c   : > { %p2157_p10 = scmp.lt.s32.totalorder %s2504_s24, 2  ;;  %s405_s19 = sand.u32 1, %s2500_s23  }
  0x8d   : > { %s3173_s25 = scalar_select %p2773_p6, 1, 0 }
  0x8e   : > { %p2779_p11 = por %p312_p9, %p51_p1  ;;  %s1886_s30 = sshll.u32 %s405_s19, 3 }
  0x8f   : > { %s1887_s10 = sshll.u32 %s2504_s24, 7  ;;  %s409_s12 = scalar_lea.vmem [#allocation7], %s1886_s30 }
  0x90   : > { %s3174_s26 = scalar_select %p2779_p11, 1, 0 }
  0x91   : > { %s2787_s11 = scalar_lea.hbm %s3144_s0, %s1887_s10  ;;  %s416_s20 = sshll.u32 %s409_s12, 4  ;;  %s2793_s20 = int_to_ptr.vmem [resolvable:$true] %s416_s20 }
  0x92   : > { %p2789_p12 = pnand %p2157_p10, %p47_p2  ;;  %s406_s29 = scalar_lea.sflag [#allocation8], %s405_s19 }
  0x93   : > { %s2396_s1 = scalar_lea.hbm %s2787_s11, 128  ;;  %s2401_s14 = scalar_lea.hbm %s3144_s0, 256 }
  0x94   : > { %p2397_p4 = scmp.ne.s32.totalorder %s2787_s11, %s2396_s1  ;;  %p2398_p8 = pneg %p2789_p12 }
  0x95   : > { %p2402_p1 = scmp.lt.u32.totalorder %s2787_s11, %s3144_s0  ;;  %p2403_p3 = scmp.lt.u32.totalorder %s2401_s14, %s2396_s1 }
  0x96   : > { %p2399_p13 = pnand %p2398_p8, %p2397_p4  ;;  %p2405_p5 = scmp.lt.u32.totalorder %s2396_s1, %s2787_s11 }
  0x97   : > { %p2404_p2 = por %p2403_p3, %p2402_p1 }
  0x98   : > { %p2400_p0 = pneg %p2399_p13 }
  0x99   : > { %p2406_p9 = por %p2405_p5, %p2404_p2 }
  0x9b   : > { %p2407_p10 = pnand %p2406_p9, %p2400_p0 }
  0x9d   : > { %2410 = shalt.err (!%p2407_p10)
}
  0x9e   : > { %s2411_s19 = scalar_lea.vmem %s2793_s20, 128  ;;  %s2511_s10 = smov [#allocation7]  }
  0x9f   : > { %p2412_p4 = scmp.ne.s32.totalorder %s2793_s20, %s2411_s19  ;;  %s2416_s30 = sshll.u32 %s2511_s10, 4  ;;  %s2417_s30 = int_to_ptr.vmem [resolvable:$false] %s2416_s30 }
  0xa0   : > { %s2418_s17 = scalar_lea.vmem %s2417_s30, 256  ;;  %p2419_p6 = scmp.lt.s32.totalorder %s2793_s20, %s2417_s30 }
  0xa1   : > { %p2414_p13 = pnand %p2412_p4, %p2398_p8  ;;  %p2420_p1 = scmp.lt.s32.totalorder %s2418_s17, %s2411_s19 }
  0xa3   : > { %p2415_p11 = pneg %p2414_p13  ;;  %p2421_p3 = por %p2420_p1, %p2419_p6 }
  0xa5   : > { %p2422_p2 = pnand %p2421_p3, %p2415_p11 }
  0xa7   : > { %2425 = shalt.err (!%p2422_p2)
}
  0xa8   : > { %2147 = dma.hbm_to_vmem [thread:$0]  (!%p2789_p12), %s2787_s11, 128, %s2793_s20, %s406_s29  }
  0xa9   : > { %p3176_p0 = scmp.ne.s32.totalorder %s3167_s28, 0 }
  0xaa   : > { %s2823_s1 = sand.u32 (!%p3176_p0), 1, %s2496_s22  }
  0xab   : > { %425 = sbr.rel (%p3176_p0) target bundleno = 3474 (0xd92), region = 68  ;;  %s3162_s14 = sshll.u32 (!%p3176_p0), %s2823_s1, 3 }
  0xac   : > { %s428_s12 = scalar_lea.sflag (!%p3176_p0), [#allocation8], %s2823_s1  ;;  %s431_s19 = scalar_lea.vmem (!%p3176_p0), [#allocation7], %s3162_s14 }
  0xb2   : > { %2471 = dma.done.wait (%p2769_p7), %s428_s12, 128  }
  0xb3   : > { %2473 = vsyncadd (%p2769_p7), %s428_s12, 4294967168  ;;  %p3177_p6 = scmp.eq.s32.totalorder %s2610_s27, 0 }
  0xb5   : > { %2475 = dma.done.wait (%p3177_p6), [#allocation11], 32   ;;  %p3178_p11 = pmov %p3177_p6 }
  0xb6   : > { %p3179_p12 = pmov %p3177_p6 }
  0xb7   : > { %2477 = vsyncadd (%p3178_p11), [#allocation11], 4294967264 }
  0xb8   : > { %2479 = dma.done.wait (%p3179_p12), [#allocation14], 32   ;;  %p3180_p8 = pmov %p3177_p6 }
  0xb9   : > { %p3181_p5 = pmov %p3177_p6 }
  0xba   : > { %2481 = vsyncadd (%p3180_p8), [#allocation14], 4294967264 }
  0xbb   : > { %2483 = dma.done.wait (%p3181_p5), [#allocation17], 16   ;;  %p3182_p9 = pmov %p3181_p5 }
  0xbc   : > { %vm496_vm0 = vcmask 261120   ;;  %v493_v0 = vld [vmem:[%s431_s19] sm:$0xff]  ;;  %v2212_v7 = vld [vmem:[%s3147_s3 + $0x4] ss:$8 sps:$4 sm:$0xff]   ;;  %v2512_v10 = vmov 0   ;;  %v2513_v22 = vmov 0.0  }
  0xbd   : > { %2485 = vsyncadd (%p3182_p9), [#allocation17], 4294967280  ;;  %v497_v1 = vsel %vm496_vm0, %v493_v0, 0.0  ;;  %v2214_v8 = vld [vmem:[%s3147_s3] ss:$8 sps:$4 sm:$0xff]   ;;  %553 = vmatprep.subr.bf16.mxu0 %v2212_v7  ;;  %585 = vmatprep.mubr.bf16.mxu0 %v2512_v10  ;;  %vm2514_vm1 = vmmov 0  }
  0xbe   : > { %498 = vadd.xlane.f32.xlu0 %v497_v1  ;;  %v2215_v9 = vld [vmem:[%s3147_s3 + $0x14] ss:$8 sps:$4 sm:$0xff]   ;;  %554 = vmatpush1.bf16.msra.mxu0 %v2214_v8  ;;  %v2217_v11 = vld [vmem:[%s3147_s3 + $0x10] ss:$8 sps:$4 sm:$0xff]   ;;  %v1896_v16 = vld [vmem:[#allocation10] ss:$0 sm:$0xff] }
  0xbf   : > { %555 = vmatprep.subr.bf16.mxu0 %v2215_v9  ;;  %v1897_v18 = vld [vmem:[#allocation12] ss:$0 sm:$0xff]  ;;  %1982 = vmatprep.subr.bf16.mxu1 %v2513_v22  ;;  %vm662_vm2 = vcmask 1043456   ;;  %s2515_s17 = smov 112   ;;  %s2516_s12 = smov 64   ;;  %vm598_vm3 = vcmask 130048  }
  0xc0   : > { %1984 = vmatprep.mubr.msk.bf16.mxu1 %vm2514_vm1, %v2513_v22  ;;  %s2517_s19 = smov 48   ;;  %s2518_s28 = smov 32   ;;  %vm645_vm4 = vcmask 64512   ;;  %vm1390_vm5 = vcmask 125952   ;;  %vm822_vm6 = vcmask 261248   ;;  %vm938_vm7 = vcmask 392448  }
  0xc1   : > { %s2519_s18 = smov 96   ;;  %s2520_s11 = smov 16   ;;  %vm1054_vm8 = vcmask 523648   ;;  %vm1097_vm9 = vcmask 523264  }
  0xc2   : > { %556 = vmatpush1.bf16.msra.mxu0 %v2217_v11  ;;  %s2521_s20 = smov 80   ;;  %s3184_s14 = sld [smem:[#allocation26_spill]] }
  0xc3   : > { %1988 = vmatprep.subr.bf16.mxu0 %v2513_v22  ;;  %s1934_s10 = sshll.u32 %s2610_s27, 7  ;;  %s1747_s27 = scalar_lea.sflag [#allocation9], %s2823_s1 }
  0xc4   : > { %p3187_p10 = scmp.ne.s32.totalorder %s3173_s25, 0  ;;  %s2523_s29 = smov [#allocation18]  }
 0x14b   : > { %v499_v2 = vpop.xlane.xlu0 %498 }
 0x14c   : > { %v501_v3 = vmul.f32 0.03125, %v499_v2 }
 0x14e   : > { %v502_v4 = vsub.f32 %v493_v0, %v501_v3 }
 0x150   : > { %v503_v5 = vmul.f32 %v502_v4, %v502_v4 }
 0x152   : > { %v504_v6 = vsel %vm496_vm0, %v503_v5, 0.0 }
 0x153   : > { %505 = vadd.xlane.f32.xlu0 %v504_v6 }
 0x1e0   : > { %v506_v12 = vpop.xlane.xlu0 %505 }
 0x1e1   : > { %v507_v13 = vmul.f32 0.03125, %v506_v12 }
 0x1e3   : > { %v508_v14 = vadd.f32 1e-05, %v507_v13 }
 0x1e5   : > { %2230 = vrsqrt.f32 %v508_v14 }
 0x1ef   : > { %v2231_v15 = vpop.eup %2230 }
 0x1f0   : > { %v2860_v17 = vmul.f32 %v2231_v15, %v502_v4 }
 0x1f2   : > { %v517_v19 = vmul.f32 %v1896_v16, %v2860_v17 }
 0x1f4   : > { %v524_v20 = vadd.f32 %v1897_v18, %v517_v19 }
 0x1f6   : > { %v525_v21 = vpack.c.bf16 %v524_v20, %v524_v20 }
 0x1f8   : > { %1902 = vmatmul.mubr.msk.bf16.vlgmr.msra.gmra.mrb[0].mxu0 %vm496_vm0, %v525_v21 }
 0x1f9   : > { %1990 = vmatprep.mubr.msk.bf16.mxu0 %vm2514_vm1, %v2513_v22 }
 0x2cb   : > { %v587_v23 = vpop.f32.mrb[0].mxu0 }
 0x2cc   : > { %v594_v24 = vpack.c.bf16 %v587_v23, %v587_v23  ;;  %v589_v25 = vpop.f32.mrb[1].mxu0 }
 0x2cd   : > { %v2870_v26 = vpack.c.bf16 %v589_v25, %v589_v25  ;;  %v591_v27 = vpop.f32.mrb[2].mxu0 }
 0x2ce   : > { %707 = vrot.lane.b32.xlu0 %v594_v24, %s2515_s17  ;;  %596 = vrot.lane.b32.xlu1 %v594_v24, %s2516_s12  ;;  %v592_v28 = vpop.f32.mrb[3].mxu0 }
 0x2cf   : > { %v664_v29 = vsel %vm662_vm2, %v2870_v26, 0 }
 0x2d0   : > { %1989 = vmatpush3.bf16.msra.mxu0 %v664_v29 }
 0x2d1   : > { %2000 = vmatprep.subr.bf16.mxu0 %v2513_v22 }
 0x2d2   : > { %709 = vrot.lane.b32.xlu1 %v594_v24, %s2517_s19 }
 0x2d6   : > { %826 = vrot.lane.b32.xlu1 %v594_v24, %s2518_s28 }
 0x2da   : > { %824 = vrot.lane.b32.xlu1 %v594_v24, %s2519_s18 }
 0x2de   : > { %942 = vrot.lane.b32.xlu1 %v594_v24, %s2520_s11 }
 0x2e2   : > { %940 = vrot.lane.b32.xlu1 %v594_v24, %s2521_s20 }
 0x340   : > { %v597_v30 = vpop.permute.xlu1 %596  ;;  %v708_v35 = vpop.permute.xlu0 %707 }
 0x341   : > { %v603_v31 = vsel %vm598_vm3, %v597_v30, 0 }
 0x342   : > { %1983 = vmatpush3.bf16.xpose.msra.mxu1 %v603_v31 }
 0x343   : > { %1994 = vmatprep.subr.bf16.mxu1 %v2513_v22 }
 0x344   : > { %v710_v32 = vpop.permute.xlu1 %709 }
 0x345   : > { %v715_v33 = vsel %vm598_vm3, %v710_v32, 0 }
 0x348   : > { %v827_v34 = vpop.permute.xlu1 %826 }
 0x349   : > { %1985 = vmatmul.mubr.msk.bf16.vlgmr.msra.gmra.mrb[0].mxu1 %vm598_vm3, %v594_v24  ;;  %v832_v37 = vsel %vm598_vm3, %v827_v34, 0 }
 0x34a   : > { %1995 = vmatpush3.bf16.xpose.msra.mxu1 %v715_v33  ;;  %1996 = vmatprep.mubr.msk.bf16.mxu1 %vm2514_vm1, %v2513_v22 }
 0x34b   : > { %2006 = vmatprep.subr.bf16.mxu1 %v2513_v22 }
 0x34c   : > { %v825_v36 = vpop.permute.xlu1 %824 }
 0x350   : > { %v943_v38 = vpop.permute.xlu1 %942 }
 0x351   : > { %1997 = vmatmul.mubr.msk.bf16.vlgmr.msra.gmra.mrb[4].mxu1 %vm598_vm3, %v708_v35  ;;  %v948_v39 = vsel %vm598_vm3, %v943_v38, 0  ;;  %v2220_v38 = vld [vmem:[%s3152_s8 + $0x4] ss:$8 sps:$4 sm:$0xff]  }
 0x352   : > { %2007 = vmatpush3.bf16.xpose.msra.mxu1 %v832_v37  ;;  %2008 = vmatprep.mubr.msk.bf16.mxu1 %vm2514_vm1, %v2513_v22 }
 0x353   : > { %2018 = vmatprep.subr.bf16.mxu1 %v2513_v22 }
 0x354   : > { %v941_v40 = vpop.permute.xlu1 %940 }
 0x359   : > { %2009 = vmatmul.mubr.msk.bf16.vlgmr.msra.gmra.mrb[8].mxu1 %vm598_vm3, %v825_v36 }
 0x35a   : > { %2019 = vmatpush3.bf16.xpose.msra.mxu1 %v948_v39  ;;  %2020 = vmatprep.mubr.msk.bf16.mxu1 %vm2514_vm1, %v2513_v22 }
 0x35b   : > { %2030 = vmatprep.subr.bf16.mxu1 %v2513_v22 }
 0x361   : > { %2021 = vmatmul.mubr.msk.bf16.vlgmr.msra.gmra.mrb[12].mxu1 %vm598_vm3, %v941_v40 }
 0x362   : > { %2038 = vmatprep.mubr.msk.bf16.mxu1 %vm2514_vm1, %v2513_v22 }
 0x41c   : > { %v639_v41 = vpop.f32.mrb[0].mxu1 }
 0x41d   : > { %v1986_v42 = vpop.f32.mrb[1].mxu1  ;;  %v646_v43 = vsel %vm645_vm4, %v639_v41, -inf }
 0x41e   : > { %647 = vmax.xlane.f32.xlu1 %v646_v43  ;;  %v642_v44 = vpop.f32.mrb[2].mxu1  ;;  %v1917_v42 = vld [vmem:[#allocation15] ss:$0 sm:$0xff] }
 0x41f   : > { %v1987_v45 = vpop.f32.mrb[3].mxu1  ;;  %v2218_v43 = vld [vmem:[%s3152_s8] ss:$8 sps:$4 sm:$0xff]   ;;  %v1149_v44 = vmul.f32 %v1917_v42, %v2860_v17 }
 0x424   : > { %v751_v46 = vpop.f32.mrb[4].mxu1 }
 0x425   : > { %v1998_v47 = vpop.f32.mrb[5].mxu1  ;;  %v757_v48 = vsel %vm645_vm4, %v751_v46, -inf }
 0x426   : > { %758 = vmax.xlane.f32.xlu0 %v757_v48  ;;  %v754_v49 = vpop.f32.mrb[6].mxu1  ;;  %v1918_v47 = vld [vmem:[#allocation16] ss:$0 sm:$0xff]  ;;  %v2221_v48 = vld [vmem:[%s3152_s8 + $0x10] ss:$8 sps:$4 sm:$0xff]  }
 0x427   : > { %v1999_v50 = vpop.f32.mrb[7].mxu1  ;;  %v1156_v49 = vadd.f32 %v1918_v47, %v1149_v44 }
 0x429   : > { %v1157_v50 = vpack.c.bf16 %v1156_v49, %v1156_v49 }
 0x42c   : > { %v868_v51 = vpop.f32.mrb[8].mxu1 }
 0x42d   : > { %v2010_v52 = vpop.f32.mrb[9].mxu1  ;;  %v874_v53 = vsel %vm645_vm4, %v868_v51, -inf }
 0x42e   : > { %875 = vmax.xlane.f32.xlu1 %v874_v53  ;;  %v871_v54 = vpop.f32.mrb[10].mxu1 }
 0x42f   : > { %v2011_v55 = vpop.f32.mrb[11].mxu1 }
 0x434   : > { %v984_v56 = vpop.f32.mrb[12].mxu1 }
 0x435   : > { %v2022_v57 = vpop.f32.mrb[13].mxu1  ;;  %v990_v58 = vsel %vm645_vm4, %v984_v56, -inf }
 0x436   : > { %991 = vmax.xlane.f32.xlu0 %v990_v58  ;;  %v987_v59 = vpop.f32.mrb[14].mxu1 }
 0x437   : > { %v2023_v60 = vpop.f32.mrb[15].mxu1  ;;  %v1164_v59 = vlaneseq }
 0x4ab   : > { %v648_v61 = vpop.xlane.xlu1 %647 }
 0x4ac   : > { %v649_v62 = vsub.f32 %v639_v41, %v648_v61 }
 0x4ae   : > { %v650_v63 = vmul.f32 1.442695, %v649_v62  ;;  %v1165_v62 = vshrl.u32 %v1164_v59, 7 }
 0x4b0   : > { %2232 = vpow2.f32 %v650_v63  ;;  %v2522_v63 = vmov 1966171168  }
 0x4b3   : > { %v759_v0 = vpop.xlane.xlu0 %758 }
 0x4b4   : > { %v760_v1 = vsub.f32 %v751_v46, %v759_v0  ;;  %v2223_v46 = vld [vmem:[%s3152_s8 + $0x14] ss:$8 sps:$4 sm:$0xff]   ;;  %v1241_v0 = vunpack.c.l.s4 %v2522_v63 }
 0x4b6   : > { %v761_v2 = vmul.f32 1.442695, %v760_v1 }
 0x4b8   : > { %2234 = vpow2.f32 %v761_v2 }
 0x4ba   : > { %v2233_v3 = vpop.eup %2232 }
 0x4bb   : > { %v652_v4 = vsel %vm645_vm4, %v2233_v3, 0.0  ;;  %v876_v13 = vpop.xlane.xlu1 %875 }
 0x4bc   : > { %653 = vadd.xlane.f32.xlu1 %v652_v4  ;;  %v877_v14 = vsub.f32 %v868_v51, %v876_v13  ;;  %v2224_v13 = vld [vmem:[%s3148_s4] sm:$0xff]  }
 0x4bd   : > { %2031 = vmatpush3.bf16.msra.mxu1 %v2224_v13 }
 0x4be   : > { %v878_v15 = vmul.f32 1.442695, %v877_v14  ;;  %2032 = vmatprep.subr.bf16.mxu1 %v2513_v22 }
 0x4c2   : > { %v2235_v5 = vpop.eup %2234 }
 0x4c3   : > { %v992_v6 = vpop.xlane.xlu0 %991  ;;  %v763_v7 = vsel %vm645_vm4, %v2235_v5, 0.0 }
 0x4c4   : > { %v993_v8 = vsub.f32 %v984_v56, %v992_v6  ;;  %764 = vadd.xlane.f32.xlu0 %v763_v7  ;;  %v1242_v7 = vunpack.c.0.s8 %v1241_v0 }
 0x4c6   : > { %v994_v9 = vmul.f32 1.442695, %v993_v8 }
 0x4c8   : > { %2236 = vpow2.f32 %v994_v9  ;;  %v1170_v9 = vsub.s32 1, %v1165_v62 }
 0x4c9   : > { %2238 = vpow2.f32 %v878_v15 }
 0x4cd   : > { %770 = vrot.lane.b32.xlu1 %v2870_v26, %s2515_s17 }
 0x4d2   : > { %v2237_v11 = vpop.eup %2236 }
 0x4d3   : > { %v996_v12 = vsel %vm645_vm4, %v2237_v11, 0.0  ;;  %v2239_v16 = vpop.eup %2238 }
 0x4d4   : > { %997 = vadd.xlane.f32.xlu0 %v996_v12  ;;  %v880_v18 = vsel %vm645_vm4, %v2239_v16, 0.0 }
 0x4ea   : > { %886 = vrot.lane.b32.xlu0 %v2870_v26, %s2519_s18 }
 0x4f1   : > { %881 = vadd.xlane.f32.xlu1 %v880_v18 }
 0x502   : > { %1002 = vrot.lane.b32.xlu1 %v2870_v26, %s2521_s20 }
 0x549   : > { %v654_v19 = vpop.xlane.xlu1 %653 }
 0x54a   : > { %2240 = vrcp.f32 %v654_v19 }
 0x54d   : > { %v771_v24 = vpop.permute.xlu1 %770 }
 0x54e   : > { %v776_v27 = vsel %vm662_vm2, %v771_v24, 0  ;;  %v2225_v24 = vld [vmem:[%s3148_s4 + $0x8] sm:$0xff]  }
 0x54f   : > { %2033 = vmatpush3.bf16.msra.mxu1 %v2225_v24 }
 0x550   : > { %2034 = vmatprep.subr.bf16.mxu1 %v2513_v22 }
 0x551   : > { %v765_v20 = vpop.xlane.xlu0 %764 }
 0x552   : > { %2242 = vrcp.f32 %v765_v20 }
 0x554   : > { %v2241_v21 = vpop.eup %2240 }
 0x555   : > { %v656_v23 = vmul.f32 %v2241_v21, %v2233_v3  ;;  %v1166_v3 = vsub.s32 0, %v1165_v62 }
 0x557   : > { %v657_v25 = vpack.c.bf16 %v656_v23, %v656_v23 }
 0x559   : > { %1991 = vmatmul.mubr.msk.bf16.vlgmr.msra.gmra.mrb[4].mxu0 %vm645_vm4, %v657_v25 }
 0x55a   : > { %2001 = vmatpush3.bf16.msra.mxu0 %v776_v27  ;;  %2002 = vmatprep.mubr.msk.bf16.mxu0 %vm2514_vm1, %v2513_v22 }
 0x55b   : > { %2012 = vmatprep.subr.bf16.mxu0 %v2513_v22 }
 0x55c   : > { %v2243_v28 = vpop.eup %2242 }
 0x55d   : > { %v767_v26 = vmul.f32 %v2243_v28, %v2235_v5  ;;  %v1162_v5 = vld [vmem:[%s3153_s9] sm:$0x3] }
 0x55e   : > { %v1167_v8 = vrot.slane %v1162_v5, %v1166_v3 }
 0x55f   : > { %v768_v29 = vpack.c.bf16 %v767_v26, %v767_v26 }
 0x561   : > { %v998_v30 = vpop.xlane.xlu0 %997  ;;  %2003 = vmatmul.mubr.msk.bf16.vlgmr.msra.gmra.mrb[8].mxu0 %vm645_vm4, %v768_v29 }
 0x562   : > { %2014 = vmatprep.mubr.msk.bf16.mxu0 %vm2514_vm1, %v2513_v22 }
 0x565   : > { %v887_v31 = vpop.permute.xlu0 %886 }
 0x566   : > { %v892_v32 = vsel %vm662_vm2, %v887_v31, 0 }
 0x567   : > { %2013 = vmatpush3.bf16.msra.mxu0 %v892_v32  ;;  %v2226_v32 = vld [vmem:[%s3148_s4 + $0x10] sm:$0xff]  }
 0x568   : > { %2024 = vmatprep.subr.bf16.mxu0 %v2513_v22  ;;  %2035 = vmatpush3.bf16.msra.mxu1 %v2226_v32 }
 0x569   : > { %2036 = vmatprep.subr.bf16.mxu1 %v2513_v22 }
 0x57e   : > { %v882_v33 = vpop.xlane.xlu1 %881 }
 0x57f   : > { %2244 = vrcp.f32 %v882_v33 }
 0x580   : > { %2246 = vrcp.f32 %v998_v30 }
 0x582   : > { %v1003_v36 = vpop.permute.xlu1 %1002 }
 0x583   : > { %v1008_v40 = vsel %vm662_vm2, %v1003_v36, 0 }
 0x589   : > { %v2245_v34 = vpop.eup %2244 }
 0x58a   : > { %v884_v35 = vmul.f32 %v2245_v34, %v2239_v16  ;;  %v2247_v39 = vpop.eup %2246  ;;  %v1171_v16 = vrot.slane %v1162_v5, %v1170_v9  ;;  %v2227_v34 = vld [vmem:[%s3148_s4 + $0x18] sm:$0xff]  }
 0x58b   : > { %v1000_v41 = vmul.f32 %v2247_v39, %v2237_v11  ;;  %v1245_v11 = vsub.s32 %v1242_v7, %v1165_v62  ;;  %2037 = vmatpush3.bf16.msra.mxu1 %v2227_v34 }
 0x58c   : > { %v885_v37 = vpack.c.bf16 %v884_v35, %v884_v35  ;;  %2054 = vmatprep.subr.bf16.mxu1 %v2513_v22 }
 0x58d   : > { %v1001_v45 = vpack.c.bf16 %v1000_v41, %v1000_v41 }
 0x58e   : > { %2015 = vmatmul.mubr.msk.bf16.vlgmr.msra.gmra.mrb[12].mxu0 %vm645_vm4, %v885_v37 }
 0x58f   : > { %2025 = vmatpush3.bf16.msra.mxu0 %v1008_v40  ;;  %2026 = vmatprep.mubr.msk.bf16.mxu0 %vm2514_vm1, %v2513_v22 }
 0x590   : > { %1197 = vmatprep.subr.bf16.mxu0 %v2220_v38 }
 0x596   : > { %2027 = vmatmul.mubr.msk.bf16.vlgmr.msra.gmra.mrb[16].mxu0 %vm645_vm4, %v1001_v45 }
 0x597   : > { %1198 = vmatpush1.bf16.msra.mxu0 %v2218_v43  ;;  %1229 = vmatprep.mubr.bf16.mxu0 %v2512_v10 }
 0x598   : > { %1199 = vmatprep.subr.bf16.mxu0 %v2223_v46 }
 0x59b   : > { %1200 = vmatpush1.bf16.msra.mxu0 %v2221_v48 }
 0x59c   : > { %2042 = vmatprep.subr.bf16.mxu0 %v2513_v22 }
 0x59e   : > { %1923 = vmatmul.mubr.msk.bf16.vlgmr.msra.gmra.mrb[20].mxu0 %vm496_vm0, %v1157_v50 }
 0x59f   : > { %2050 = vmatprep.mubr.msk.bf16.mxu0 %vm2514_vm1, %v2513_v22 }
 0x62c   : > { %v700_v17 = vpop.f32.mrb[4].mxu0 }
 0x62d   : > { %706 = vst.msk [vmem:[#allocation2] sm:$0xff] %vm598_vm3, %v700_v17  ;;  %v1992_v51 = vpop.f32.mrb[5].mxu0 }
 0x62e   : > { %v703_v52 = vpop.f32.mrb[6].mxu0 }
 0x62f   : > { %v1993_v53 = vpop.f32.mrb[7].mxu0 }
 0x634   : > { %v812_v54 = vpop.f32.mrb[8].mxu0 }
 0x635   : > { %v2004_v55 = vpop.f32.mrb[9].mxu0 }
 0x636   : > { %v815_v10 = vpop.f32.mrb[10].mxu0 }
 0x637   : > { %v2005_v56 = vpop.f32.mrb[11].mxu0 }
 0x661   : > { %v928_v57 = vpop.f32.mrb[12].mxu0 }
 0x662   : > { %v2016_v58 = vpop.f32.mrb[13].mxu0 }
 0x663   : > { %v931_v60 = vpop.f32.mrb[14].mxu0 }
 0x664   : > { %v2017_v61 = vpop.f32.mrb[15].mxu0 }
 0x669   : > { %v1044_v1 = vpop.f32.mrb[16].mxu0 }
 0x66a   : > { %v2028_v2 = vpop.f32.mrb[17].mxu0 }
 0x66b   : > { %v1047_v4 = vpop.f32.mrb[18].mxu0 }
 0x66c   : > { %v2029_v6 = vpop.f32.mrb[19].mxu0 }
 0x671   : > { %v1231_v12 = vpop.f32.mrb[20].mxu0 }
 0x672   : > { %v1232_v14 = vadd.f32 %v1231_v12, %v1167_v8  ;;  %v1233_v15 = vpop.f32.mrb[21].mxu0 }
 0x673   : > { %v1235_v18 = vpop.f32.mrb[22].mxu0  ;;  %v1234_v30 = vadd.f32 %v1233_v15, %v1171_v16 }
 0x674   : > { %v1239_v19 = vcombine.high %v1232_v14, %v1232_v14  ;;  %v1246_v20 = vrot.slane %v1232_v14, %v1245_v11  ;;  %v1236_v21 = vpop.f32.mrb[23].mxu0  ;;  %1328 = vrot.lane.b32.xlu1 %v1232_v14, %s2519_s18  ;;  %v2957_v23 = vpack.c.bf16 %v1232_v14, %v1232_v14 }
 0x676   : > { %v1253_v25 = vrot.slane %v1239_v19, %v1245_v11  ;;  %v1254_v27 = vcombine.high %v1246_v20, %v1246_v20  ;;  %1387 = vrot.lane.b32.xlu0 %v2957_v23, %s2516_s12  ;;  %v1262_v28 = vrot.slane %v1246_v20, %v1245_v11 }
 0x678   : > { %v1255_v26 = vcombine.high %v1253_v25, %v1253_v25  ;;  %v1269_v29 = vrot.slane %v1253_v25, %v1245_v11  ;;  %v1276_v31 = vrot.slane %v1254_v27, %v1245_v11  ;;  %v1284_v37 = vcombine.high %v1262_v28, %v1262_v28 }
 0x679   : > { %v1291_v44 = vrot.slane %v1262_v28, %v1166_v3 }
 0x67a   : > { %v1283_v33 = vrot.slane %v1255_v26, %v1245_v11  ;;  %1348 = vrot.lane.b32.xlu0 %v1234_v30, %s2519_s18  ;;  %v1285_v35 = vcombine.high %v1269_v29, %v1269_v29  ;;  %v1286_v38 = vcombine.high %v1276_v31, %v1276_v31  ;;  %v1307_v39 = vrot.slane %v1269_v29, %v1166_v3  ;;  %s3186_s18 = sld [smem:[#allocation27_spill]] }
 0x67b   : > { %v1295_v45 = vrot.slane %v1276_v31, %v1166_v3  ;;  %v1299_v46 = vrot.slane %v1284_v37, %v1166_v3 }
 0x67c   : > { %v1287_v36 = vcombine.high %v1283_v33, %v1283_v33  ;;  %v1311_v40 = vrot.slane %v1283_v33, %v1166_v3  ;;  %v1315_v41 = vrot.slane %v1285_v35, %v1166_v3  ;;  %v1303_v47 = vrot.slane %v1286_v38, %v1166_v3 }
 0x67e   : > { %819 = vrot.lane.b32.xlu0 %v812_v54, %s2520_s11  ;;  %v1319_v42 = vrot.slane %v1287_v36, %v1166_v3 }
 0x680   : > { %s3099_s20 = scalar_lea.hbm %s3186_s18, %s1934_s10 }
 0x682   : > { %935 = vrot.lane.b32.xlu0 %v928_v57, %s2518_s28 }
 0x686   : > { %1051 = vrot.lane.b32.xlu0 %v1044_v1, %s2517_s19 }
 0x6e6   : > { %v1329_v43 = vpop.permute.xlu1 %1328 }
 0x6e7   : > { %v1335_v48 = vmul.f32 %v1329_v43, %v1307_v39  ;;  %v1336_v49 = vmul.f32 %v1329_v43, %v1311_v40  ;;  %v1337_v50 = vmul.f32 %v1329_v43, %v1315_v41  ;;  %v1338_v17 = vmul.f32 %v1329_v43, %v1319_v42 }
 0x6e8   : > { %v1388_v51 = vpop.permute.xlu0 %1387  ;;  %v1331_v52 = vmul.f32 %v1329_v43, %v1291_v44  ;;  %v1333_v53 = vmul.f32 %v1329_v43, %v1299_v46  ;;  %v1332_v54 = vmul.f32 %v1329_v43, %v1295_v45  ;;  %v1334_v55 = vmul.f32 %v1329_v43, %v1303_v47 }
 0x6e9   : > { %v2978_v10 = vpack.c.bf16 %v1336_v49, %v1335_v48  ;;  %v2980_v56 = vpack.c.bf16 %v1338_v17, %v1337_v50  ;;  %1391 = vst.msk [vmem:[#allocation6] sm:$0xf] %vm1390_vm5, %v1388_v51 }
 0x6ea   : > { %v2983_v57 = vpack.c.bf16 %v1332_v54, %v1331_v52  ;;  %v2985_v58 = vpack.c.bf16 %v1334_v55, %v1333_v53 }
 0x6eb   : > { %1345 = vst.msk [vmem:[#allocation4 + $0x10] sm:$0xff] %vm598_vm3, %v2978_v10  ;;  %1346 = vst.msk [vmem:[#allocation4 + $0x18] sm:$0xff] %vm598_vm3, %v2980_v56 }
 0x6ec   : > { %v1349_v59 = vpop.permute.xlu0 %1348  ;;  %1343 = vst.msk [vmem:[#allocation4] sm:$0xff] %vm598_vm3, %v2983_v57  ;;  %1344 = vst.msk [vmem:[#allocation4 + $0x8] sm:$0xff] %vm598_vm3, %v2985_v58 }
 0x6ed   : > { %v1351_v60 = vadd.f32 %v1349_v59, %v1291_v44  ;;  %v1352_v61 = vadd.f32 %v1349_v59, %v1295_v45  ;;  %v1353_v62 = vadd.f32 %v1349_v59, %v1299_v46  ;;  %v1354_v63 = vadd.f32 %v1349_v59, %v1303_v47 }
 0x6ee   : > { %v1357_v0 = vadd.f32 %v1349_v59, %v1315_v41  ;;  %v1358_v1 = vadd.f32 %v1349_v59, %v1319_v42  ;;  %v1355_v2 = vadd.f32 %v1349_v59, %v1307_v39  ;;  %v1356_v3 = vadd.f32 %v1349_v59, %v1311_v40 }
 0x6ef   : > { %v2995_v4 = vpack.c.bf16 %v1352_v61, %v1351_v60  ;;  %v1360_v5 = vpack.c.bf16 %v1354_v63, %v1353_v62 }
 0x6f0   : > { %v820_v6 = vpop.permute.xlu0 %819  ;;  %v2997_v7 = vpack.c.bf16 %v1358_v1, %v1357_v0  ;;  %v2999_v8 = vpack.c.bf16 %v1356_v3, %v1355_v2  ;;  %v1392_v25 = vld [vmem:[#allocation6] sm:$0xf] }
 0x6f1   : > { %823 = vst.msk [vmem:[#allocation2] sm:$0xff] %vm822_vm6, %v820_v6  ;;  %1367 = vrot.lane.b32.xlu0 %v2995_v4, %s2518_s28 }
 0x6f2   : > { %v1395_v19 = vld [vmem:[#allocation4 + $0x10] sm:$0xff]  ;;  %v1396_v21 = vld [vmem:[#allocation4 + $0x18] sm:$0xff] }
 0x6f3   : > { %v1393_v9 = vld [vmem:[#allocation4] sm:$0xff]  ;;  %v1394_v14 = vld [vmem:[#allocation4 + $0x8] sm:$0xff]  ;;  %v1407_v20 = vsel %vm598_vm3, %v1395_v19, 0  ;;  %v1410_v24 = vsel %vm598_vm3, %v1396_v21, 0 }
 0x6f4   : > { %v936_v11 = vpop.permute.xlu0 %935  ;;  %v1401_v12 = vsel %vm598_vm3, %v1393_v9, 0  ;;  %v1404_v15 = vsel %vm598_vm3, %v1394_v14, 0 }
 0x6f5   : > { %939 = vst.msk [vmem:[#allocation2] sm:$0xff] %vm938_vm7, %v936_v11  ;;  %2043 = vmatpush3.bf16.xpose.msra.mxu0 %v1401_v12 }
 0x6f6   : > { %2044 = vmatprep.subr.bf16.mxu0 %v2513_v22 }
 0x6f8   : > { %v1052_v13 = vpop.permute.xlu0 %1051 }
 0x6f9   : > { %1055 = vst.msk [vmem:[#allocation2] sm:$0xff] %vm1054_vm8, %v1052_v13 }
 0x6fd   : > { %2045 = vmatpush3.bf16.xpose.msra.mxu0 %v1404_v15 }
 0x6fe   : > { %2046 = vmatprep.subr.bf16.mxu0 %v2513_v22 }
 0x700   : > { %v1056_v16 = vld [vmem:[#allocation2] sm:$0xff] }
 0x701   : > { %v1057_v18 = vpack.c.bf16 %v1056_v16, %v1056_v16 }
 0x703   : > { %2039 = vmatmul.mubr.msk.bf16.vlgmr.msra.gmra.mrb[16].mxu1 %vm1097_vm9, %v1057_v18 }
 0x704   : > { %2062 = vmatprep.mubr.msk.bf16.mxu1 %vm2514_vm1, %v2513_v22 }
 0x705   : > { %2047 = vmatpush3.bf16.xpose.msra.mxu0 %v1407_v20 }
 0x706   : > { %2048 = vmatprep.subr.bf16.mxu0 %v2513_v22 }
 0x70d   : > { %2049 = vmatpush3.bf16.xpose.msra.mxu0 %v1410_v24 }
 0x70e   : > { %2078 = vmatprep.subr.bf16.mxu0 %v2513_v22 }
 0x714   : > { %2051 = vmatmul.mubr.msk.bf16.vlgmr.msra.gmra.mrb[24].mxu0 %vm598_vm3, %v1392_v25 }
 0x715   : > { %2086 = vmatprep.mubr.msk.bf16.mxu0 %vm2514_vm1, %v2513_v22 }
 0x763   : > { %v1368_v27 = vpop.permute.xlu0 %1367 }
 0x764   : > { %1379 = vst.msk [vmem:[#allocation5] sm:$0xff] %vm598_vm3, %v1368_v27 }
 0x76b   : > { %v1464_v28 = vld [vmem:[#allocation5] sm:$0xff] }
 0x76c   : > { %2055 = vmatpush3.bf16.msra.mxu1 %v1464_v28 }
 0x76d   : > { %2056 = vmatprep.subr.bf16.mxu1 %v2513_v22 }
 0x7e7   : > { %v1446_v26 = vpop.f32.mrb[24].mxu0 }
 0x7e8   : > { %v2052_v29 = vpop.f32.mrb[25].mxu0  ;;  %v1452_v30 = vsel %vm1097_vm9, %v1446_v26, -inf }
 0x7e9   : > { %1453 = vmax.xlane.f32.xlu1 %v1452_v30  ;;  %v1449_v31 = vpop.f32.mrb[26].mxu0 }
 0x7ea   : > { %v2053_v32 = vpop.f32.mrb[27].mxu0 }
 0x7fa   : > { %1369 = vrot.lane.b32.xlu1 %v1360_v5, %s2518_s28 }
 0x7fe   : > { %1373 = vrot.lane.b32.xlu1 %v2997_v7, %s2518_s28 }
 0x802   : > { %1516 = vrot.lane.b32.xlu1 %v2983_v57, %s2515_s17 }
 0x806   : > { %1518 = vrot.lane.b32.xlu1 %v2985_v58, %s2515_s17 }
 0x80a   : > { %1520 = vrot.lane.b32.xlu1 %v2978_v10, %s2515_s17 }
 0x80e   : > { %1522 = vrot.lane.b32.xlu1 %v2980_v56, %s2515_s17 }
 0x812   : > { %1548 = vrot.lane.b32.xlu1 %v2957_v23, %s2517_s19 }
 0x816   : > { %1534 = vrot.lane.b32.xlu1 %v1360_v5, %s2520_s11 }
 0x876   : > { %v1454_v33 = vpop.xlane.xlu1 %1453 }
 0x877   : > { %v1455_v34 = vsub.f32 %v1446_v26, %v1454_v33 }
 0x879   : > { %v1456_v35 = vmul.f32 1.442695, %v1455_v34  ;;  %v1911_v34 = vld [vmem:[#allocation13] ss:$0 sm:$0xff] }
 0x87a   : > { %v1370_v36 = vpop.permute.xlu1 %1369 }
 0x87b   : > { %2248 = vpow2.f32 %v1456_v35  ;;  %1380 = vst.msk [vmem:[#allocation5 + $0x8] sm:$0xff] %vm598_vm3, %v1370_v36 }
 0x87e   : > { %v1374_v37 = vpop.permute.xlu1 %1373 }
 0x87f   : > { %1382 = vst.msk [vmem:[#allocation5 + $0x18] sm:$0xff] %vm598_vm3, %v1374_v37 }
 0x882   : > { %v1517_v38 = vpop.permute.xlu1 %1516  ;;  %v1465_v39 = vld [vmem:[#allocation5 + $0x8] sm:$0xff] }
 0x883   : > { %1528 = vst.msk [vmem:[#allocation4] sm:$0xff] %vm598_vm3, %v1517_v38  ;;  %2057 = vmatpush3.bf16.msra.mxu1 %v1465_v39 }
 0x884   : > { %2058 = vmatprep.subr.bf16.mxu1 %v2513_v22 }
 0x885   : > { %v2249_v23 = vpop.eup %2248 }
 0x886   : > { %v1519_v40 = vpop.permute.xlu1 %1518  ;;  %v1458_v41 = vsel %vm1097_vm9, %v2249_v23, 0.0  ;;  %v1467_v17 = vld [vmem:[#allocation5 + $0x18] sm:$0xff] }
 0x887   : > { %1529 = vst.msk [vmem:[#allocation4 + $0x8] sm:$0xff] %vm598_vm3, %v1519_v40  ;;  %1459 = vadd.xlane.f32.xlu0 %v1458_v41 }
 0x88a   : > { %v1521_v42 = vpop.permute.xlu1 %1520  ;;  %v1553_v52 = vld [vmem:[#allocation4] sm:$0xff] }
 0x88b   : > { %1530 = vst.msk [vmem:[#allocation4 + $0x10] sm:$0xff] %vm598_vm3, %v1521_v42  ;;  %v1561_v53 = vsel %vm598_vm3, %v1553_v52, 0 }
 0x88e   : > { %v1523_v43 = vpop.permute.xlu1 %1522  ;;  %v1554_v54 = vld [vmem:[#allocation4 + $0x8] sm:$0xff] }
 0x88f   : > { %1531 = vst.msk [vmem:[#allocation4 + $0x18] sm:$0xff] %vm598_vm3, %v1523_v43  ;;  %v1564_v55 = vsel %vm598_vm3, %v1554_v54, 0 }
 0x892   : > { %v1549_v44 = vpop.permute.xlu1 %1548  ;;  %v1555_v10 = vld [vmem:[#allocation4 + $0x10] sm:$0xff] }
 0x893   : > { %1551 = vst.msk [vmem:[#allocation6] sm:$0xf] %vm1390_vm5, %v1549_v44  ;;  %v1567_v56 = vsel %vm598_vm3, %v1555_v10, 0 }
 0x896   : > { %v1535_v45 = vpop.permute.xlu1 %1534  ;;  %v1556_v57 = vld [vmem:[#allocation4 + $0x18] sm:$0xff] }
 0x897   : > { %1545 = vst.msk [vmem:[#allocation5 + $0x8] sm:$0xff] %vm598_vm3, %v1535_v45  ;;  %v1570_v58 = vsel %vm598_vm3, %v1556_v57, 0 }
 0x89a   : > { %v1552_v59 = vld [vmem:[#allocation6] sm:$0xf] }
 0x89d   : > { %1371 = vrot.lane.b32.xlu0 %v2999_v8, %s2518_s28  ;;  %s3183_s28 = sld [smem:[#allocation25_spill]] }
 0x89e   : > { %v1625_v16 = vld [vmem:[#allocation5 + $0x8] sm:$0xff] }
 0x8a3   : > { %v2228_v27 = vld [vmem:[%s3183_s28] sm:$0xff]  }
 0x914   : > { %v1460_v46 = vpop.xlane.xlu0 %1459 }
 0x915   : > { %2250 = vrcp.f32 %v1460_v46 }
 0x918   : > { %v1372_v47 = vpop.permute.xlu0 %1371 }
 0x919   : > { %1381 = vst.msk [vmem:[#allocation5 + $0x10] sm:$0xff] %vm598_vm3, %v1372_v47 }
 0x91f   : > { %v2251_v48 = vpop.eup %2250 }
 0x920   : > { %v1466_v49 = vld [vmem:[#allocation5 + $0x10] sm:$0xff]  ;;  %v1462_v50 = vmul.f32 %v2251_v48, %v2249_v23 }
 0x921   : > { %2059 = vmatpush3.bf16.msra.mxu1 %v1466_v49 }
 0x922   : > { %2060 = vmatprep.subr.bf16.mxu1 %v2513_v22  ;;  %v1463_v51 = vpack.c.bf16 %v1462_v50, %v1462_v50 }
 0x925   : > { %2061 = vmatpush3.bf16.msra.mxu1 %v1467_v17 }
 0x926   : > { %2066 = vmatprep.subr.bf16.mxu1 %v2513_v22 }
 0x928   : > { %2063 = vmatmul.mubr.msk.bf16.vlgmr.msra.gmra.mrb[20].mxu1 %vm1097_vm9, %v1463_v51 }
 0x929   : > { %2074 = vmatprep.mubr.msk.bf16.mxu1 %vm2514_vm1, %v2513_v22 }
 0x92e   : > { %2067 = vmatpush3.bf16.xpose.msra.mxu1 %v1561_v53 }
 0x92f   : > { %2068 = vmatprep.subr.bf16.mxu1 %v2513_v22 }
 0x936   : > { %2069 = vmatpush3.bf16.xpose.msra.mxu1 %v1564_v55 }
 0x937   : > { %2070 = vmatprep.subr.bf16.mxu1 %v2513_v22 }
 0x93e   : > { %2071 = vmatpush3.bf16.xpose.msra.mxu1 %v1567_v56 }
 0x93f   : > { %2072 = vmatprep.subr.bf16.mxu1 %v2513_v22 }
 0x946   : > { %2073 = vmatpush3.bf16.xpose.msra.mxu1 %v1570_v58 }
 0x947   : > { %2090 = vmatprep.subr.bf16.mxu1 %v2513_v22 }
 0x94d   : > { %2075 = vmatmul.mubr.msk.bf16.vlgmr.msra.gmra.mrb[24].mxu1 %vm598_vm3, %v1552_v59 }
 0x94e   : > { %2094 = vmatprep.mubr.msk.bf16.mxu1 %vm2514_vm1, %v2513_v22  ;;  %2091 = vmatpush3.bf16.msra.mxu1 %v2228_v27 }
 0x94f   : > { %2092 = vmatprep.subr.bf16.mxu1 %v2513_v22 }
 0x9fb   : > { %v1505_v60 = vpop.f32.mrb[20].mxu1 }
 0x9fc   : > { %1511 = vst.msk [vmem:[#allocation3] sm:$0xff] %vm598_vm3, %v1505_v60  ;;  %v2064_v61 = vpop.f32.mrb[21].mxu1 }
 0x9fd   : > { %v1508_v62 = vpop.f32.mrb[22].mxu1 }
 0x9fe   : > { %v2065_v63 = vpop.f32.mrb[23].mxu1 }
 0xa20   : > { %v1606_v0 = vpop.f32.mrb[24].mxu1 }
 0xa21   : > { %v2076_v1 = vpop.f32.mrb[25].mxu1  ;;  %v1612_v2 = vsel %vm1097_vm9, %v1606_v0, -inf }
 0xa22   : > { %1613 = vmax.xlane.f32.xlu0 %v1612_v2  ;;  %v1609_v3 = vpop.f32.mrb[26].mxu1 }
 0xa23   : > { %v2077_v5 = vpop.f32.mrb[27].mxu1 }
 0xa38   : > { %1532 = vrot.lane.b32.xlu0 %v2995_v4, %s2520_s11 }
 0xa3c   : > { %1536 = vrot.lane.b32.xlu0 %v2999_v8, %s2520_s11 }
 0xaaf   : > { %v1614_v6 = vpop.xlane.xlu0 %1613 }
 0xab0   : > { %v1615_v9 = vsub.f32 %v1606_v0, %v1614_v6 }
 0xab2   : > { %v1616_v11 = vmul.f32 1.442695, %v1615_v9 }
 0xab3   : > { %v1533_v12 = vpop.permute.xlu0 %1532 }
 0xab4   : > { %2252 = vpow2.f32 %v1616_v11  ;;  %1544 = vst.msk [vmem:[#allocation5] sm:$0xff] %vm598_vm3, %v1533_v12 }
 0xab7   : > { %v1537_v13 = vpop.permute.xlu0 %1536 }
 0xab8   : > { %1546 = vst.msk [vmem:[#allocation5 + $0x10] sm:$0xff] %vm598_vm3, %v1537_v13 }
 0xabb   : > { %v1624_v14 = vld [vmem:[#allocation5] sm:$0xff] }
 0xabc   : > { %2079 = vmatpush3.bf16.msra.mxu0 %v1624_v14 }
 0xabd   : > { %2080 = vmatprep.subr.bf16.mxu0 %v2513_v22 }
 0xabe   : > { %v2253_v15 = vpop.eup %2252 }
 0xabf   : > { %v1618_v4 = vsel %vm1097_vm9, %v2253_v15, 0.0  ;;  %v1626_v8 = vld [vmem:[#allocation5 + $0x10] sm:$0xff] }
 0xac0   : > { %1619 = vadd.xlane.f32.xlu1 %v1618_v4  ;;  %2081 = vmatpush3.bf16.msra.mxu0 %v1625_v16 }
 0xac1   : > { %2082 = vmatprep.subr.bf16.mxu0 %v2513_v22 }
 0xac4   : > { %2083 = vmatpush3.bf16.msra.mxu0 %v1626_v8 }
 0xac5   : > { %2084 = vmatprep.subr.bf16.mxu0 %v2513_v22  ;;  %v1929_v22 = vld [vmem:[%s3184_s14] ss:$0 sm:$0xff]  ;;  %s2430_s14 = sshll.u32 %s2523_s29, 4  ;;  %s2431_s14 = int_to_ptr.vmem [resolvable:$false] %s2430_s14 }
 0xac6   : > { %v2098_v35 = vadd.f32 %v1929_v22, %v1911_v34  ;;  %s2432_s10 = scalar_lea.vmem %s2431_s14, 256 }
 0xad1   : > { %1538 = vrot.lane.b32.xlu1 %v2997_v7, %s2520_s11  ;;  %v2229_v7 = vld [vmem:[%s3183_s28 + $0x8] sm:$0xff]  }
 0xad2   : > { %2093 = vmatpush3.bf16.msra.mxu1 %v2229_v7 }
 0xb4d   : > { %v1620_v18 = vpop.xlane.xlu1 %1619 }
 0xb4e   : > { %2254 = vrcp.f32 %v1620_v18 }
 0xb51   : > { %v1539_v19 = vpop.permute.xlu1 %1538 }
 0xb52   : > { %1547 = vst.msk [vmem:[#allocation5 + $0x18] sm:$0xff] %vm598_vm3, %v1539_v19 }
 0xb58   : > { %v2255_v20 = vpop.eup %2254 }
 0xb59   : > { %v1622_v21 = vmul.f32 %v2255_v20, %v2253_v15  ;;  %v1627_v24 = vld [vmem:[#allocation5 + $0x18] sm:$0xff] }
 0xb5a   : > { %2085 = vmatpush3.bf16.msra.mxu0 %v1627_v24 }
 0xb5b   : > { %v1623_v25 = vpack.c.bf16 %v1622_v21, %v1622_v21 }
 0xb5d   : > { %2087 = vmatmul.mubr.msk.bf16.vlgmr.msra.gmra.mrb[28].mxu0 %vm1097_vm9, %v1623_v25 }
 0xc30   : > { %v1665_v28 = vpop.f32.mrb[28].mxu0 }
 0xc31   : > { %1672 = vrot.lane.b32.xlu0 %v1665_v28, %s2520_s11  ;;  %v2088_v26 = vpop.f32.mrb[29].mxu0  ;;  %s3185_s11 = sshll.u32 %s2823_s1, 3 }
 0xc32   : > { %v1668_v29 = vpop.f32.mrb[30].mxu0  ;;  %s491_s30 = scalar_lea.vmem [#allocation18], %s3185_s11 }
 0xc33   : > { %v2089_v30 = vpop.f32.mrb[31].mxu0  ;;  %s1760_s12 = sshll.u32 %s491_s30, 4  ;;  %s3101_s12 = int_to_ptr.vmem [resolvable:$true] %s1760_s12 }
 0xc34   : > { %s2426_s13 = scalar_lea.vmem %s3101_s12, 128  ;;  %p2433_p1 = scmp.lt.s32.totalorder %s3101_s12, %s2431_s14 }
 0xc35   : > { %p2427_p7 = scmp.ne.s32.totalorder %s3101_s12, %s2426_s13  ;;  %p2434_p3 = scmp.lt.s32.totalorder %s2432_s10, %s2426_s13 }
 0xc37   : > { %p2428_p4 = pnand %p2427_p7, %p3187_p10  ;;  %p2435_p2 = por %p2434_p3, %p2433_p1 }
 0xc39   : > { %p2429_p13 = pneg %p2428_p4 }
 0xc3b   : > { %p2436_p0 = pnand %p2435_p2, %p2429_p13 }
 0xca3   : > { %v1673_v31 = vpop.permute.xlu0 %1672 }
 0xca4   : > { %1675 = vst.msk [vmem:[#allocation3] sm:$0xff] %vm822_vm6, %v1673_v31 }
 0xcab   : > { %v1676_v32 = vld [vmem:[#allocation3] sm:$0xff] }
 0xcac   : > { %v1677_v33 = vpack.c.bf16 %v1676_v32, %v1676_v32 }
 0xcae   : > { %2095 = vmatmul.mubr.msk.bf16.vlgmr.msra.gmra.mrb[16].mxu1 %vm496_vm0, %v1677_v33 }
 0xd81   : > { %v1738_v36 = vpop.f32.mrb[16].mxu1 }
 0xd82   : > { %v2099_v37 = vadd.f32 %v2098_v35, %v1738_v36  ;;  %v2096_v38 = vpop.f32.mrb[17].mxu1 }
 0xd83   : > { %v1741_v39 = vpop.f32.mrb[18].mxu1 }
 0xd84   : > { %v2097_v23 = vpop.f32.mrb[19].mxu1  ;;  %1745 = vst.msk [vmem:[%s491_s30] sm:$0xff] %vm496_vm0, %v2099_v37 }
 0xd85   : > { %2439 = shalt.err (!%p2436_p0)
}
 0xd86   : > { %s2440_s1 = scalar_lea.hbm %s3099_s20, 128  ;;  %s2444_s17 = scalar_lea.hbm %s3186_s18, 256 }
 0xd87   : > { %p2441_p6 = scmp.ne.s32.totalorder %s3099_s20, %s2440_s1  ;;  %p2445_p8 = scmp.lt.u32.totalorder %s3099_s20, %s3186_s18 }
 0xd88   : > { %p2446_p5 = scmp.lt.u32.totalorder %s2444_s17, %s2440_s1  ;;  %p2448_p7 = scmp.lt.u32.totalorder %s2440_s1, %s3099_s20 }
 0xd89   : > { %p2442_p11 = pnand %p2441_p6, %p3187_p10 }
 0xd8a   : > { %p2447_p9 = por %p2446_p5, %p2445_p8 }
 0xd8b   : > { %p2443_p12 = pneg %p2442_p11 }
 0xd8c   : > { %p2449_p4 = por %p2448_p7, %p2447_p9 }
 0xd8e   : > { %p2450_p13 = pnand %p2449_p4, %p2443_p12 }
 0xd90   : > { %2453 = shalt.err (!%p2450_p13)
}
 0xd91   : > { %2126 = dma.vmem_to_hbm [thread:$0]  (%p3187_p10), %s3101_s12, 128, %s3099_s20, %s1747_s27  }
 0xd92 PF: > { %s1772_s13 = sand.u32 1, %s2492_s21   ;;  %p3188_p1 = scmp.ne.s32.totalorder %s3174_s26, 0 }
 0xd93   : > { %p3189_p3 = scmp.ge.s32.totalorder %s2504_s24, 2  ;;  %s1773_s14 = scalar_lea.sflag [#allocation9], %s1772_s13 }
 0xd95   : > { %p2149_p2 = pnand %p3189_p3, %p3188_p1 }
 0xd97   : > { %2487 = dma.done.wait (!%p2149_p2), %s1773_s14, 128  }
 0xd98   : > { %2489 = vsyncadd (!%p2149_p2), %s1773_s14, 4294967168  ;;  %p28_p0 = scmp.ge.s32.totalorder %s2753_s15, 4   ;;  %s3190_s21 = smov %s2496_s22 }
 0xd99   : > { %s3191_s22 = smov %s2500_s23  ;;  %s3192_s23 = smov %s2765_s16 }
 0xd9a   : > { %s3193_s24 = smov %s2753_s15  ;;  %30 = sbr.rel (!%p28_p0) target bundleno = 13 (0xd), region = 133 }
 0xda1   :  { %1778 = vsyncpa [#allocation8], 1 }
 0xda2   :  { %1780 = vsyncpa [#allocation8 + $0x1], 1 }
 0xda3   :  { %1781 = vsyncpa [#allocation11], 1 }
 0xda4   :  { %1782 = vsyncpa [#allocation14], 1 }
 0xda5   :  { %1783 = vsyncpa [#allocation17], 1 }
 0xda6   :  { %1784 = vsyncpa [#allocation9], 1 }
 0xda7   :  { %1786 = vsyncpa [#allocation9 + $0x1], 1 }

// kernel: tpu_custom_call.1
= control target key start
LH: loop header
LB: loop body
LE: loop exit
PB: predicated region body
PF: predicated region fallthrough
CT: control target
= control target key end

     0   :  { %s3144_s0 = inlined_call_operand.hbm [shape: f32[2,8,32], index: 0, kind: input, shape index: {}]   ;;  %s3145_s1 = inlined_call_operand.hbm [shape: f32[1,32], index: 1, kind: input, shape index: {}]   ;;  %s3146_s2 = inlined_call_operand.hbm [shape: f32[1,32], index: 2, kind: input, shape index: {}]   ;;  %s3147_s3 = inlined_call_operand.vmem [shape: bf16[32,192], index: 3, kind: input, shape index: {}]   ;;  %s3148_s4 = inlined_call_operand.vmem [shape: bf16[64,32], index: 4, kind: input, shape index: {}]   ;;  %s3149_s5 = inlined_call_operand.hbm [shape: f32[1,32], index: 5, kind: input, shape index: {}]   ;;  %s3150_s6 = inlined_call_operand.hbm [shape: f32[1,32], index: 6, kind: input, shape index: {}]   ;;  %s3151_s7 = inlined_call_operand.hbm [shape: f32[1,32], index: 7, kind: input, shape index: {}]   ;;  %s3152_s8 = inlined_call_operand.vmem [shape: bf16[32,160], index: 8, kind: input, shape index: {}]   ;;  %s3153_s9 = inlined_call_operand.vmem [shape: f32[1,160], index: 9, kind: input, shape index: {}]   ;;  %s3154_s10 = inlined_call_operand.vmem [shape: bf16[32,32], index: 10, kind: input, shape index: {}]   ;;  %s3155_s11 = inlined_call_operand.vmem [shape: f32[1,32], index: 11, kind: input, shape index: {}]   ;;  %s3156_s12 = inlined_call_operand.hbm [shape: f32[2,8,32], index: 12, kind: output, shape index: {}]  }
   0x1   :  { %3163 = sst [smem:[#allocation24_spill]] %s3145_s1 }
   0x2   :  { %3164 = sst [smem:[#allocation25_spill]] %s3154_s10 }
   0x3   :  { %3165 = sst [smem:[#allocation26_spill]] %s3155_s11 }
   0x4   :  { %3166 = sst [smem:[#allocation27_spill]] %s3156_s12 }
   0x5   :  { %17 = vsyncpa [#allocation8], 0 }
   0x6   :  { %19 = vsyncpa [#allocation8 + $0x1], 0 }
   0x7   :  { %20 = vsyncpa [#allocation11], 0 }
   0x8   :  { %21 = vsyncpa [#allocation14], 0 }
   0x9   :  { %22 = vsyncpa [#allocation17], 0 }
   0xa   :  { %23 = vsyncpa [#allocation9], 0 }
   0xb   :  { %25 = vsyncpa [#allocation9 + $0x1], 0  ;;  %s2589_s21 = smov 0   ;;  %s2591_s22 = smov 0  }
   0xc   :  { %s2593_s23 = smov 0   ;;  %s2595_s24 = smov 0  }
   0xd LB: > { %s2506_s25 = smov [#allocation10]   ;;  %s2610_s27 = sadd.s32 4294967295, %s2504_s24   ;;  %s2504_s24 = sphi %s2595_s24, %s3193_s24   ;;  %s2500_s23 = sphi %s2593_s23, %s3192_s23   ;;  %s2496_s22 = sphi %s2591_s22, %s3191_s22   ;;  %s2492_s21 = sphi %s2589_s21, %s3190_s21  }
   0xe   : > { %s332_s26 = sshll.u32 %s2506_s25, 4  ;;  %p1879_p0 = scmp.ge.s32.totalorder %s2504_s24, 1  ;;  %s2615_s26 = int_to_ptr.vmem [resolvable:$true] %s332_s26 }
   0xf   : > { %p3159_p1 = scmp.eq.s32.totalorder %s2610_s27, 0  ;;  %p319_p2 = scmp.lt.s32.totalorder %s2504_s24, 3 }
  0x10   : > { %s2507_s29 = smov [#allocation13]   ;;  %s2508_s13 = smov [#allocation12]  }
  0x11   : > { %p2617_p3 = pnand %p1879_p0, %p319_p2  ;;  %s360_s30 = sshll.u32 %s2507_s29, 4  ;;  %s2624_s30 = int_to_ptr.vmem [resolvable:$true] %s360_s30 }
  0x12   : > { %s343_s14 = sshll.u32 %s2508_s13, 4  ;;  %s2509_s16 = smov [#allocation15]   ;;  %s2632_s14 = int_to_ptr.vmem [resolvable:$true] %s343_s14 }
  0x13   : > { %s3167_s28 = scalar_select %p2617_p3, 1, 0 }
  0x14   : > { %p2128_p5 = pneg %p2617_p3  ;;  %s2634_s17 = sshll.u32 %s2509_s16, 4  ;;  %s372_s17 = int_to_ptr.vmem [resolvable:$true] %s2634_s17 }
  0x15   : > { %s3169_s1 = sld [smem:[#allocation24_spill]] }
  0x16   : > { %p2628_p6 = pnand %p2128_p5, %p3159_p1 }
  0x18   : > { %p2644_p8 = pneg %p2628_p6 }
  0x1b   : > { %s2256_s20 = scalar_lea.hbm %s3169_s1, 16 }
  0x1c   : > { %p2257_p7 = scmp.ne.s32.totalorder %s3169_s1, %s2256_s20  ;;  %p2263_p11 = scmp.lt.u32.totalorder %s2256_s20, %s3169_s1 }
  0x1e   : > { %p2259_p9 = pnand %p2644_p8, %p2257_p7 }
  0x20   : > { %p2260_p10 = pneg %p2259_p9 }
  0x22   : > { %p2265_p12 = pnand %p2263_p11, %p2260_p10 }
  0x24   : > { %2268 = shalt.err (!%p2265_p12)
}
  0x25   : > { %s2269_s18 = scalar_lea.vmem %s2615_s26, 16  ;;  %s2276_s19 = scalar_lea.vmem %s2615_s26, 32 }
  0x26   : > { %p2270_p13 = scmp.ne.s32.totalorder %s2615_s26, %s2269_s18  ;;  %p2277_p5 = scmp.lt.s32.totalorder %s2615_s26, %s2615_s26 }
  0x27   : > { %p2278_p7 = scmp.lt.s32.totalorder %s2276_s19, %s2269_s18 }
  0x28   : > { %p2272_p0 = pnand %p2270_p13, %p2644_p8 }
  0x29   : > { %p2279_p9 = por %p2278_p7, %p2277_p5 }
  0x2a   : > { %p2273_p2 = pneg %p2272_p0 }
  0x2c   : > { %p2280_p4 = pnand %p2279_p9, %p2273_p2 }
  0x2e   : > { %2283 = shalt.err (!%p2280_p4)
}
  0x2f   : > { %2131 = dma.hbm_to_vmem [thread:$0]  (!%p2628_p6), %s3169_s1, 16, %s2615_s26, [#allocation11]  }
  0x30   : > { %s2284_s16 = scalar_lea.hbm %s3149_s5, 16 }
  0x31   : > { %p2285_p10 = scmp.ne.s32.totalorder %s3149_s5, %s2284_s16  ;;  %p2291_p4 = scmp.lt.u32.totalorder %s2284_s16, %s3149_s5 }
  0x33   : > { %p2287_p11 = pnand %p2285_p10, %p2644_p8 }
  0x35   : > { %p2288_p12 = pneg %p2287_p11 }
  0x37   : > { %p2293_p13 = pnand %p2291_p4, %p2288_p12 }
  0x39   : > { %2296 = shalt.err (!%p2293_p13)
}
  0x3a   : > { %s2297_s26 = scalar_lea.vmem %s2624_s30, 16  ;;  %s2304_s10 = scalar_lea.vmem %s2624_s30, 32 }
  0x3b   : > { %p2298_p0 = scmp.ne.s32.totalorder %s2624_s30, %s2297_s26  ;;  %p2305_p7 = scmp.lt.s32.totalorder %s2624_s30, %s2624_s30 }
  0x3c   : > { %p2306_p9 = scmp.lt.s32.totalorder %s2304_s10, %s2297_s26 }
  0x3d   : > { %p2300_p2 = pnand %p2298_p0, %p2644_p8 }
  0x3e   : > { %p2307_p10 = por %p2306_p9, %p2305_p7 }
  0x3f   : > { %p2301_p5 = pneg %p2300_p2 }
  0x41   : > { %p2308_p11 = pnand %p2307_p10, %p2301_p5 }
  0x43   : > { %2311 = shalt.err (!%p2308_p11)
}
  0x44   : > { %2137 = dma.hbm_to_vmem [thread:$0]  (!%p2628_p6), %s3149_s5, 16, %s2624_s30, [#allocation14]  }
  0x45   : > { %s2312_s29 = scalar_lea.hbm %s3146_s2, 16 }
  0x46   : > { %p2313_p12 = scmp.ne.s32.totalorder %s3146_s2, %s2312_s29  ;;  %p2319_p0 = scmp.lt.u32.totalorder %s2312_s29, %s3146_s2 }
  0x48   : > { %p2315_p4 = pnand %p2313_p12, %p2644_p8 }
  0x4a   : > { %p2316_p13 = pneg %p2315_p4 }
  0x4c   : > { %p2321_p2 = pnand %p2319_p0, %p2316_p13 }
  0x4e   : > { %2324 = shalt.err (!%p2321_p2)
}
  0x4f   : > { %s2325_s30 = scalar_lea.vmem %s2632_s14, 16  ;;  %s2332_s10 = scalar_lea.vmem %s2632_s14, 32 }
  0x50   : > { %p2326_p5 = scmp.ne.s32.totalorder %s2632_s14, %s2325_s30  ;;  %p2333_p10 = scmp.lt.s32.totalorder %s2632_s14, %s2632_s14 }
  0x51   : > { %p2334_p11 = scmp.lt.s32.totalorder %s2332_s10, %s2325_s30 }
  0x52   : > { %p2328_p7 = pnand %p2326_p5, %p2644_p8 }
  0x53   : > { %p2335_p12 = por %p2334_p11, %p2333_p10 }
  0x54   : > { %p2329_p9 = pneg %p2328_p7 }
  0x56   : > { %p2336_p4 = pnand %p2335_p12, %p2329_p9 }
  0x58   : > { %2339 = shalt.err (!%p2336_p4)
}
  0x59   : > { %2134 = dma.hbm_to_vmem [thread:$0]  (!%p2628_p6), %s3146_s2, 16, %s2632_s14, [#allocation11]  }
  0x5a   : > { %s2510_s20 = smov [#allocation16]   ;;  %s2340_s18 = scalar_lea.hbm %s3150_s6, 16 }
  0x5b   : > { %s382_s25 = sshll.u32 %s2510_s20, 4  ;;  %p2341_p13 = scmp.ne.s32.totalorder %s3150_s6, %s2340_s18  ;;  %s383_s25 = int_to_ptr.vmem [resolvable:$true] %s382_s25 }
  0x5c   : > { %p2347_p5 = scmp.lt.u32.totalorder %s2340_s18, %s3150_s6 }
  0x5d   : > { %p2343_p0 = pnand %p2341_p13, %p2644_p8 }
  0x5f   : > { %p2344_p2 = pneg %p2343_p0 }
  0x61   : > { %p2349_p7 = pnand %p2347_p5, %p2344_p2 }
  0x63   : > { %2352 = shalt.err (!%p2349_p7)
}
  0x64   : > { %s2353_s14 = scalar_lea.vmem %s372_s17, 16  ;;  %s2360_s11 = scalar_lea.vmem %s372_s17, 32 }
  0x65   : > { %p2354_p9 = scmp.ne.s32.totalorder %s372_s17, %s2353_s14  ;;  %p2361_p12 = scmp.lt.s32.totalorder %s372_s17, %s372_s17 }
  0x66   : > { %p2362_p4 = scmp.lt.s32.totalorder %s2360_s11, %s2353_s14 }
  0x67   : > { %p2356_p10 = pnand %p2354_p9, %p2644_p8 }
  0x68   : > { %p2363_p1 = por %p2362_p4, %p2361_p12 }
  0x69   : > { %p2357_p11 = pneg %p2356_p10 }
  0x6b   : > { %p2364_p3 = pnand %p2363_p1, %p2357_p11 }
  0x6d   : > { %2367 = shalt.err (!%p2364_p3)
}
  0x6e   : > { %2140 = dma.hbm_to_vmem [thread:$0]  (!%p2628_p6), %s3150_s6, 16, %s372_s17, [#allocation14]  }
  0x6f   : > { %s2368_s18 = scalar_lea.hbm %s3151_s7, 16 }
  0x70   : > { %p2369_p13 = scmp.ne.s32.totalorder %s3151_s7, %s2368_s18  ;;  %p2375_p3 = scmp.lt.u32.totalorder %s2368_s18, %s3151_s7 }
  0x72   : > { %p2371_p0 = pnand %p2369_p13, %p2644_p8 }
  0x74   : > { %p2372_p1 = pneg %p2371_p0 }
  0x76   : > { %p2377_p2 = pnand %p2375_p3, %p2372_p1 }
  0x78   : > { %2380 = shalt.err (!%p2377_p2)
}
  0x79   : > { %s2381_s14 = scalar_lea.vmem %s383_s25, 16  ;;  %s2388_s17 = scalar_lea.vmem %s383_s25, 32 }
  0x7a   : > { %p2382_p5 = scmp.ne.s32.totalorder %s383_s25, %s2381_s14  ;;  %p2389_p10 = scmp.lt.s32.totalorder %s383_s25, %s383_s25 }
  0x7b   : > { %p2390_p11 = scmp.lt.s32.totalorder %s2388_s17, %s2381_s14 }
  0x7c   : > { %p2384_p7 = pnand %p2382_p5, %p2644_p8 }
  0x7d   : > { %p2391_p12 = por %p2390_p11, %p2389_p10 }
  0x7e   : > { %p2385_p9 = pneg %p2384_p7 }
  0x80   : > { %p2392_p4 = pnand %p2391_p12, %p2385_p9 }
  0x82   : > { %2395 = shalt.err (!%p2392_p4)
}
  0x83   : > { %2143 = dma.hbm_to_vmem [thread:$0]  (!%p2628_p6), %s3151_s7, 16, %s383_s25, [#allocation17]  }
  0x84   : > { %s1878_s13 = sadd.s32 4294967294, %s2504_s24   ;;  %s2753_s15 = sadd.s32 1, %s2504_s24  }
  0x85   : > { %s38_s20 = sadd.s32 1, %s2500_s23  ;;  %s35_s29 = ssub.s32 %s2504_s24, %s2753_s15 }
  0x86   : > { %p45_p8 = scmp.ne.s32.totalorder %s2500_s23, %s2496_s22  ;;  %p36_p13 = scmp.eq.s32.totalorder %s35_s29, 0 }
  0x87   : > { %p46_p0 = scmp.eq.s32.totalorder %s2504_s24, 0  ;;  %p51_p1 = scmp.ne.s32.totalorder %s2496_s22, %s2492_s21 }
  0x88   : > { %p306_p3 = scmp.eq.s32.totalorder %s2610_s27, 1  ;;  %p3171_p5 = scmp.eq.s32.totalorder %s2610_s27, 0 }
  0x89   : > { %s2765_s16 = scalar_select %p36_p13, %s2500_s23, %s38_s20  }
  0x8a   : > { %p47_p2 = por %p46_p0, %p45_p8  ;;  %p2769_p7 = por %p3171_p5, %p51_p1 }
  0x8b   : > { %p2773_p6 = por %p306_p3, %p45_p8  ;;  %p312_p9 = scmp.eq.s32.totalorder %s1878_s13, 1 }
  0x8c   : > { %p2157_p10 = scmp.lt.s32.totalorder %s2504_s24, 2  ;;  %s405_s19 = sand.u32 1, %s2500_s23  }
  0x8d   : > { %s3173_s25 = scalar_select %p2773_p6, 1, 0 }
  0x8e   : > { %p2779_p11 = por %p312_p9, %p51_p1  ;;  %s1886_s30 = sshll.u32 %s405_s19, 3 }
  0x8f   : > { %s1887_s10 = sshll.u32 %s2504_s24, 7  ;;  %s409_s12 = scalar_lea.vmem [#allocation7], %s1886_s30 }
  0x90   : > { %s3174_s26 = scalar_select %p2779_p11, 1, 0 }
  0x91   : > { %s2787_s11 = scalar_lea.hbm %s3144_s0, %s1887_s10  ;;  %s416_s20 = sshll.u32 %s409_s12, 4  ;;  %s2793_s20 = int_to_ptr.vmem [resolvable:$true] %s416_s20 }
  0x92   : > { %p2789_p12 = pnand %p2157_p10, %p47_p2  ;;  %s406_s29 = scalar_lea.sflag [#allocation8], %s405_s19 }
  0x93   : > { %s2396_s1 = scalar_lea.hbm %s2787_s11, 128  ;;  %s2401_s14 = scalar_lea.hbm %s3144_s0, 256 }
  0x94   : > { %p2397_p4 = scmp.ne.s32.totalorder %s2787_s11, %s2396_s1  ;;  %p2398_p8 = pneg %p2789_p12 }
  0x95   : > { %p2402_p1 = scmp.lt.u32.totalorder %s2787_s11, %s3144_s0  ;;  %p2403_p3 = scmp.lt.u32.totalorder %s2401_s14, %s2396_s1 }
  0x96   : > { %p2399_p13 = pnand %p2398_p8, %p2397_p4  ;;  %p2405_p5 = scmp.lt.u32.totalorder %s2396_s1, %s2787_s11 }
  0x97   : > { %p2404_p2 = por %p2403_p3, %p2402_p1 }
  0x98   : > { %p2400_p0 = pneg %p2399_p13 }
  0x99   : > { %p2406_p9 = por %p2405_p5, %p2404_p2 }
  0x9b   : > { %p2407_p10 = pnand %p2406_p9, %p2400_p0 }
  0x9d   : > { %2410 = shalt.err (!%p2407_p10)
}
  0x9e   : > { %s2411_s19 = scalar_lea.vmem %s2793_s20, 128  ;;  %s2511_s10 = smov [#allocation7]  }
  0x9f   : > { %p2412_p4 = scmp.ne.s32.totalorder %s2793_s20, %s2411_s19  ;;  %s2416_s30 = sshll.u32 %s2511_s10, 4  ;;  %s2417_s30 = int_to_ptr.vmem [resolvable:$false] %s2416_s30 }
  0xa0   : > { %s2418_s17 = scalar_lea.vmem %s2417_s30, 256  ;;  %p2419_p6 = scmp.lt.s32.totalorder %s2793_s20, %s2417_s30 }
  0xa1   : > { %p2414_p13 = pnand %p2412_p4, %p2398_p8  ;;  %p2420_p1 = scmp.lt.s32.totalorder %s2418_s17, %s2411_s19 }
  0xa3   : > { %p2415_p11 = pneg %p2414_p13  ;;  %p2421_p3 = por %p2420_p1, %p2419_p6 }
  0xa5   : > { %p2422_p2 = pnand %p2421_p3, %p2415_p11 }
  0xa7   : > { %2425 = shalt.err (!%p2422_p2)
}
  0xa8   : > { %2147 = dma.hbm_to_vmem [thread:$0]  (!%p2789_p12), %s2787_s11, 128, %s2793_s20, %s406_s29  }
  0xa9   : > { %p3176_p0 = scmp.ne.s32.totalorder %s3167_s28, 0 }
  0xaa   : > { %s2823_s1 = sand.u32 (!%p3176_p0), 1, %s2496_s22  }
  0xab   : > { %425 = sbr.rel (%p3176_p0) target bundleno = 3474 (0xd92), region = 68  ;;  %s3162_s14 = sshll.u32 (!%p3176_p0), %s2823_s1, 3 }
  0xac   : > { %s428_s12 = scalar_lea.sflag (!%p3176_p0), [#allocation8], %s2823_s1  ;;  %s431_s19 = scalar_lea.vmem (!%p3176_p0), [#allocation7], %s3162_s14 }
  0xb2   : > { %2471 = dma.done.wait (%p2769_p7), %s428_s12, 128  }
  0xb3   : > { %2473 = vsyncadd (%p2769_p7), %s428_s12, 4294967168  ;;  %p3177_p6 = scmp.eq.s32.totalorder %s2610_s27, 0 }
  0xb5   : > { %2475 = dma.done.wait (%p3177_p6), [#allocation11], 32   ;;  %p3178_p11 = pmov %p3177_p6 }
  0xb6   : > { %p3179_p12 = pmov %p3177_p6 }
  0xb7   : > { %2477 = vsyncadd (%p3178_p11), [#allocation11], 4294967264 }
  0xb8   : > { %2479 = dma.done.wait (%p3179_p12), [#allocation14], 32   ;;  %p3180_p8 = pmov %p3177_p6 }
  0xb9   : > { %p3181_p5 = pmov %p3177_p6 }
  0xba   : > { %2481 = vsyncadd (%p3180_p8), [#allocation14], 4294967264 }
  0xbb   : > { %2483 = dma.done.wait (%p3181_p5), [#allocation17], 16   ;;  %p3182_p9 = pmov %p3181_p5 }
  0xbc   : > { %vm496_vm0 = vcmask 261120   ;;  %v493_v0 = vld [vmem:[%s431_s19] sm:$0xff]  ;;  %v2212_v7 = vld [vmem:[%s3147_s3 + $0x4] ss:$8 sps:$4 sm:$0xff]   ;;  %v2512_v10 = vmov 0   ;;  %v2513_v22 = vmov 0.0  }
  0xbd   : > { %2485 = vsyncadd (%p3182_p9), [#allocation17], 4294967280  ;;  %v497_v1 = vsel %vm496_vm0, %v493_v0, 0.0  ;;  %v2214_v8 = vld [vmem:[%s3147_s3] ss:$8 sps:$4 sm:$0xff]   ;;  %553 = vmatprep.subr.bf16.mxu0 %v2212_v7  ;;  %585 = vmatprep.mubr.bf16.mxu0 %v2512_v10  ;;  %vm2514_vm1 = vmmov 0  }
  0xbe   : > { %498 = vadd.xlane.f32.xlu0 %v497_v1  ;;  %v2215_v9 = vld [vmem:[%s3147_s3 + $0x14] ss:$8 sps:$4 sm:$0xff]   ;;  %554 = vmatpush1.bf16.msra.mxu0 %v2214_v8  ;;  %v2217_v11 = vld [vmem:[%s3147_s3 + $0x10] ss:$8 sps:$4 sm:$0xff]   ;;  %v1896_v16 = vld [vmem:[#allocation10] ss:$0 sm:$0xff] }
  0xbf   : > { %555 = vmatprep.subr.bf16.mxu0 %v2215_v9  ;;  %v1897_v18 = vld [vmem:[#allocation12] ss:$0 sm:$0xff]  ;;  %1982 = vmatprep.subr.bf16.mxu1 %v2513_v22  ;;  %vm662_vm2 = vcmask 1043456   ;;  %s2515_s17 = smov 112   ;;  %s2516_s12 = smov 64   ;;  %vm598_vm3 = vcmask 130048  }
  0xc0   : > { %1984 = vmatprep.mubr.msk.bf16.mxu1 %vm2514_vm1, %v2513_v22  ;;  %s2517_s19 = smov 48   ;;  %s2518_s28 = smov 32   ;;  %vm645_vm4 = vcmask 64512   ;;  %vm1390_vm5 = vcmask 125952   ;;  %vm822_vm6 = vcmask 261248   ;;  %vm938_vm7 = vcmask 392448  }
  0xc1   : > { %s2519_s18 = smov 96   ;;  %s2520_s11 = smov 16   ;;  %vm1054_vm8 = vcmask 523648   ;;  %vm1097_vm9 = vcmask 523264  }
  0xc2   : > { %556 = vmatpush1.bf16.msra.mxu0 %v2217_v11  ;;  %s2521_s20 = smov 80   ;;  %s3184_s14 = sld [smem:[#allocation26_spill]] }
  0xc3   : > { %1988 = vmatprep.subr.bf16.mxu0 %v2513_v22  ;;  %s1934_s10 = sshll.u32 %s2610_s27, 7  ;;  %s1747_s27 = scalar_lea.sflag [#allocation9], %s2823_s1 }
  0xc4   : > { %p3187_p10 = scmp.ne.s32.totalorder %s3173_s25, 0  ;;  %s2523_s29 = smov [#allocation18]  }
 0x14b   : > { %v499_v2 = vpop.xlane.xlu0 %498 }
 0x14c   : > { %v501_v3 = vmul.f32 0.03125, %v499_v2 }
 0x14e   : > { %v502_v4 = vsub.f32 %v493_v0, %v501_v3 }
 0x150   : > { %v503_v5 = vmul.f32 %v502_v4, %v502_v4 }
 0x152   : > { %v504_v6 = vsel %vm496_vm0, %v503_v5, 0.0 }
 0x153   : > { %505 = vadd.xlane.f32.xlu0 %v504_v6 }
 0x1e0   : > { %v506_v12 = vpop.xlane.xlu0 %505 }
 0x1e1   : > { %v507_v13 = vmul.f32 0.03125, %v506_v12 }
 0x1e3   : > { %v508_v14 = vadd.f32 1e-05, %v507_v13 }
 0x1e5   : > { %2230 = vrsqrt.f32 %v508_v14 }
 0x1ef   : > { %v2231_v15 = vpop.eup %2230 }
 0x1f0   : > { %v2860_v17 = vmul.f32 %v2231_v15, %v502_v4 }
 0x1f2   : > { %v517_v19 = vmul.f32 %v1896_v16, %v2860_v17 }
 0x1f4   : > { %v524_v20 = vadd.f32 %v1897_v18, %v517_v19 }
 0x1f6   : > { %v525_v21 = vpack.c.bf16 %v524_v20, %v524_v20 }
 0x1f8   : > { %1902 = vmatmul.mubr.msk.bf16.vlgmr.msra.gmra.mrb[0].mxu0 %vm496_vm0, %v525_v21 }
 0x1f9   : > { %1990 = vmatprep.mubr.msk.bf16.mxu0 %vm2514_vm1, %v2513_v22 }
 0x2cb   : > { %v587_v23 = vpop.f32.mrb[0].mxu0 }
 0x2cc   : > { %v594_v24 = vpack.c.bf16 %v587_v23, %v587_v23  ;;  %v589_v25 = vpop.f32.mrb[1].mxu0 }
 0x2cd   : > { %v2870_v26 = vpack.c.bf16 %v589_v25, %v589_v25  ;;  %v591_v27 = vpop.f32.mrb[2].mxu0 }
 0x2ce   : > { %707 = vrot.lane.b32.xlu0 %v594_v24, %s2515_s17  ;;  %596 = vrot.lane.b32.xlu1 %v594_v24, %s2516_s12  ;;  %v592_v28 = vpop.f32.mrb[3].mxu0 }
 0x2cf   : > { %v664_v29 = vsel %vm662_vm2, %v2870_v26, 0 }
 0x2d0   : > { %1989 = vmatpush3.bf16.msra.mxu0 %v664_v29 }
 0x2d1   : > { %2000 = vmatprep.subr.bf16.mxu0 %v2513_v22 }
 0x2d2   : > { %709 = vrot.lane.b32.xlu1 %v594_v24, %s2517_s19 }
 0x2d6   : > { %826 = vrot.lane.b32.xlu1 %v594_v24, %s2518_s28 }
 0x2da   : > { %824 = vrot.lane.b32.xlu1 %v594_v24, %s2519_s18 }
 0x2de   : > { %942 = vrot.lane.b32.xlu1 %v594_v24, %s2520_s11 }
 0x2e2   : > { %940 = vrot.lane.b32.xlu1 %v594_v24, %s2521_s20 }
 0x340   : > { %v597_v30 = vpop.permute.xlu1 %596  ;;  %v708_v35 = vpop.permute.xlu0 %707 }
 0x341   : > { %v603_v31 = vsel %vm598_vm3, %v597_v30, 0 }
 0x342   : > { %1983 = vmatpush3.bf16.xpose.msra.mxu1 %v603_v31 }
 0x343   : > { %1994 = vmatprep.subr.bf16.mxu1 %v2513_v22 }
 0x344   : > { %v710_v32 = vpop.permute.xlu1 %709 }
 0x345   : > { %v715_v33 = vsel %vm598_vm3, %v710_v32, 0 }
 0x348   : > { %v827_v34 = vpop.permute.xlu1 %826 }
 0x349   : > { %1985 = vmatmul.mubr.msk.bf16.vlgmr.msra.gmra.mrb[0].mxu1 %vm598_vm3, %v594_v24  ;;  %v832_v37 = vsel %vm598_vm3, %v827_v34, 0 }
 0x34a   : > { %1995 = vmatpush3.bf16.xpose.msra.mxu1 %v715_v33  ;;  %1996 = vmatprep.mubr.msk.bf16.mxu1 %vm2514_vm1, %v2513_v22 }
 0x34b   : > { %2006 = vmatprep.subr.bf16.mxu1 %v2513_v22 }
 0x34c   : > { %v825_v36 = vpop.permute.xlu1 %824 }
 0x350   : > { %v943_v38 = vpop.permute.xlu1 %942 }
 0x351   : > { %1997 = vmatmul.mubr.msk.bf16.vlgmr.msra.gmra.mrb[4].mxu1 %vm598_vm3, %v708_v35  ;;  %v948_v39 = vsel %vm598_vm3, %v943_v38, 0  ;;  %v2220_v38 = vld [vmem:[%s3152_s8 + $0x4] ss:$8 sps:$4 sm:$0xff]  }
 0x352   : > { %2007 = vmatpush3.bf16.xpose.msra.mxu1 %v832_v37  ;;  %2008 = vmatprep.mubr.msk.bf16.mxu1 %vm2514_vm1, %v2513_v22 }
 0x353   : > { %2018 = vmatprep.subr.bf16.mxu1 %v2513_v22 }
 0x354   : > { %v941_v40 = vpop.permute.xlu1 %940 }
 0x359   : > { %2009 = vmatmul.mubr.msk.bf16.vlgmr.msra.gmra.mrb[8].mxu1 %vm598_vm3, %v825_v36 }
 0x35a   : > { %2019 = vmatpush3.bf16.xpose.msra.mxu1 %v948_v39  ;;  %2020 = vmatprep.mubr.msk.bf16.mxu1 %vm2514_vm1, %v2513_v22 }
 0x35b   : > { %2030 = vmatprep.subr.bf16.mxu1 %v2513_v22 }
 0x361   : > { %2021 = vmatmul.mubr.msk.bf16.vlgmr.msra.gmra.mrb[12].mxu1 %vm598_vm3, %v941_v40 }
 0x362   : > { %2038 = vmatprep.mubr.msk.bf16.mxu1 %vm2514_vm1, %v2513_v22 }
 0x41c   : > { %v639_v41 = vpop.f32.mrb[0].mxu1 }
 0x41d   : > { %v1986_v42 = vpop.f32.mrb[1].mxu1  ;;  %v646_v43 = vsel %vm645_vm4, %v639_v41, -inf }
 0x41e   : > { %647 = vmax.xlane.f32.xlu1 %v646_v43  ;;  %v642_v44 = vpop.f32.mrb[2].mxu1  ;;  %v1917_v42 = vld [vmem:[#allocation15] ss:$0 sm:$0xff] }
 0x41f   : > { %v1987_v45 = vpop.f32.mrb[3].mxu1  ;;  %v2218_v43 = vld [vmem:[%s3152_s8] ss:$8 sps:$4 sm:$0xff]   ;;  %v1149_v44 = vmul.f32 %v1917_v42, %v2860_v17 }
 0x424   : > { %v751_v46 = vpop.f32.mrb[4].mxu1 }
 0x425   : > { %v1998_v47 = vpop.f32.mrb[5].mxu1  ;;  %v757_v48 = vsel %vm645_vm4, %v751_v46, -inf }
 0x426   : > { %758 = vmax.xlane.f32.xlu0 %v757_v48  ;;  %v754_v49 = vpop.f32.mrb[6].mxu1  ;;  %v1918_v47 = vld [vmem:[#allocation16] ss:$0 sm:$0xff]  ;;  %v2221_v48 = vld [vmem:[%s3152_s8 + $0x10] ss:$8 sps:$4 sm:$0xff]  }
 0x427   : > { %v1999_v50 = vpop.f32.mrb[7].mxu1  ;;  %v1156_v49 = vadd.f32 %v1918_v47, %v1149_v44 }
 0x429   : > { %v1157_v50 = vpack.c.bf16 %v1156_v49, %v1156_v49 }
 0x42c   : > { %v868_v51 = vpop.f32.mrb[8].mxu1 }
 0x42d   : > { %v2010_v52 = vpop.f32.mrb[9].mxu1  ;;  %v874_v53 = vsel %vm645_vm4, %v868_v51, -inf }
 0x42e   : > { %875 = vmax.xlane.f32.xlu1 %v874_v53  ;;  %v871_v54 = vpop.f32.mrb[10].mxu1 }
 0x42f   : > { %v2011_v55 = vpop.f32.mrb[11].mxu1 }
 0x434   : > { %v984_v56 = vpop.f32.mrb[12].mxu1 }
 0x435   : > { %v2022_v57 = vpop.f32.mrb[13].mxu1  ;;  %v990_v58 = vsel %vm645_vm4, %v984_v56, -inf }
 0x436   : > { %991 = vmax.xlane.f32.xlu0 %v990_v58  ;;  %v987_v59 = vpop.f32.mrb[14].mxu1 }
 0x437   : > { %v2023_v60 = vpop.f32.mrb[15].mxu1  ;;  %v1164_v59 = vlaneseq }
 0x4ab   : > { %v648_v61 = vpop.xlane.xlu1 %647 }
 0x4ac   : > { %v649_v62 = vsub.f32 %v639_v41, %v648_v61 }
 0x4ae   : > { %v650_v63 = vmul.f32 1.442695, %v649_v62  ;;  %v1165_v62 = vshrl.u32 %v1164_v59, 7 }
 0x4b0   : > { %2232 = vpow2.f32 %v650_v63  ;;  %v2522_v63 = vmov 1966171168  }
 0x4b3   : > { %v759_v0 = vpop.xlane.xlu0 %758 }
 0x4b4   : > { %v760_v1 = vsub.f32 %v751_v46, %v759_v0  ;;  %v2223_v46 = vld [vmem:[%s3152_s8 + $0x14] ss:$8 sps:$4 sm:$0xff]   ;;  %v1241_v0 = vunpack.c.l.s4 %v2522_v63 }
 0x4b6   : > { %v761_v2 = vmul.f32 1.442695, %v760_v1 }
 0x4b8   : > { %2234 = vpow2.f32 %v761_v2 }
 0x4ba   : > { %v2233_v3 = vpop.eup %2232 }
 0x4bb   : > { %v652_v4 = vsel %vm645_vm4, %v2233_v3, 0.0  ;;  %v876_v13 = vpop.xlane.xlu1 %875 }
 0x4bc   : > { %653 = vadd.xlane.f32.xlu1 %v652_v4  ;;  %v877_v14 = vsub.f32 %v868_v51, %v876_v13  ;;  %v2224_v13 = vld [vmem:[%s3148_s4] sm:$0xff]  }
 0x4bd   : > { %2031 = vmatpush3.bf16.msra.mxu1 %v2224_v13 }
 0x4be   : > { %v878_v15 = vmul.f32 1.442695, %v877_v14  ;;  %2032 = vmatprep.subr.bf16.mxu1 %v2513_v22 }
 0x4c2   : > { %v2235_v5 = vpop.eup %2234 }
 0x4c3   : > { %v992_v6 = vpop.xlane.xlu0 %991  ;;  %v763_v7 = vsel %vm645_vm4, %v2235_v5, 0.0 }
 0x4c4   : > { %v993_v8 = vsub.f32 %v984_v56, %v992_v6  ;;  %764 = vadd.xlane.f32.xlu0 %v763_v7  ;;  %v1242_v7 = vunpack.c.0.s8 %v1241_v0 }
 0x4c6   : > { %v994_v9 = vmul.f32 1.442695, %v993_v8 }
 0x4c8   : > { %2236 = vpow2.f32 %v994_v9  ;;  %v1170_v9 = vsub.s32 1, %v1165_v62 }
 0x4c9   : > { %2238 = vpow2.f32 %v878_v15 }
 0x4cd   : > { %770 = vrot.lane.b32.xlu1 %v2870_v26, %s2515_s17 }
 0x4d2   : > { %v2237_v11 = vpop.eup %2236 }
 0x4d3   : > { %v996_v12 = vsel %vm645_vm4, %v2237_v11, 0.0  ;;  %v2239_v16 = vpop.eup %2238 }
 0x4d4   : > { %997 = vadd.xlane.f32.xlu0 %v996_v12  ;;  %v880_v18 = vsel %vm645_vm4, %v2239_v16, 0.0 }
 0x4ea   : > { %886 = vrot.lane.b32.xlu0 %v2870_v26, %s2519_s18 }
 0x4f1   : > { %881 = vadd.xlane.f32.xlu1 %v880_v18 }
 0x502   : > { %1002 = vrot.lane.b32.xlu1 %v2870_v26, %s2521_s20 }
 0x549   : > { %v654_v19 = vpop.xlane.xlu1 %653 }
 0x54a   : > { %2240 = vrcp.f32 %v654_v19 }
 0x54d   : > { %v771_v24 = vpop.permute.xlu1 %770 }
 0x54e   : > { %v776_v27 = vsel %vm662_vm2, %v771_v24, 0  ;;  %v2225_v24 = vld [vmem:[%s3148_s4 + $0x8] sm:$0xff]  }
 0x54f   : > { %2033 = vmatpush3.bf16.msra.mxu1 %v2225_v24 }
 0x550   : > { %2034 = vmatprep.subr.bf16.mxu1 %v2513_v22 }
 0x551   : > { %v765_v20 = vpop.xlane.xlu0 %764 }
 0x552   : > { %2242 = vrcp.f32 %v765_v20 }
 0x554   : > { %v2241_v21 = vpop.eup %2240 }
 0x555   : > { %v656_v23 = vmul.f32 %v2241_v21, %v2233_v3  ;;  %v1166_v3 = vsub.s32 0, %v1165_v62 }
 0x557   : > { %v657_v25 = vpack.c.bf16 %v656_v23, %v656_v23 }
 0x559   : > { %1991 = vmatmul.mubr.msk.bf16.vlgmr.msra.gmra.mrb[4].mxu0 %vm645_vm4, %v657_v25 }
 0x55a   : > { %2001 = vmatpush3.bf16.msra.mxu0 %v776_v27  ;;  %2002 = vmatprep.mubr.msk.bf16.mxu0 %vm2514_vm1, %v2513_v22 }
 0x55b   : > { %2012 = vmatprep.subr.bf16.mxu0 %v2513_v22 }
 0x55c   : > { %v2243_v28 = vpop.eup %2242 }
 0x55d   : > { %v767_v26 = vmul.f32 %v2243_v28, %v2235_v5  ;;  %v1162_v5 = vld [vmem:[%s3153_s9] sm:$0x3] }
 0x55e   : > { %v1167_v8 = vrot.slane %v1162_v5, %v1166_v3 }
 0x55f   : > { %v768_v29 = vpack.c.bf16 %v767_v26, %v767_v26 }
 0x561   : > { %v998_v30 = vpop.xlane.xlu0 %997  ;;  %2003 = vmatmul.mubr.msk.bf16.vlgmr.msra.gmra.mrb[8].mxu0 %vm645_vm4, %v768_v29 }
 0x562   : > { %2014 = vmatprep.mubr.msk.bf16.mxu0 %vm2514_vm1, %v2513_v22 }
 0x565   : > { %v887_v31 = vpop.permute.xlu0 %886 }
 0x566   : > { %v892_v32 = vsel %vm662_vm2, %v887_v31, 0 }
 0x567   : > { %2013 = vmatpush3.bf16.msra.mxu0 %v892_v32  ;;  %v2226_v32 = vld [vmem:[%s3148_s4 + $0x10] sm:$0xff]  }
 0x568   : > { %2024 = vmatprep.subr.bf16.mxu0 %v2513_v22  ;;  %2035 = vmatpush3.bf16.msra.mxu1 %v2226_v32 }
 0x569   : > { %2036 = vmatprep.subr.bf16.mxu1 %v2513_v22 }
 0x57e   : > { %v882_v33 = vpop.xlane.xlu1 %881 }
 0x57f   : > { %2244 = vrcp.f32 %v882_v33 }
 0x580   : > { %2246 = vrcp.f32 %v998_v30 }
 0x582   : > { %v1003_v36 = vpop.permute.xlu1 %1002 }
 0x583   : > { %v1008_v40 = vsel %vm662_vm2, %v1003_v36, 0 }
 0x589   : > { %v2245_v34 = vpop.eup %2244 }
 0x58a   : > { %v884_v35 = vmul.f32 %v2245_v34, %v2239_v16  ;;  %v2247_v39 = vpop.eup %2246  ;;  %v1171_v16 = vrot.slane %v1162_v5, %v1170_v9  ;;  %v2227_v34 = vld [vmem:[%s3148_s4 + $0x18] sm:$0xff]  }
 0x58b   : > { %v1000_v41 = vmul.f32 %v2247_v39, %v2237_v11  ;;  %v1245_v11 = vsub.s32 %v1242_v7, %v1165_v62  ;;  %2037 = vmatpush3.bf16.msra.mxu1 %v2227_v34 }
 0x58c   : > { %v885_v37 = vpack.c.bf16 %v884_v35, %v884_v35  ;;  %2054 = vmatprep.subr.bf16.mxu1 %v2513_v22 }
 0x58d   : > { %v1001_v45 = vpack.c.bf16 %v1000_v41, %v1000_v41 }
 0x58e   : > { %2015 = vmatmul.mubr.msk.bf16.vlgmr.msra.gmra.mrb[12].mxu0 %vm645_vm4, %v885_v37 }
 0x58f   : > { %2025 = vmatpush3.bf16.msra.mxu0 %v1008_v40  ;;  %2026 = vmatprep.mubr.msk.bf16.mxu0 %vm2514_vm1, %v2513_v22 }
 0x590   : > { %1197 = vmatprep.subr.bf16.mxu0 %v2220_v38 }
 0x596   : > { %2027 = vmatmul.mubr.msk.bf16.vlgmr.msra.gmra.mrb[16].mxu0 %vm645_vm4, %v1001_v45 }
 0x597   : > { %1198 = vmatpush1.bf16.msra.mxu0 %v2218_v43  ;;  %1229 = vmatprep.mubr.bf16.mxu0 %v2512_v10 }
 0x598   : > { %1199 = vmatprep.subr.bf16.mxu0 %v2223_v46 }
 0x59b   : > { %1200 = vmatpush1.bf16.msra.mxu0 %v2221_v48 }
 0x59c   : > { %2042 = vmatprep.subr.bf16.mxu0 %v2513_v22 }
 0x59e   : > { %1923 = vmatmul.mubr.msk.bf16.vlgmr.msra.gmra.mrb[20].mxu0 %vm496_vm0, %v1157_v50 }
 0x59f   : > { %2050 = vmatprep.mubr.msk.bf16.mxu0 %vm2514_vm1, %v2513_v22 }
 0x62c   : > { %v700_v17 = vpop.f32.mrb[4].mxu0 }
 0x62d   : > { %706 = vst.msk [vmem:[#allocation2] sm:$0xff] %vm598_vm3, %v700_v17  ;;  %v1992_v51 = vpop.f32.mrb[5].mxu0 }
 0x62e   : > { %v703_v52 = vpop.f32.mrb[6].mxu0 }
 0x62f   : > { %v1993_v53 = vpop.f32.mrb[7].mxu0 }
 0x634   : > { %v812_v54 = vpop.f32.mrb[8].mxu0 }
 0x635   : > { %v2004_v55 = vpop.f32.mrb[9].mxu0 }
 0x636   : > { %v815_v10 = vpop.f32.mrb[10].mxu0 }
 0x637   : > { %v2005_v56 = vpop.f32.mrb[11].mxu0 }
 0x661   : > { %v928_v57 = vpop.f32.mrb[12].mxu0 }
 0x662   : > { %v2016_v58 = vpop.f32.mrb[13].mxu0 }
 0x663   : > { %v931_v60 = vpop.f32.mrb[14].mxu0 }
 0x664   : > { %v2017_v61 = vpop.f32.mrb[15].mxu0 }
 0x669   : > { %v1044_v1 = vpop.f32.mrb[16].mxu0 }
 0x66a   : > { %v2028_v2 = vpop.f32.mrb[17].mxu0 }
 0x66b   : > { %v1047_v4 = vpop.f32.mrb[18].mxu0 }
 0x66c   : > { %v2029_v6 = vpop.f32.mrb[19].mxu0 }
 0x671   : > { %v1231_v12 = vpop.f32.mrb[20].mxu0 }
 0x672   : > { %v1232_v14 = vadd.f32 %v1231_v12, %v1167_v8  ;;  %v1233_v15 = vpop.f32.mrb[21].mxu0 }
 0x673   : > { %v1235_v18 = vpop.f32.mrb[22].mxu0  ;;  %v1234_v30 = vadd.f32 %v1233_v15, %v1171_v16 }
 0x674   : > { %v1239_v19 = vcombine.high %v1232_v14, %v1232_v14  ;;  %v1246_v20 = vrot.slane %v1232_v14, %v1245_v11  ;;  %v1236_v21 = vpop.f32.mrb[23].mxu0  ;;  %1328 = vrot.lane.b32.xlu1 %v1232_v14, %s2519_s18  ;;  %v2957_v23 = vpack.c.bf16 %v1232_v14, %v1232_v14 }
 0x676   : > { %v1253_v25 = vrot.slane %v1239_v19, %v1245_v11  ;;  %v1254_v27 = vcombine.high %v1246_v20, %v1246_v20  ;;  %1387 = vrot.lane.b32.xlu0 %v2957_v23, %s2516_s12  ;;  %v1262_v28 = vrot.slane %v1246_v20, %v1245_v11 }
 0x678   : > { %v1255_v26 = vcombine.high %v1253_v25, %v1253_v25  ;;  %v1269_v29 = vrot.slane %v1253_v25, %v1245_v11  ;;  %v1276_v31 = vrot.slane %v1254_v27, %v1245_v11  ;;  %v1284_v37 = vcombine.high %v1262_v28, %v1262_v28 }
 0x679   : > { %v1291_v44 = vrot.slane %v1262_v28, %v1166_v3 }
 0x67a   : > { %v1283_v33 = vrot.slane %v1255_v26, %v1245_v11  ;;  %1348 = vrot.lane.b32.xlu0 %v1234_v30, %s2519_s18  ;;  %v1285_v35 = vcombine.high %v1269_v29, %v1269_v29  ;;  %v1286_v38 = vcombine.high %v1276_v31, %v1276_v31  ;;  %v1307_v39 = vrot.slane %v1269_v29, %v1166_v3  ;;  %s3186_s18 = sld [smem:[#allocation27_spill]] }
 0x67b   : > { %v1295_v45 = vrot.slane %v1276_v31, %v1166_v3  ;;  %v1299_v46 = vrot.slane %v1284_v37, %v1166_v3 }
 0x67c   : > { %v1287_v36 = vcombine.high %v1283_v33, %v1283_v33  ;;  %v1311_v40 = vrot.slane %v1283_v33, %v1166_v3  ;;  %v1315_v41 = vrot.slane %v1285_v35, %v1166_v3  ;;  %v1303_v47 = vrot.slane %v1286_v38, %v1166_v3 }
 0x67e   : > { %819 = vrot.lane.b32.xlu0 %v812_v54, %s2520_s11  ;;  %v1319_v42 = vrot.slane %v1287_v36, %v1166_v3 }
 0x680   : > { %s3099_s20 = scalar_lea.hbm %s3186_s18, %s1934_s10 }
 0x682   : > { %935 = vrot.lane.b32.xlu0 %v928_v57, %s2518_s28 }
 0x686   : > { %1051 = vrot.lane.b32.xlu0 %v1044_v1, %s2517_s19 }
 0x6e6   : > { %v1329_v43 = vpop.permute.xlu1 %1328 }
 0x6e7   : > { %v1335_v48 = vmul.f32 %v1329_v43, %v1307_v39  ;;  %v1336_v49 = vmul.f32 %v1329_v43, %v1311_v40  ;;  %v1337_v50 = vmul.f32 %v1329_v43, %v1315_v41  ;;  %v1338_v17 = vmul.f32 %v1329_v43, %v1319_v42 }
 0x6e8   : > { %v1388_v51 = vpop.permute.xlu0 %1387  ;;  %v1331_v52 = vmul.f32 %v1329_v43, %v1291_v44  ;;  %v1333_v53 = vmul.f32 %v1329_v43, %v1299_v46  ;;  %v1332_v54 = vmul.f32 %v1329_v43, %v1295_v45  ;;  %v1334_v55 = vmul.f32 %v1329_v43, %v1303_v47 }
 0x6e9   : > { %v2978_v10 = vpack.c.bf16 %v1336_v49, %v1335_v48  ;;  %v2980_v56 = vpack.c.bf16 %v1338_v17, %v1337_v50  ;;  %1391 = vst.msk [vmem:[#allocation6] sm:$0xf] %vm1390_vm5, %v1388_v51 }
 0x6ea   : > { %v2983_v57 = vpack.c.bf16 %v1332_v54, %v1331_v52  ;;  %v2985_v58 = vpack.c.bf16 %v1334_v55, %v1333_v53 }
 0x6eb   : > { %1345 = vst.msk [vmem:[#allocation4 + $0x10] sm:$0xff] %vm598_vm3, %v2978_v10  ;;  %1346 = vst.msk [vmem:[#allocation4 + $0x18] sm:$0xff] %vm598_vm3, %v2980_v56 }
 0x6ec   : > { %v1349_v59 = vpop.permute.xlu0 %1348  ;;  %1343 = vst.msk [vmem:[#allocation4] sm:$0xff] %vm598_vm3, %v2983_v57  ;;  %1344 = vst.msk [vmem:[#allocation4 + $0x8] sm:$0xff] %vm598_vm3, %v2985_v58 }
 0x6ed   : > { %v1351_v60 = vadd.f32 %v1349_v59, %v1291_v44  ;;  %v1352_v61 = vadd.f32 %v1349_v59, %v1295_v45  ;;  %v1353_v62 = vadd.f32 %v1349_v59, %v1299_v46  ;;  %v1354_v63 = vadd.f32 %v1349_v59, %v1303_v47 }
 0x6ee   : > { %v1357_v0 = vadd.f32 %v1349_v59, %v1315_v41  ;;  %v1358_v1 = vadd.f32 %v1349_v59, %v1319_v42  ;;  %v1355_v2 = vadd.f32 %v1349_v59, %v1307_v39  ;;  %v1356_v3 = vadd.f32 %v1349_v59, %v1311_v40 }
 0x6ef   : > { %v2995_v4 = vpack.c.bf16 %v1352_v61, %v1351_v60  ;;  %v1360_v5 = vpack.c.bf16 %v1354_v63, %v1353_v62 }
 0x6f0   : > { %v820_v6 = vpop.permute.xlu0 %819  ;;  %v2997_v7 = vpack.c.bf16 %v1358_v1, %v1357_v0  ;;  %v2999_v8 = vpack.c.bf16 %v1356_v3, %v1355_v2  ;;  %v1392_v25 = vld [vmem:[#allocation6] sm:$0xf] }
 0x6f1   : > { %823 = vst.msk [vmem:[#allocation2] sm:$0xff] %vm822_vm6, %v820_v6  ;;  %1367 = vrot.lane.b32.xlu0 %v2995_v4, %s2518_s28 }
 0x6f2   : > { %v1395_v19 = vld [vmem:[#allocation4 + $0x10] sm:$0xff]  ;;  %v1396_v21 = vld [vmem:[#allocation4 + $0x18] sm:$0xff] }
 0x6f3   : > { %v1393_v9 = vld [vmem:[#allocation4] sm:$0xff]  ;;  %v1394_v14 = vld [vmem:[#allocation4 + $0x8] sm:$0xff]  ;;  %v1407_v20 = vsel %vm598_vm3, %v1395_v19, 0  ;;  %v1410_v24 = vsel %vm598_vm3, %v1396_v21, 0 }
 0x6f4   : > { %v936_v11 = vpop.permute.xlu0 %935  ;;  %v1401_v12 = vsel %vm598_vm3, %v1393_v9, 0  ;;  %v1404_v15 = vsel %vm598_vm3, %v1394_v14, 0 }
 0x6f5   : > { %939 = vst.msk [vmem:[#allocation2] sm:$0xff] %vm938_vm7, %v936_v11  ;;  %2043 = vmatpush3.bf16.xpose.msra.mxu0 %v1401_v12 }
 0x6f6   : > { %2044 = vmatprep.subr.bf16.mxu0 %v2513_v22 }
 0x6f8   : > { %v1052_v13 = vpop.permute.xlu0 %1051 }
 0x6f9   : > { %1055 = vst.msk [vmem:[#allocation2] sm:$0xff] %vm1054_vm8, %v1052_v13 }
 0x6fd   : > { %2045 = vmatpush3.bf16.xpose.msra.mxu0 %v1404_v15 }
 0x6fe   : > { %2046 = vmatprep.subr.bf16.mxu0 %v2513_v22 }
 0x700   : > { %v1056_v16 = vld [vmem:[#allocation2] sm:$0xff] }
 0x701   : > { %v1057_v18 = vpack.c.bf16 %v1056_v16, %v1056_v16 }
 0x703   : > { %2039 = vmatmul.mubr.msk.bf16.vlgmr.msra.gmra.mrb[16].mxu1 %vm1097_vm9, %v1057_v18 }
 0x704   : > { %2062 = vmatprep.mubr.msk.bf16.mxu1 %vm2514_vm1, %v2513_v22 }
 0x705   : > { %2047 = vmatpush3.bf16.xpose.msra.mxu0 %v1407_v20 }
 0x706   : > { %2048 = vmatprep.subr.bf16.mxu0 %v2513_v22 }
 0x70d   : > { %2049 = vmatpush3.bf16.xpose.msra.mxu0 %v1410_v24 }
 0x70e   : > { %2078 = vmatprep.subr.bf16.mxu0 %v2513_v22 }
 0x714   : > { %2051 = vmatmul.mubr.msk.bf16.vlgmr.msra.gmra.mrb[24].mxu0 %vm598_vm3, %v1392_v25 }
 0x715   : > { %2086 = vmatprep.mubr.msk.bf16.mxu0 %vm2514_vm1, %v2513_v22 }
 0x763   : > { %v1368_v27 = vpop.permute.xlu0 %1367 }
 0x764   : > { %1379 = vst.msk [vmem:[#allocation5] sm:$0xff] %vm598_vm3, %v1368_v27 }
 0x76b   : > { %v1464_v28 = vld [vmem:[#allocation5] sm:$0xff] }
 0x76c   : > { %2055 = vmatpush3.bf16.msra.mxu1 %v1464_v28 }
 0x76d   : > { %2056 = vmatprep.subr.bf16.mxu1 %v2513_v22 }
 0x7e7   : > { %v1446_v26 = vpop.f32.mrb[24].mxu0 }
 0x7e8   : > { %v2052_v29 = vpop.f32.mrb[25].mxu0  ;;  %v1452_v30 = vsel %vm1097_vm9, %v1446_v26, -inf }
 0x7e9   : > { %1453 = vmax.xlane.f32.xlu1 %v1452_v30  ;;  %v1449_v31 = vpop.f32.mrb[26].mxu0 }
 0x7ea   : > { %v2053_v32 = vpop.f32.mrb[27].mxu0 }
 0x7fa   : > { %1369 = vrot.lane.b32.xlu1 %v1360_v5, %s2518_s28 }
 0x7fe   : > { %1373 = vrot.lane.b32.xlu1 %v2997_v7, %s2518_s28 }
 0x802   : > { %1516 = vrot.lane.b32.xlu1 %v2983_v57, %s2515_s17 }
 0x806   : > { %1518 = vrot.lane.b32.xlu1 %v2985_v58, %s2515_s17 }
 0x80a   : > { %1520 = vrot.lane.b32.xlu1 %v2978_v10, %s2515_s17 }
 0x80e   : > { %1522 = vrot.lane.b32.xlu1 %v2980_v56, %s2515_s17 }
 0x812   : > { %1548 = vrot.lane.b32.xlu1 %v2957_v23, %s2517_s19 }
 0x816   : > { %1534 = vrot.lane.b32.xlu1 %v1360_v5, %s2520_s11 }
 0x876   : > { %v1454_v33 = vpop.xlane.xlu1 %1453 }
 0x877   : > { %v1455_v34 = vsub.f32 %v1446_v26, %v1454_v33 }
 0x879   : > { %v1456_v35 = vmul.f32 1.442695, %v1455_v34  ;;  %v1911_v34 = vld [vmem:[#allocation13] ss:$0 sm:$0xff] }
 0x87a   : > { %v1370_v36 = vpop.permute.xlu1 %1369 }
 0x87b   : > { %2248 = vpow2.f32 %v1456_v35  ;;  %1380 = vst.msk [vmem:[#allocation5 + $0x8] sm:$0xff] %vm598_vm3, %v1370_v36 }
 0x87e   : > { %v1374_v37 = vpop.permute.xlu1 %1373 }
 0x87f   : > { %1382 = vst.msk [vmem:[#allocation5 + $0x18] sm:$0xff] %vm598_vm3, %v1374_v37 }
 0x882   : > { %v1517_v38 = vpop.permute.xlu1 %1516  ;;  %v1465_v39 = vld [vmem:[#allocation5 + $0x8] sm:$0xff] }
 0x883   : > { %1528 = vst.msk [vmem:[#allocation4] sm:$0xff] %vm598_vm3, %v1517_v38  ;;  %2057 = vmatpush3.bf16.msra.mxu1 %v1465_v39 }
 0x884   : > { %2058 = vmatprep.subr.bf16.mxu1 %v2513_v22 }
 0x885   : > { %v2249_v23 = vpop.eup %2248 }
 0x886   : > { %v1519_v40 = vpop.permute.xlu1 %1518  ;;  %v1458_v41 = vsel %vm1097_vm9, %v2249_v23, 0.0  ;;  %v1467_v17 = vld [vmem:[#allocation5 + $0x18] sm:$0xff] }
 0x887   : > { %1529 = vst.msk [vmem:[#allocation4 + $0x8] sm:$0xff] %vm598_vm3, %v1519_v40  ;;  %1459 = vadd.xlane.f32.xlu0 %v1458_v41 }
 0x88a   : > { %v1521_v42 = vpop.permute.xlu1 %1520  ;;  %v1553_v52 = vld [vmem:[#allocation4] sm:$0xff] }
 0x88b   : > { %1530 = vst.msk [vmem:[#allocation4 + $0x10] sm:$0xff] %vm598_vm3, %v1521_v42  ;;  %v1561_v53 = vsel %vm598_vm3, %v1553_v52, 0 }
 0x88e   : > { %v1523_v43 = vpop.permute.xlu1 %1522  ;;  %v1554_v54 = vld [vmem:[#allocation4 + $0x8] sm:$0xff] }
 0x88f   : > { %1531 = vst.msk [vmem:[#allocation4 + $0x18] sm:$0xff] %vm598_vm3, %v1523_v43  ;;  %v1564_v55 = vsel %vm598_vm3, %v1554_v54, 0 }
 0x892   : > { %v1549_v44 = vpop.permute.xlu1 %1548  ;;  %v1555_v10 = vld [vmem:[#allocation4 + $0x10] sm:$0xff] }
 0x893   : > { %1551 = vst.msk [vmem:[#allocation6] sm:$0xf] %vm1390_vm5, %v1549_v44  ;;  %v1567_v56 = vsel %vm598_vm3, %v1555_v10, 0 }
 0x896   : > { %v1535_v45 = vpop.permute.xlu1 %1534  ;;  %v1556_v57 = vld [vmem:[#allocation4 + $0x18] sm:$0xff] }
 0x897   : > { %1545 = vst.msk [vmem:[#allocation5 + $0x8] sm:$0xff] %vm598_vm3, %v1535_v45  ;;  %v1570_v58 = vsel %vm598_vm3, %v1556_v57, 0 }
 0x89a   : > { %v1552_v59 = vld [vmem:[#allocation6] sm:$0xf] }
 0x89d   : > { %1371 = vrot.lane.b32.xlu0 %v2999_v8, %s2518_s28  ;;  %s3183_s28 = sld [smem:[#allocation25_spill]] }
 0x89e   : > { %v1625_v16 = vld [vmem:[#allocation5 + $0x8] sm:$0xff] }
 0x8a3   : > { %v2228_v27 = vld [vmem:[%s3183_s28] sm:$0xff]  }
 0x914   : > { %v1460_v46 = vpop.xlane.xlu0 %1459 }
 0x915   : > { %2250 = vrcp.f32 %v1460_v46 }
 0x918   : > { %v1372_v47 = vpop.permute.xlu0 %1371 }
 0x919   : > { %1381 = vst.msk [vmem:[#allocation5 + $0x10] sm:$0xff] %vm598_vm3, %v1372_v47 }
 0x91f   : > { %v2251_v48 = vpop.eup %2250 }
 0x920   : > { %v1466_v49 = vld [vmem:[#allocation5 + $0x10] sm:$0xff]  ;;  %v1462_v50 = vmul.f32 %v2251_v48, %v2249_v23 }
 0x921   : > { %2059 = vmatpush3.bf16.msra.mxu1 %v1466_v49 }
 0x922   : > { %2060 = vmatprep.subr.bf16.mxu1 %v2513_v22  ;;  %v1463_v51 = vpack.c.bf16 %v1462_v50, %v1462_v50 }
 0x925   : > { %2061 = vmatpush3.bf16.msra.mxu1 %v1467_v17 }
 0x926   : > { %2066 = vmatprep.subr.bf16.mxu1 %v2513_v22 }
 0x928   : > { %2063 = vmatmul.mubr.msk.bf16.vlgmr.msra.gmra.mrb[20].mxu1 %vm1097_vm9, %v1463_v51 }
 0x929   : > { %2074 = vmatprep.mubr.msk.bf16.mxu1 %vm2514_vm1, %v2513_v22 }
 0x92e   : > { %2067 = vmatpush3.bf16.xpose.msra.mxu1 %v1561_v53 }
 0x92f   : > { %2068 = vmatprep.subr.bf16.mxu1 %v2513_v22 }
 0x936   : > { %2069 = vmatpush3.bf16.xpose.msra.mxu1 %v1564_v55 }
 0x937   : > { %2070 = vmatprep.subr.bf16.mxu1 %v2513_v22 }
 0x93e   : > { %2071 = vmatpush3.bf16.xpose.msra.mxu1 %v1567_v56 }
 0x93f   : > { %2072 = vmatprep.subr.bf16.mxu1 %v2513_v22 }
 0x946   : > { %2073 = vmatpush3.bf16.xpose.msra.mxu1 %v1570_v58 }
 0x947   : > { %2090 = vmatprep.subr.bf16.mxu1 %v2513_v22 }
 0x94d   : > { %2075 = vmatmul.mubr.msk.bf16.vlgmr.msra.gmra.mrb[24].mxu1 %vm598_vm3, %v1552_v59 }
 0x94e   : > { %2094 = vmatprep.mubr.msk.bf16.mxu1 %vm2514_vm1, %v2513_v22  ;;  %2091 = vmatpush3.bf16.msra.mxu1 %v2228_v27 }
 0x94f   : > { %2092 = vmatprep.subr.bf16.mxu1 %v2513_v22 }
 0x9fb   : > { %v1505_v60 = vpop.f32.mrb[20].mxu1 }
 0x9fc   : > { %1511 = vst.msk [vmem:[#allocation3] sm:$0xff] %vm598_vm3, %v1505_v60  ;;  %v2064_v61 = vpop.f32.mrb[21].mxu1 }
 0x9fd   : > { %v1508_v62 = vpop.f32.mrb[22].mxu1 }
 0x9fe   : > { %v2065_v63 = vpop.f32.mrb[23].mxu1 }
 0xa20   : > { %v1606_v0 = vpop.f32.mrb[24].mxu1 }
 0xa21   : > { %v2076_v1 = vpop.f32.mrb[25].mxu1  ;;  %v1612_v2 = vsel %vm1097_vm9, %v1606_v0, -inf }
 0xa22   : > { %1613 = vmax.xlane.f32.xlu0 %v1612_v2  ;;  %v1609_v3 = vpop.f32.mrb[26].mxu1 }
 0xa23   : > { %v2077_v5 = vpop.f32.mrb[27].mxu1 }
 0xa38   : > { %1532 = vrot.lane.b32.xlu0 %v2995_v4, %s2520_s11 }
 0xa3c   : > { %1536 = vrot.lane.b32.xlu0 %v2999_v8, %s2520_s11 }
 0xaaf   : > { %v1614_v6 = vpop.xlane.xlu0 %1613 }
 0xab0   : > { %v1615_v9 = vsub.f32 %v1606_v0, %v1614_v6 }
 0xab2   : > { %v1616_v11 = vmul.f32 1.442695, %v1615_v9 }
 0xab3   : > { %v1533_v12 = vpop.permute.xlu0 %1532 }
 0xab4   : > { %2252 = vpow2.f32 %v1616_v11  ;;  %1544 = vst.msk [vmem:[#allocation5] sm:$0xff] %vm598_vm3, %v1533_v12 }
 0xab7   : > { %v1537_v13 = vpop.permute.xlu0 %1536 }
 0xab8   : > { %1546 = vst.msk [vmem:[#allocation5 + $0x10] sm:$0xff] %vm598_vm3, %v1537_v13 }
 0xabb   : > { %v1624_v14 = vld [vmem:[#allocation5] sm:$0xff] }
 0xabc   : > { %2079 = vmatpush3.bf16.msra.mxu0 %v1624_v14 }
 0xabd   : > { %2080 = vmatprep.subr.bf16.mxu0 %v2513_v22 }
 0xabe   : > { %v2253_v15 = vpop.eup %2252 }
 0xabf   : > { %v1618_v4 = vsel %vm1097_vm9, %v2253_v15, 0.0  ;;  %v1626_v8 = vld [vmem:[#allocation5 + $0x10] sm:$0xff] }
 0xac0   : > { %1619 = vadd.xlane.f32.xlu1 %v1618_v4  ;;  %2081 = vmatpush3.bf16.msra.mxu0 %v1625_v16 }
 0xac1   : > { %2082 = vmatprep.subr.bf16.mxu0 %v2513_v22 }
 0xac4   : > { %2083 = vmatpush3.bf16.msra.mxu0 %v1626_v8 }
 0xac5   : > { %2084 = vmatprep.subr.bf16.mxu0 %v2513_v22  ;;  %v1929_v22 = vld [vmem:[%s3184_s14] ss:$0 sm:$0xff]  ;;  %s2430_s14 = sshll.u32 %s2523_s29, 4  ;;  %s2431_s14 = int_to_ptr.vmem [resolvable:$false] %s2430_s14 }
 0xac6   : > { %v2098_v35 = vadd.f32 %v1929_v22, %v1911_v34  ;;  %s2432_s10 = scalar_lea.vmem %s2431_s14, 256 }
 0xad1   : > { %1538 = vrot.lane.b32.xlu1 %v2997_v7, %s2520_s11  ;;  %v2229_v7 = vld [vmem:[%s3183_s28 + $0x8] sm:$0xff]  }
 0xad2   : > { %2093 = vmatpush3.bf16.msra.mxu1 %v2229_v7 }
 0xb4d   : > { %v1620_v18 = vpop.xlane.xlu1 %1619 }
 0xb4e   : > { %2254 = vrcp.f32 %v1620_v18 }
 0xb51   : > { %v1539_v19 = vpop.permute.xlu1 %1538 }
 0xb52   : > { %1547 = vst.msk [vmem:[#allocation5 + $0x18] sm:$0xff] %vm598_vm3, %v1539_v19 }
 0xb58   : > { %v2255_v20 = vpop.eup %2254 }
 0xb59   : > { %v1622_v21 = vmul.f32 %v2255_v20, %v2253_v15  ;;  %v1627_v24 = vld [vmem:[#allocation5 + $0x18] sm:$0xff] }
 0xb5a   : > { %2085 = vmatpush3.bf16.msra.mxu0 %v1627_v24 }
 0xb5b   : > { %v1623_v25 = vpack.c.bf16 %v1622_v21, %v1622_v21 }
 0xb5d   : > { %2087 = vmatmul.mubr.msk.bf16.vlgmr.msra.gmra.mrb[28].mxu0 %vm1097_vm9, %v1623_v25 }
 0xc30   : > { %v1665_v28 = vpop.f32.mrb[28].mxu0 }
 0xc31   : > { %1672 = vrot.lane.b32.xlu0 %v1665_v28, %s2520_s11  ;;  %v2088_v26 = vpop.f32.mrb[29].mxu0  ;;  %s3185_s11 = sshll.u32 %s2823_s1, 3 }
 0xc32   : > { %v1668_v29 = vpop.f32.mrb[30].mxu0  ;;  %s491_s30 = scalar_lea.vmem [#allocation18], %s3185_s11 }
 0xc33   : > { %v2089_v30 = vpop.f32.mrb[31].mxu0  ;;  %s1760_s12 = sshll.u32 %s491_s30, 4  ;;  %s3101_s12 = int_to_ptr.vmem [resolvable:$true] %s1760_s12 }
 0xc34   : > { %s2426_s13 = scalar_lea.vmem %s3101_s12, 128  ;;  %p2433_p1 = scmp.lt.s32.totalorder %s3101_s12, %s2431_s14 }
 0xc35   : > { %p2427_p7 = scmp.ne.s32.totalorder %s3101_s12, %s2426_s13  ;;  %p2434_p3 = scmp.lt.s32.totalorder %s2432_s10, %s2426_s13 }
 0xc37   : > { %p2428_p4 = pnand %p2427_p7, %p3187_p10  ;;  %p2435_p2 = por %p2434_p3, %p2433_p1 }
 0xc39   : > { %p2429_p13 = pneg %p2428_p4 }
 0xc3b   : > { %p2436_p0 = pnand %p2435_p2, %p2429_p13 }
 0xca3   : > { %v1673_v31 = vpop.permute.xlu0 %1672 }
 0xca4   : > { %1675 = vst.msk [vmem:[#allocation3] sm:$0xff] %vm822_vm6, %v1673_v31 }
 0xcab   : > { %v1676_v32 = vld [vmem:[#allocation3] sm:$0xff] }
 0xcac   : > { %v1677_v33 = vpack.c.bf16 %v1676_v32, %v1676_v32 }
 0xcae   : > { %2095 = vmatmul.mubr.msk.bf16.vlgmr.msra.gmra.mrb[16].mxu1 %vm496_vm0, %v1677_v33 }
 0xd81   : > { %v1738_v36 = vpop.f32.mrb[16].mxu1 }
 0xd82   : > { %v2099_v37 = vadd.f32 %v2098_v35, %v1738_v36  ;;  %v2096_v38 = vpop.f32.mrb[17].mxu1 }
 0xd83   : > { %v1741_v39 = vpop.f32.mrb[18].mxu1 }
 0xd84   : > { %v2097_v23 = vpop.f32.mrb[19].mxu1  ;;  %1745 = vst.msk [vmem:[%s491_s30] sm:$0xff] %vm496_vm0, %v2099_v37 }
 0xd85   : > { %2439 = shalt.err (!%p2436_p0)
}
 0xd86   : > { %s2440_s1 = scalar_lea.hbm %s3099_s20, 128  ;;  %s2444_s17 = scalar_lea.hbm %s3186_s18, 256 }
 0xd87   : > { %p2441_p6 = scmp.ne.s32.totalorder %s3099_s20, %s2440_s1  ;;  %p2445_p8 = scmp.lt.u32.totalorder %s3099_s20, %s3186_s18 }
 0xd88   : > { %p2446_p5 = scmp.lt.u32.totalorder %s2444_s17, %s2440_s1  ;;  %p2448_p7 = scmp.lt.u32.totalorder %s2440_s1, %s3099_s20 }
 0xd89   : > { %p2442_p11 = pnand %p2441_p6, %p3187_p10 }
 0xd8a   : > { %p2447_p9 = por %p2446_p5, %p2445_p8 }
 0xd8b   : > { %p2443_p12 = pneg %p2442_p11 }
 0xd8c   : > { %p2449_p4 = por %p2448_p7, %p2447_p9 }
 0xd8e   : > { %p2450_p13 = pnand %p2449_p4, %p2443_p12 }
 0xd90   : > { %2453 = shalt.err (!%p2450_p13)
}
 0xd91   : > { %2126 = dma.vmem_to_hbm [thread:$0]  (%p3187_p10), %s3101_s12, 128, %s3099_s20, %s1747_s27  }
 0xd92 PF: > { %s1772_s13 = sand.u32 1, %s2492_s21   ;;  %p3188_p1 = scmp.ne.s32.totalorder %s3174_s26, 0 }
 0xd93   : > { %p3189_p3 = scmp.ge.s32.totalorder %s2504_s24, 2  ;;  %s1773_s14 = scalar_lea.sflag [#allocation9], %s1772_s13 }
 0xd95   : > { %p2149_p2 = pnand %p3189_p3, %p3188_p1 }
 0xd97   : > { %2487 = dma.done.wait (!%p2149_p2), %s1773_s14, 128  }
 0xd98   : > { %2489 = vsyncadd (!%p2149_p2), %s1773_s14, 4294967168  ;;  %p28_p0 = scmp.ge.s32.totalorder %s2753_s15, 4   ;;  %s3190_s21 = smov %s2496_s22 }
 0xd99   : > { %s3191_s22 = smov %s2500_s23  ;;  %s3192_s23 = smov %s2765_s16 }
 0xd9a   : > { %s3193_s24 = smov %s2753_s15  ;;  %30 = sbr.rel (!%p28_p0) target bundleno = 13 (0xd), region = 133 }
 0xda1   :  { %1778 = vsyncpa [#allocation8], 1 }
 0xda2   :  { %1780 = vsyncpa [#allocation8 + $0x1], 1 }
 0xda3   :  { %1781 = vsyncpa [#allocation11], 1 }
 0xda4   :  { %1782 = vsyncpa [#allocation14], 1 }
 0xda5   :  { %1783 = vsyncpa [#allocation17], 1 }
 0xda6   :  { %1784 = vsyncpa [#allocation9], 1 }
 0xda7   :  { %1786 = vsyncpa [#allocation9 + $0x1], 1 }

</bundles_post_ra>
